<compile_context>
chip_gen: v6e
topology: v6e:2x2x1
jax: 0.10.0
libtpu: 0.0.40
codegen_flags: <defaults>
</compile_context>

<pallas_src>
import functools

import jax
import jax.numpy as jnp
import numpy as np
from jax.experimental import pallas as pl
from jax.experimental.pallas import tpu as pltpu  # noqa: F401  (TPU backend)

NDF = 8          # args.ndf (small, synthetic)
OUTDIM = 22      # self.outdim
KSIZE = 4
BN_EPS = 1e-5
LRELU_SLOPE = 0.2


# ----------------------------- Pallas kernel --------------------------------

def _netd_kernel(a0_ref, cond_ref,
                 r1_ref, t1_ref,
                 r2_ref, t2_ref, bc2_ref, bct2_ref, g2_ref, b2_ref,
                 r3_ref, t3_ref, bc3_ref, bct3_ref, g3_ref, b3_ref,
                 r4_ref, t4_ref, bc4_ref, bct4_ref, g4_ref, b4_ref,
                 r5_ref, w5_ref, out_ref):
    """Whole NetD forward on VMEM-resident data.

    Activations are kept flattened as (B*H, W*C) bf16 values (rows = (b, h),
    cols = (w, c)).  A stride-2/pad-1 4x4 conv is:
        out = sum_kh  (R_kh @ A) @ T_kh            (f32 accumulation)
    with R_kh the 0/1 H-selection matrix and T_kh the W-Toeplitz weight.
    """

    def lrelu(y):
        return jnp.where(y > 0, y, LRELU_SLOPE * y)

    def conv(a_bf16, r_ref, t_ref):
        acc = None
        for kh in range(KSIZE):
            # R_kh @ A : exact 0/1 row selection (lossless even in bf16).
            sel = jnp.dot(r_ref[kh], a_bf16,
                          preferred_element_type=jnp.float32).astype(jnp.bfloat16)
            part = jnp.dot(sel, t_ref[kh], preferred_element_type=jnp.float32)
            acc = part if acc is None else acc + part
        return acc                                       # f32 (B*Ho, Wo*Cout)

    def bn_lrelu(acc, bc_ref, bct_ref, g_ref, b_ref):
        bc = bc_ref[...]                                  # (C, N)  0/1 broadcast
        bct = bct_ref[...]                                # (N, C)  0/1 reduce
        n_ch = bc.shape[0]
        count = acc.shape[0] * (acc.shape[1] // n_ch)     # B*Ho*Wo (python int)
        inv_count = 1.0 / float(count)

        row_sum = jnp.sum(acc, axis=0, keepdims=True)                       # (1, N)
        mean_c = jnp.dot(row_sum, bct,
                         preferred_element_type=jnp.float32) * inv_count    # (1, C)
        mean_b = jnp.dot(mean_c, bc, preferred_element_type=jnp.float32)    # (1, N)

        centered = acc - mean_b                                             # two-pass
        sq_sum = jnp.sum(centered * centered, axis=0, keepdims=True)        # (1, N)
        var_c = jnp.dot(sq_sum, bct,
                        preferred_element_type=jnp.float32) * inv_count     # (1, C)

        scale_c = g_ref[...] * jax.lax.rsqrt(var_c + BN_EPS)                # (1, C)
        scale_b = jnp.dot(scale_c, bc, preferred_element_type=jnp.float32)  # (1, N)
        shift_b = jnp.dot(b_ref[...], bc, preferred_element_type=jnp.float32)
        return lrelu(centered * scale_b + shift_b)

    a0 = a0_ref[...]                                                        # (B*64, 192)
    x1 = lrelu(conv(a0, r1_ref, t1_ref)).astype(jnp.bfloat16)               # (B*32, 256)
    x2 = bn_lrelu(conv(x1, r2_ref, t2_ref),
                  bc2_ref, bct2_ref, g2_ref, b2_ref).astype(jnp.bfloat16)   # (B*16, 256)
    x3 = bn_lrelu(conv(x2, r3_ref, t3_ref),
                  bc3_ref, bct3_ref, g3_ref, b3_ref).astype(jnp.bfloat16)   # (B*8, 256)
    x4 = bn_lrelu(conv(x3, r4_ref, t4_ref),
                  bc4_ref, bct4_ref, g4_ref, b4_ref).astype(jnp.bfloat16)   # (B*4, 256)

    # conv5 (4x4, stride 1, no pad, 1x1 output) + row-dot(condition) + sigmoid.
    enc = None
    for kh in range(KSIZE):
        sel = jnp.dot(r5_ref[kh], x4,
                      preferred_element_type=jnp.float32).astype(jnp.bfloat16)  # (B, 256)
        part = jnp.dot(sel, w5_ref[kh], preferred_element_type=jnp.float32)     # (B, 22)
        enc = part if enc is None else enc + part

    sim = jnp.sum(enc * cond_ref[...], axis=1, keepdims=True)               # (B, 1)
    out_ref[...] = 1.0 / (1.0 + jnp.exp(-sim))


# ------------------------- host-side preparation ----------------------------

def init_netd_params(key, ndf=NDF):
    """Deterministic synthetic init (same shapes as NetD.__init__)."""
    shapes = [(ndf, 3, KSIZE, KSIZE),
              (ndf * 2, ndf, KSIZE, KSIZE),
              (ndf * 4, ndf * 2, KSIZE, KSIZE),
              (ndf * 8, ndf * 4, KSIZE, KSIZE),
              (OUTDIM, ndf * 8, KSIZE, KSIZE)]
    params = {}
    for i, s in enumerate(shapes):
        k = jax.random.fold_in(key, i)
        fan_in = s[1] * s[2] * s[3]
        params[f"w{i + 1}"] = (jax.random.uniform(k, s, jnp.float32, -1.0, 1.0)
                               / np.sqrt(fan_in)).astype(jnp.float32)
    for i, c in zip((2, 3, 4), (ndf * 2, ndf * 4, ndf * 8)):
        kg = jax.random.fold_in(key, 10 + i)
        kb = jax.random.fold_in(key, 20 + i)
        params[f"gamma{i}"] = jax.random.uniform(kg, (1, c), jnp.float32, 0.5, 1.5)
        params[f"beta{i}"] = jax.random.uniform(kb, (1, c), jnp.float32, -0.5, 0.5)
    return params


def prepare_netd(params, batch=2, image_hw=64):
    """Build the R (H-selection), T (W-Toeplitz weight), conv5 and BN-broadcast
    matrices on the host (NumPy) and upload them once as device arrays."""
    B = batch
    p = {k: np.asarray(v, np.float32) for k, v in params.items()}
    ndf = p["w1"].shape[0]
    bf = jnp.bfloat16

    def r_stack(H):                       # (4, B*Ho, B*H) 0/1
        Ho = H // 2
        R = np.zeros((KSIZE, B * Ho, B * H), np.float32)
        for kh in range(KSIZE):
            for b in range(B):
                for ho in range(Ho):
                    hi = 2 * ho + kh - 1
                    if 0 <= hi < H:
                        R[kh, b * Ho + ho, b * H + hi] = 1.0
        return R

    def t_stack(w, W):                    # (4, W*Cin, Wo*Cout) block-Toeplitz
        Cout, Cin, KH, KW = w.shape
        Wo = W // 2
        T = np.zeros((KSIZE, W * Cin, Wo * Cout), np.float32)
        for kh in range(KH):
            for wo in range(Wo):
                for kw in range(KW):
                    wi = 2 * wo + kw - 1
                    if 0 <= wi < W:
                        T[kh, wi * Cin:(wi + 1) * Cin,
                          wo * Cout:(wo + 1) * Cout] = w[:, :, kh, kw].T
        return T

    prep = {}
    sizes = [(image_hw, p["w1"]), (image_hw // 2, p["w2"]),
             (image_hw // 4, p["w3"]), (image_hw // 8, p["w4"])]
    for i, (hw, w) in enumerate(sizes, start=1):
        prep[f"r{i}"] = jnp.asarray(r_stack(hw), bf)
        prep[f"t{i}"] = jnp.asarray(t_stack(w, hw), bf)

    # conv5: 4x4 valid conv on the 4x4 map -> per-kh (kw, ci)-flattened weight.
    w5 = p["w5"]                                        # (22, ndf*8, 4, 4)
    Cin5 = w5.shape[1]
    W5 = np.zeros((KSIZE, KSIZE * Cin5, OUTDIM), np.float32)
    for kh in range(KSIZE):
        for kw in range(KSIZE):
            W5[kh, kw * Cin5:(kw + 1) * Cin5, :] = w5[:, :, kh, kw].T
    prep["w5"] = jnp.asarray(W5, bf)

    H5 = image_hw // 16                                 # = 4 spatial rows into conv5
    R5 = np.zeros((KSIZE, B, B * H5), np.float32)
    for kh in range(KSIZE):
        for b in range(B):
            R5[kh, b, b * H5 + kh] = 1.0
    prep["r5"] = jnp.asarray(R5, bf)

    # BN channel-sum / channel-broadcast matrices for the lane-folded layout.
    bn_cfg = ((2, 2 * ndf, image_hw // 4),
              (3, 4 * ndf, image_hw // 8),
              (4, 8 * ndf, image_hw // 16))
    for i, C, Wo in bn_cfg:
        bc = np.tile(np.eye(C, dtype=np.float32), (1, Wo))   # (C, Wo*C)
        prep[f"bc{i}"] = jnp.asarray(bc, jnp.float32)
        prep[f"bct{i}"] = jnp.asarray(np.ascontiguousarray(bc.T), jnp.float32)
        prep[f"gamma{i}"] = jnp.asarray(p[f"gamma{i}"], jnp.float32)
        prep[f"beta{i}"] = jnp.asarray(p[f"beta{i}"], jnp.float32)
    return prep


# --------------------------------- wrapper -----------------------------------

def netd_forward(prep, image_nchw, condition):
    """Pallas implementation of NetD.forward(image, condition) — 1 pallas_call."""
    B, _, H, _ = image_nchw.shape
    # Only wrapper-side data movement: NCHW -> flattened (B*H, W*3) bf16 rows.
    a0 = jnp.transpose(image_nchw, (0, 2, 3, 1)).reshape(B * H, H * 3)
    a0 = a0.astype(jnp.bfloat16)
    cond = condition.astype(jnp.float32)

    args = (a0, cond,
            prep["r1"], prep["t1"],
            prep["r2"], prep["t2"], prep["bc2"], prep["bct2"],
            prep["gamma2"], prep["beta2"],
            prep["r3"], prep["t3"], prep["bc3"], prep["bct3"],
            prep["gamma3"], prep["beta3"],
            prep["r4"], prep["t4"], prep["bc4"], prep["bct4"],
            prep["gamma4"], prep["beta4"],
            prep["r5"], prep["w5"])

    # Advisory cost estimate (per review): main R/T matmul flops + small fudge.
    flops = 2_000_000
    for r, t in ((prep["r1"], prep["t1"]), (prep["r2"], prep["t2"]),
                 (prep["r3"], prep["t3"]), (prep["r4"], prep["t4"]),
                 (prep["r5"], prep["w5"])):
        k_, m2, m1 = r.shape
        kdim, n = t.shape[1], t.shape[2]
        flops += k_ * 2 * (m2 * m1 * kdim + m2 * kdim * n)
    bytes_accessed = sum(int(np.prod(a.shape)) * a.dtype.itemsize for a in args)
    bytes_accessed += B * 4

    out = pl.pallas_call(
        _netd_kernel,
        grid=(1,),
        in_specs=[pl.BlockSpec(a.shape, lambda i, _n=a.ndim: (0,) * _n)
                  for a in args],
        out_specs=pl.BlockSpec((B, 1), lambda i: (0, 0)),
        out_shape=jax.ShapeDtypeStruct((B, 1), jnp.float32),
        cost_estimate=pl.CostEstimate(flops=int(flops), transcendentals=256,
                                      bytes_accessed=int(bytes_accessed)),
    )(*args)
    return out.reshape(B)


# ----------------------- pure-JAX reference (check) ---------------------------

def netd_reference(params, image_nchw, condition):
    x = jnp.transpose(image_nchw, (0, 2, 3, 1)).astype(jnp.float32)

    def conv(x, w, stride, pad):
        w_hwio = jnp.transpose(w, (2, 3, 1, 0))
        return jax.lax.conv_general_dilated(
            x, w_hwio, (stride, stride), [(pad, pad), (pad, pad)],
            dimension_numbers=("NHWC", "HWIO", "NHWC"),
            precision=jax.lax.Precision.HIGHEST)

    def lrelu(v):
        return jnp.where(v > 0, v, LRELU_SLOPE * v)

    def bn(v, g, b):
        mean = jnp.mean(v, axis=(0, 1, 2), keepdims=True)
        var = jnp.mean(jnp.square(v - mean), axis=(0, 1, 2), keepdims=True)
        return (v - mean) * (g.reshape(1, 1, 1, -1) * jax.lax.rsqrt(var + BN_EPS)) \
            + b.reshape(1, 1, 1, -1)

    x = lrelu(conv(x, params["w1"], 2, 1))
    for i in (2, 3, 4):
        x = lrelu(bn(conv(x, params[f"w{i}"], 2, 1),
                     params[f"gamma{i}"], params[f"beta{i}"]))
    x = conv(x, params["w5"], 1, 0)
    encoded = x.reshape(x.shape[0], -1)
    return jax.nn.sigmoid(jnp.sum(encoded * condition, axis=1))


# ----------------------------------- main -------------------------------------

if __name__ == "__main__":
    B = 2
    key = jax.random.PRNGKey(0)
    ikey, ckey = jax.random.split(key)

    params = init_netd_params(jax.random.PRNGKey(42))
    # PyTorch conv inputs are NCHW; 64x64 images so the final conv yields 1x1x22.
    image = jax.random.normal(ikey, (B, 3, 64, 64), jnp.float32)
    condition = jax.random.normal(ckey, (B, OUTDIM), jnp.float32)

    prep = prepare_netd(params, batch=B, image_hw=64)

    fwd = jax.jit(netd_forward)
    out = jax.block_until_ready(fwd(prep, image, condition))
    assert out.shape == (B,)

    # bf16 MXU operands vs. f32 HIGHEST-precision reference -> 2e-2 tolerance.
    ref = netd_reference(params, image, condition)
    np.testing.assert_allclose(np.asarray(out), np.asarray(ref),
                               rtol=2e-2, atol=2e-2)

    print("KERNEL_OK")
</pallas_src>

<mosaic_0001>
module attributes {stable_mosaic.version = 11 : i64} {
  func.func @_netd_kernel(%arg0: i32, %arg1: memref<128x192xbf16, #tpu.memory_space<vmem>>, %arg2: memref<2x22xf32, #tpu.memory_space<vmem>>, %arg3: memref<4x64x128xbf16, #tpu.memory_space<vmem>>, %arg4: memref<4x192x256xbf16, #tpu.memory_space<vmem>>, %arg5: memref<4x32x64xbf16, #tpu.memory_space<vmem>>, %arg6: memref<4x256x256xbf16, #tpu.memory_space<vmem>>, %arg7: memref<16x256xf32, #tpu.memory_space<vmem>>, %arg8: memref<256x16xf32, #tpu.memory_space<vmem>>, %arg9: memref<1x16xf32, #tpu.memory_space<vmem>>, %arg10: memref<1x16xf32, #tpu.memory_space<vmem>>, %arg11: memref<4x16x32xbf16, #tpu.memory_space<vmem>>, %arg12: memref<4x256x256xbf16, #tpu.memory_space<vmem>>, %arg13: memref<32x256xf32, #tpu.memory_space<vmem>>, %arg14: memref<256x32xf32, #tpu.memory_space<vmem>>, %arg15: memref<1x32xf32, #tpu.memory_space<vmem>>, %arg16: memref<1x32xf32, #tpu.memory_space<vmem>>, %arg17: memref<4x8x16xbf16, #tpu.memory_space<vmem>>, %arg18: memref<4x256x256xbf16, #tpu.memory_space<vmem>>, %arg19: memref<64x256xf32, #tpu.memory_space<vmem>>, %arg20: memref<256x64xf32, #tpu.memory_space<vmem>>, %arg21: memref<1x64xf32, #tpu.memory_space<vmem>>, %arg22: memref<1x64xf32, #tpu.memory_space<vmem>>, %arg23: memref<4x2x8xbf16, #tpu.memory_space<vmem>>, %arg24: memref<4x256x22xbf16, #tpu.memory_space<vmem>>, %arg25: memref<2x1xf32, #tpu.memory_space<vmem>>) attributes {dimension_semantics = [#tpu.dimension_semantics<arbitrary>], iteration_bounds = array<i64: 1>, scalar_prefetch = 0 : i64, scratch_operands = 0 : i64, tpu.core_type = #tpu.core_type<tc>, window_params = [{pipeline_mode = #tpu.pipeline_mode<synchronous>, transform_indices = @transform_0, window_bounds = array<i64: 128, 192>}, {pipeline_mode = #tpu.pipeline_mode<synchronous>, transform_indices = @transform_1, window_bounds = array<i64: 2, 22>}, {pipeline_mode = #tpu.pipeline_mode<synchronous>, transform_indices = @transform_2, window_bounds = array<i64: 4, 64, 128>}, {pipeline_mode = #tpu.pipeline_mode<synchronous>, transform_indices = @transform_3, window_bounds = array<i64: 4, 192, 256>}, {pipeline_mode = #tpu.pipeline_mode<synchronous>, transform_indices = @transform_4, window_bounds = array<i64: 4, 32, 64>}, {pipeline_mode = #tpu.pipeline_mode<synchronous>, transform_indices = @transform_5, window_bounds = array<i64: 4, 256, 256>}, {pipeline_mode = #tpu.pipeline_mode<synchronous>, transform_indices = @transform_6, window_bounds = array<i64: 16, 256>}, {pipeline_mode = #tpu.pipeline_mode<synchronous>, transform_indices = @transform_7, window_bounds = array<i64: 256, 16>}, {pipeline_mode = #tpu.pipeline_mode<synchronous>, transform_indices = @transform_8, window_bounds = array<i64: 1, 16>}, {pipeline_mode = #tpu.pipeline_mode<synchronous>, transform_indices = @transform_9, window_bounds = array<i64: 1, 16>}, {pipeline_mode = #tpu.pipeline_mode<synchronous>, transform_indices = @transform_10, window_bounds = array<i64: 4, 16, 32>}, {pipeline_mode = #tpu.pipeline_mode<synchronous>, transform_indices = @transform_11, window_bounds = array<i64: 4, 256, 256>}, {pipeline_mode = #tpu.pipeline_mode<synchronous>, transform_indices = @transform_12, window_bounds = array<i64: 32, 256>}, {pipeline_mode = #tpu.pipeline_mode<synchronous>, transform_indices = @transform_13, window_bounds = array<i64: 256, 32>}, {pipeline_mode = #tpu.pipeline_mode<synchronous>, transform_indices = @transform_14, window_bounds = array<i64: 1, 32>}, {pipeline_mode = #tpu.pipeline_mode<synchronous>, transform_indices = @transform_15, window_bounds = array<i64: 1, 32>}, {pipeline_mode = #tpu.pipeline_mode<synchronous>, transform_indices = @transform_16, window_bounds = array<i64: 4, 8, 16>}, {pipeline_mode = #tpu.pipeline_mode<synchronous>, transform_indices = @transform_17, window_bounds = array<i64: 4, 256, 256>}, {pipeline_mode = #tpu.pipeline_mode<synchronous>, transform_indices = @transform_18, window_bounds = array<i64: 64, 256>}, {pipeline_mode = #tpu.pipeline_mode<synchronous>, transform_indices = @transform_19, window_bounds = array<i64: 256, 64>}, {pipeline_mode = #tpu.pipeline_mode<synchronous>, transform_indices = @transform_20, window_bounds = array<i64: 1, 64>}, {pipeline_mode = #tpu.pipeline_mode<synchronous>, transform_indices = @transform_21, window_bounds = array<i64: 1, 64>}, {pipeline_mode = #tpu.pipeline_mode<synchronous>, transform_indices = @transform_22, window_bounds = array<i64: 4, 2, 8>}, {pipeline_mode = #tpu.pipeline_mode<synchronous>, transform_indices = @transform_23, window_bounds = array<i64: 4, 256, 22>}, {pipeline_mode = #tpu.pipeline_mode<synchronous>, transform_indices = @transform_24, window_bounds = array<i64: 2, 1>}]} {
    %c0 = arith.constant 0 : index
    %c0_0 = arith.constant 0 : index
    %0 = vector.load %arg1[%c0, %c0_0] : memref<128x192xbf16, #tpu.memory_space<vmem>>, vector<128x192xbf16>
    %c0_1 = arith.constant 0 : index
    %c0_2 = arith.constant 0 : index
    %c0_3 = arith.constant 0 : index
    %1 = vector.load %arg3[%c0_1, %c0_2, %c0_3] : memref<4x64x128xbf16, #tpu.memory_space<vmem>>, vector<1x64x128xbf16>
    %2 = vector.shape_cast %1 : vector<1x64x128xbf16> to vector<64x128xbf16>
    %cst = arith.constant dense<0.000000e+00> : vector<64x192xf32>
    %3 = tpu.matmul %2, %0, %cst {dimension_numbers = #tpu.dot_dimension_numbers<[1], [0], [0], [1], [0, 0, 1, 1], [], []>} : vector<64x128xbf16>, vector<128x192xbf16>, vector<64x192xf32> -> vector<64x192xf32>
    %4 = arith.truncf %3 : vector<64x192xf32> to vector<64x192xbf16>
    %c0_4 = arith.constant 0 : index
    %c0_5 = arith.constant 0 : index
    %c0_6 = arith.constant 0 : index
    %5 = vector.load %arg4[%c0_4, %c0_5, %c0_6] : memref<4x192x256xbf16, #tpu.memory_space<vmem>>, vector<1x192x256xbf16>
    %6 = vector.shape_cast %5 : vector<1x192x256xbf16> to vector<192x256xbf16>
    %cst_7 = arith.constant dense<0.000000e+00> : vector<64x256xf32>
    %7 = tpu.matmul %4, %6, %cst_7 {dimension_numbers = #tpu.dot_dimension_numbers<[1], [0], [0], [1], [0, 0, 1, 1], [], []>} : vector<64x192xbf16>, vector<192x256xbf16>, vector<64x256xf32> -> vector<64x256xf32>
    %c1 = arith.constant 1 : index
    %c0_8 = arith.constant 0 : index
    %c0_9 = arith.constant 0 : index
    %8 = vector.load %arg3[%c1, %c0_8, %c0_9] : memref<4x64x128xbf16, #tpu.memory_space<vmem>>, vector<1x64x128xbf16>
    %9 = vector.shape_cast %8 : vector<1x64x128xbf16> to vector<64x128xbf16>
    %cst_10 = arith.constant dense<0.000000e+00> : vector<64x192xf32>
    %10 = tpu.matmul %9, %0, %cst_10 {dimension_numbers = #tpu.dot_dimension_numbers<[1], [0], [0], [1], [0, 0, 1, 1], [], []>} : vector<64x128xbf16>, vector<128x192xbf16>, vector<64x192xf32> -> vector<64x192xf32>
    %11 = arith.truncf %10 : vector<64x192xf32> to vector<64x192xbf16>
    %c1_11 = arith.constant 1 : index
    %c0_12 = arith.constant 0 : index
    %c0_13 = arith.constant 0 : index
    %12 = vector.load %arg4[%c1_11, %c0_12, %c0_13] : memref<4x192x256xbf16, #tpu.memory_space<vmem>>, vector<1x192x256xbf16>
    %13 = vector.shape_cast %12 : vector<1x192x256xbf16> to vector<192x256xbf16>
    %cst_14 = arith.constant dense<0.000000e+00> : vector<64x256xf32>
    %14 = tpu.matmul %11, %13, %cst_14 {dimension_numbers = #tpu.dot_dimension_numbers<[1], [0], [0], [1], [0, 0, 1, 1], [], []>} : vector<64x192xbf16>, vector<192x256xbf16>, vector<64x256xf32> -> vector<64x256xf32>
    %15 = arith.addf %7, %14 : vector<64x256xf32>
    %c2 = arith.constant 2 : index
    %c0_15 = arith.constant 0 : index
    %c0_16 = arith.constant 0 : index
    %16 = vector.load %arg3[%c2, %c0_15, %c0_16] : memref<4x64x128xbf16, #tpu.memory_space<vmem>>, vector<1x64x128xbf16>
    %17 = vector.shape_cast %16 : vector<1x64x128xbf16> to vector<64x128xbf16>
    %cst_17 = arith.constant dense<0.000000e+00> : vector<64x192xf32>
    %18 = tpu.matmul %17, %0, %cst_17 {dimension_numbers = #tpu.dot_dimension_numbers<[1], [0], [0], [1], [0, 0, 1, 1], [], []>} : vector<64x128xbf16>, vector<128x192xbf16>, vector<64x192xf32> -> vector<64x192xf32>
    %19 = arith.truncf %18 : vector<64x192xf32> to vector<64x192xbf16>
    %c2_18 = arith.constant 2 : index
    %c0_19 = arith.constant 0 : index
    %c0_20 = arith.constant 0 : index
    %20 = vector.load %arg4[%c2_18, %c0_19, %c0_20] : memref<4x192x256xbf16, #tpu.memory_space<vmem>>, vector<1x192x256xbf16>
    %21 = vector.shape_cast %20 : vector<1x192x256xbf16> to vector<192x256xbf16>
    %cst_21 = arith.constant dense<0.000000e+00> : vector<64x256xf32>
    %22 = tpu.matmul %19, %21, %cst_21 {dimension_numbers = #tpu.dot_dimension_numbers<[1], [0], [0], [1], [0, 0, 1, 1], [], []>} : vector<64x192xbf16>, vector<192x256xbf16>, vector<64x256xf32> -> vector<64x256xf32>
    %23 = arith.addf %15, %22 : vector<64x256xf32>
    %c3 = arith.constant 3 : index
    %c0_22 = arith.constant 0 : index
    %c0_23 = arith.constant 0 : index
    %24 = vector.load %arg3[%c3, %c0_22, %c0_23] : memref<4x64x128xbf16, #tpu.memory_space<vmem>>, vector<1x64x128xbf16>
    %25 = vector.shape_cast %24 : vector<1x64x128xbf16> to vector<64x128xbf16>
    %cst_24 = arith.constant dense<0.000000e+00> : vector<64x192xf32>
    %26 = tpu.matmul %25, %0, %cst_24 {dimension_numbers = #tpu.dot_dimension_numbers<[1], [0], [0], [1], [0, 0, 1, 1], [], []>} : vector<64x128xbf16>, vector<128x192xbf16>, vector<64x192xf32> -> vector<64x192xf32>
    %27 = arith.truncf %26 : vector<64x192xf32> to vector<64x192xbf16>
    %c3_25 = arith.constant 3 : index
    %c0_26 = arith.constant 0 : index
    %c0_27 = arith.constant 0 : index
    %28 = vector.load %arg4[%c3_25, %c0_26, %c0_27] : memref<4x192x256xbf16, #tpu.memory_space<vmem>>, vector<1x192x256xbf16>
    %29 = vector.shape_cast %28 : vector<1x192x256xbf16> to vector<192x256xbf16>
    %cst_28 = arith.constant dense<0.000000e+00> : vector<64x256xf32>
    %30 = tpu.matmul %27, %29, %cst_28 {dimension_numbers = #tpu.dot_dimension_numbers<[1], [0], [0], [1], [0, 0, 1, 1], [], []>} : vector<64x192xbf16>, vector<192x256xbf16>, vector<64x256xf32> -> vector<64x256xf32>
    %31 = arith.addf %23, %30 : vector<64x256xf32>
    %cst_29 = arith.constant 0.000000e+00 : f32
    %32 = vector.broadcast %cst_29 : f32 to vector<64x256xf32>
    %33 = arith.cmpf ogt, %31, %32 : vector<64x256xf32>
    %cst_30 = arith.constant 2.000000e-01 : f32
    %34 = vector.broadcast %cst_30 : f32 to vector<64x256xf32>
    %35 = arith.mulf %34, %31 : vector<64x256xf32>
    %36 = arith.select %33, %31, %35 : vector<64x256xi1>, vector<64x256xf32>
    %37 = arith.truncf %36 : vector<64x256xf32> to vector<64x256xbf16>
    %c0_31 = arith.constant 0 : index
    %c0_32 = arith.constant 0 : index
    %c0_33 = arith.constant 0 : index
    %38 = vector.load %arg5[%c0_31, %c0_32, %c0_33] : memref<4x32x64xbf16, #tpu.memory_space<vmem>>, vector<1x32x64xbf16>
    %39 = vector.shape_cast %38 : vector<1x32x64xbf16> to vector<32x64xbf16>
    %cst_34 = arith.constant dense<0.000000e+00> : vector<32x256xf32>
    %40 = tpu.matmul %39, %37, %cst_34 {dimension_numbers = #tpu.dot_dimension_numbers<[1], [0], [0], [1], [0, 0, 1, 1], [], []>} : vector<32x64xbf16>, vector<64x256xbf16>, vector<32x256xf32> -> vector<32x256xf32>
    %41 = arith.truncf %40 : vector<32x256xf32> to vector<32x256xbf16>
    %c0_35 = arith.constant 0 : index
    %c0_36 = arith.constant 0 : index
    %c0_37 = arith.constant 0 : index
    %42 = vector.load %arg6[%c0_35, %c0_36, %c0_37] : memref<4x256x256xbf16, #tpu.memory_space<vmem>>, vector<1x256x256xbf16>
    %43 = vector.shape_cast %42 : vector<1x256x256xbf16> to vector<256x256xbf16>
    %cst_38 = arith.constant dense<0.000000e+00> : vector<32x256xf32>
    %44 = tpu.matmul %41, %43, %cst_38 {dimension_numbers = #tpu.dot_dimension_numbers<[1], [0], [0], [1], [0, 0, 1, 1], [], []>} : vector<32x256xbf16>, vector<256x256xbf16>, vector<32x256xf32> -> vector<32x256xf32>
    %c1_39 = arith.constant 1 : index
    %c0_40 = arith.constant 0 : index
    %c0_41 = arith.constant 0 : index
    %45 = vector.load %arg5[%c1_39, %c0_40, %c0_41] : memref<4x32x64xbf16, #tpu.memory_space<vmem>>, vector<1x32x64xbf16>
    %46 = vector.shape_cast %45 : vector<1x32x64xbf16> to vector<32x64xbf16>
    %cst_42 = arith.constant dense<0.000000e+00> : vector<32x256xf32>
    %47 = tpu.matmul %46, %37, %cst_42 {dimension_numbers = #tpu.dot_dimension_numbers<[1], [0], [0], [1], [0, 0, 1, 1], [], []>} : vector<32x64xbf16>, vector<64x256xbf16>, vector<32x256xf32> -> vector<32x256xf32>
    %48 = arith.truncf %47 : vector<32x256xf32> to vector<32x256xbf16>
    %c1_43 = arith.constant 1 : index
    %c0_44 = arith.constant 0 : index
    %c0_45 = arith.constant 0 : index
    %49 = vector.load %arg6[%c1_43, %c0_44, %c0_45] : memref<4x256x256xbf16, #tpu.memory_space<vmem>>, vector<1x256x256xbf16>
    %50 = vector.shape_cast %49 : vector<1x256x256xbf16> to vector<256x256xbf16>
    %cst_46 = arith.constant dense<0.000000e+00> : vector<32x256xf32>
    %51 = tpu.matmul %48, %50, %cst_46 {dimension_numbers = #tpu.dot_dimension_numbers<[1], [0], [0], [1], [0, 0, 1, 1], [], []>} : vector<32x256xbf16>, vector<256x256xbf16>, vector<32x256xf32> -> vector<32x256xf32>
    %52 = arith.addf %44, %51 : vector<32x256xf32>
    %c2_47 = arith.constant 2 : index
    %c0_48 = arith.constant 0 : index
    %c0_49 = arith.constant 0 : index
    %53 = vector.load %arg5[%c2_47, %c0_48, %c0_49] : memref<4x32x64xbf16, #tpu.memory_space<vmem>>, vector<1x32x64xbf16>
    %54 = vector.shape_cast %53 : vector<1x32x64xbf16> to vector<32x64xbf16>
    %cst_50 = arith.constant dense<0.000000e+00> : vector<32x256xf32>
    %55 = tpu.matmul %54, %37, %cst_50 {dimension_numbers = #tpu.dot_dimension_numbers<[1], [0], [0], [1], [0, 0, 1, 1], [], []>} : vector<32x64xbf16>, vector<64x256xbf16>, vector<32x256xf32> -> vector<32x256xf32>
    %56 = arith.truncf %55 : vector<32x256xf32> to vector<32x256xbf16>
    %c2_51 = arith.constant 2 : index
    %c0_52 = arith.constant 0 : index
    %c0_53 = arith.constant 0 : index
    %57 = vector.load %arg6[%c2_51, %c0_52, %c0_53] : memref<4x256x256xbf16, #tpu.memory_space<vmem>>, vector<1x256x256xbf16>
    %58 = vector.shape_cast %57 : vector<1x256x256xbf16> to vector<256x256xbf16>
    %cst_54 = arith.constant dense<0.000000e+00> : vector<32x256xf32>
    %59 = tpu.matmul %56, %58, %cst_54 {dimension_numbers = #tpu.dot_dimension_numbers<[1], [0], [0], [1], [0, 0, 1, 1], [], []>} : vector<32x256xbf16>, vector<256x256xbf16>, vector<32x256xf32> -> vector<32x256xf32>
    %60 = arith.addf %52, %59 : vector<32x256xf32>
    %c3_55 = arith.constant 3 : index
    %c0_56 = arith.constant 0 : index
    %c0_57 = arith.constant 0 : index
    %61 = vector.load %arg5[%c3_55, %c0_56, %c0_57] : memref<4x32x64xbf16, #tpu.memory_space<vmem>>, vector<1x32x64xbf16>
    %62 = vector.shape_cast %61 : vector<1x32x64xbf16> to vector<32x64xbf16>
    %cst_58 = arith.constant dense<0.000000e+00> : vector<32x256xf32>
    %63 = tpu.matmul %62, %37, %cst_58 {dimension_numbers = #tpu.dot_dimension_numbers<[1], [0], [0], [1], [0, 0, 1, 1], [], []>} : vector<32x64xbf16>, vector<64x256xbf16>, vector<32x256xf32> -> vector<32x256xf32>
    %64 = arith.truncf %63 : vector<32x256xf32> to vector<32x256xbf16>
    %c3_59 = arith.constant 3 : index
    %c0_60 = arith.constant 0 : index
    %c0_61 = arith.constant 0 : index
    %65 = vector.load %arg6[%c3_59, %c0_60, %c0_61] : memref<4x256x256xbf16, #tpu.memory_space<vmem>>, vector<1x256x256xbf16>
    %66 = vector.shape_cast %65 : vector<1x256x256xbf16> to vector<256x256xbf16>
    %cst_62 = arith.constant dense<0.000000e+00> : vector<32x256xf32>
    %67 = tpu.matmul %64, %66, %cst_62 {dimension_numbers = #tpu.dot_dimension_numbers<[1], [0], [0], [1], [0, 0, 1, 1], [], []>} : vector<32x256xbf16>, vector<256x256xbf16>, vector<32x256xf32> -> vector<32x256xf32>
    %68 = arith.addf %60, %67 : vector<32x256xf32>
    %c0_63 = arith.constant 0 : index
    %c0_64 = arith.constant 0 : index
    %69 = vector.load %arg7[%c0_63, %c0_64] : memref<16x256xf32, #tpu.memory_space<vmem>>, vector<16x256xf32>
    %c0_65 = arith.constant 0 : index
    %c0_66 = arith.constant 0 : index
    %70 = vector.load %arg8[%c0_65, %c0_66] : memref<256x16xf32, #tpu.memory_space<vmem>>, vector<256x16xf32>
    %cst_67 = arith.constant dense<0.000000e+00> : vector<256xf32>
    %71 = vector.multi_reduction <add>, %68, %cst_67 [0] : vector<32x256xf32> to vector<256xf32>
    %72 = vector.shape_cast %71 : vector<256xf32> to vector<1x256xf32>
    %cst_68 = arith.constant dense<0.000000e+00> : vector<1x16xf32>
    %73 = tpu.matmul %72, %70, %cst_68 {dimension_numbers = #tpu.dot_dimension_numbers<[1], [0], [0], [1], [0, 0, 1, 1], [], []>} : vector<1x256xf32>, vector<256x16xf32>, vector<1x16xf32> -> vector<1x16xf32>
    %cst_69 = arith.constant 0.001953125 : f32
    %74 = vector.broadcast %cst_69 : f32 to vector<1x16xf32>
    %75 = arith.mulf %73, %74 : vector<1x16xf32>
    %cst_70 = arith.constant dense<0.000000e+00> : vector<1x256xf32>
    %76 = tpu.matmul %75, %69, %cst_70 {dimension_numbers = #tpu.dot_dimension_numbers<[1], [0], [0], [1], [0, 0, 1, 1], [], []>} : vector<1x16xf32>, vector<16x256xf32>, vector<1x256xf32> -> vector<1x256xf32>
    %77 = vector.broadcast %76 : vector<1x256xf32> to vector<32x256xf32>
    %78 = arith.subf %68, %77 : vector<32x256xf32>
    %79 = arith.mulf %78, %78 : vector<32x256xf32>
    %cst_71 = arith.constant dense<0.000000e+00> : vector<256xf32>
    %80 = vector.multi_reduction <add>, %79, %cst_71 [0] : vector<32x256xf32> to vector<256xf32>
    %81 = vector.shape_cast %80 : vector<256xf32> to vector<1x256xf32>
    %cst_72 = arith.constant dense<0.000000e+00> : vector<1x16xf32>
    %82 = tpu.matmul %81, %70, %cst_72 {dimension_numbers = #tpu.dot_dimension_numbers<[1], [0], [0], [1], [0, 0, 1, 1], [], []>} : vector<1x256xf32>, vector<256x16xf32>, vector<1x16xf32> -> vector<1x16xf32>
    %cst_73 = arith.constant 0.001953125 : f32
    %83 = vector.broadcast %cst_73 : f32 to vector<1x16xf32>
    %84 = arith.mulf %82, %83 : vector<1x16xf32>
    %c0_74 = arith.constant 0 : index
    %c0_75 = arith.constant 0 : index
    %85 = vector.load %arg9[%c0_74, %c0_75] : memref<1x16xf32, #tpu.memory_space<vmem>>, vector<1x16xf32>
    %cst_76 = arith.constant 9.99999974E-6 : f32
    %86 = vector.broadcast %cst_76 : f32 to vector<1x16xf32>
    %87 = arith.addf %84, %86 : vector<1x16xf32>
    %88 = math.rsqrt %87 : vector<1x16xf32>
    %89 = arith.mulf %85, %88 : vector<1x16xf32>
    %cst_77 = arith.constant dense<0.000000e+00> : vector<1x256xf32>
    %90 = tpu.matmul %89, %69, %cst_77 {dimension_numbers = #tpu.dot_dimension_numbers<[1], [0], [0], [1], [0, 0, 1, 1], [], []>} : vector<1x16xf32>, vector<16x256xf32>, vector<1x256xf32> -> vector<1x256xf32>
    %c0_78 = arith.constant 0 : index
    %c0_79 = arith.constant 0 : index
    %91 = vector.load %arg10[%c0_78, %c0_79] : memref<1x16xf32, #tpu.memory_space<vmem>>, vector<1x16xf32>
    %cst_80 = arith.constant dense<0.000000e+00> : vector<1x256xf32>
    %92 = tpu.matmul %91, %69, %cst_80 {dimension_numbers = #tpu.dot_dimension_numbers<[1], [0], [0], [1], [0, 0, 1, 1], [], []>} : vector<1x16xf32>, vector<16x256xf32>, vector<1x256xf32> -> vector<1x256xf32>
    %93 = vector.broadcast %90 : vector<1x256xf32> to vector<32x256xf32>
    %94 = arith.mulf %78, %93 : vector<32x256xf32>
    %95 = vector.broadcast %92 : vector<1x256xf32> to vector<32x256xf32>
    %96 = arith.addf %94, %95 : vector<32x256xf32>
    %cst_81 = arith.constant 0.000000e+00 : f32
    %97 = vector.broadcast %cst_81 : f32 to vector<32x256xf32>
    %98 = arith.cmpf ogt, %96, %97 : vector<32x256xf32>
    %cst_82 = arith.constant 2.000000e-01 : f32
    %99 = vector.broadcast %cst_82 : f32 to vector<32x256xf32>
    %100 = arith.mulf %99, %96 : vector<32x256xf32>
    %101 = arith.select %98, %96, %100 : vector<32x256xi1>, vector<32x256xf32>
    %102 = arith.truncf %101 : vector<32x256xf32> to vector<32x256xbf16>
    %c0_83 = arith.constant 0 : index
    %c0_84 = arith.constant 0 : index
    %c0_85 = arith.constant 0 : index
    %103 = vector.load %arg11[%c0_83, %c0_84, %c0_85] : memref<4x16x32xbf16, #tpu.memory_space<vmem>>, vector<1x16x32xbf16>
    %104 = vector.shape_cast %103 : vector<1x16x32xbf16> to vector<16x32xbf16>
    %cst_86 = arith.constant dense<0.000000e+00> : vector<16x256xf32>
    %105 = tpu.matmul %104, %102, %cst_86 {dimension_numbers = #tpu.dot_dimension_numbers<[1], [0], [0], [1], [0, 0, 1, 1], [], []>} : vector<16x32xbf16>, vector<32x256xbf16>, vector<16x256xf32> -> vector<16x256xf32>
    %106 = arith.truncf %105 : vector<16x256xf32> to vector<16x256xbf16>
    %c0_87 = arith.constant 0 : index
    %c0_88 = arith.constant 0 : index
    %c0_89 = arith.constant 0 : index
    %107 = vector.load %arg12[%c0_87, %c0_88, %c0_89] : memref<4x256x256xbf16, #tpu.memory_space<vmem>>, vector<1x256x256xbf16>
    %108 = vector.shape_cast %107 : vector<1x256x256xbf16> to vector<256x256xbf16>
    %cst_90 = arith.constant dense<0.000000e+00> : vector<16x256xf32>
    %109 = tpu.matmul %106, %108, %cst_90 {dimension_numbers = #tpu.dot_dimension_numbers<[1], [0], [0], [1], [0, 0, 1, 1], [], []>} : vector<16x256xbf16>, vector<256x256xbf16>, vector<16x256xf32> -> vector<16x256xf32>
    %c1_91 = arith.constant 1 : index
    %c0_92 = arith.constant 0 : index
    %c0_93 = arith.constant 0 : index
    %110 = vector.load %arg11[%c1_91, %c0_92, %c0_93] : memref<4x16x32xbf16, #tpu.memory_space<vmem>>, vector<1x16x32xbf16>
    %111 = vector.shape_cast %110 : vector<1x16x32xbf16> to vector<16x32xbf16>
    %cst_94 = arith.constant dense<0.000000e+00> : vector<16x256xf32>
    %112 = tpu.matmul %111, %102, %cst_94 {dimension_numbers = #tpu.dot_dimension_numbers<[1], [0], [0], [1], [0, 0, 1, 1], [], []>} : vector<16x32xbf16>, vector<32x256xbf16>, vector<16x256xf32> -> vector<16x256xf32>
    %113 = arith.truncf %112 : vector<16x256xf32> to vector<16x256xbf16>
    %c1_95 = arith.constant 1 : index
    %c0_96 = arith.constant 0 : index
    %c0_97 = arith.constant 0 : index
    %114 = vector.load %arg12[%c1_95, %c0_96, %c0_97] : memref<4x256x256xbf16, #tpu.memory_space<vmem>>, vector<1x256x256xbf16>
    %115 = vector.shape_cast %114 : vector<1x256x256xbf16> to vector<256x256xbf16>
    %cst_98 = arith.constant dense<0.000000e+00> : vector<16x256xf32>
    %116 = tpu.matmul %113, %115, %cst_98 {dimension_numbers = #tpu.dot_dimension_numbers<[1], [0], [0], [1], [0, 0, 1, 1], [], []>} : vector<16x256xbf16>, vector<256x256xbf16>, vector<16x256xf32> -> vector<16x256xf32>
    %117 = arith.addf %109, %116 : vector<16x256xf32>
    %c2_99 = arith.constant 2 : index
    %c0_100 = arith.constant 0 : index
    %c0_101 = arith.constant 0 : index
    %118 = vector.load %arg11[%c2_99, %c0_100, %c0_101] : memref<4x16x32xbf16, #tpu.memory_space<vmem>>, vector<1x16x32xbf16>
    %119 = vector.shape_cast %118 : vector<1x16x32xbf16> to vector<16x32xbf16>
    %cst_102 = arith.constant dense<0.000000e+00> : vector<16x256xf32>
    %120 = tpu.matmul %119, %102, %cst_102 {dimension_numbers = #tpu.dot_dimension_numbers<[1], [0], [0], [1], [0, 0, 1, 1], [], []>} : vector<16x32xbf16>, vector<32x256xbf16>, vector<16x256xf32> -> vector<16x256xf32>
    %121 = arith.truncf %120 : vector<16x256xf32> to vector<16x256xbf16>
    %c2_103 = arith.constant 2 : index
    %c0_104 = arith.constant 0 : index
    %c0_105 = arith.constant 0 : index
    %122 = vector.load %arg12[%c2_103, %c0_104, %c0_105] : memref<4x256x256xbf16, #tpu.memory_space<vmem>>, vector<1x256x256xbf16>
    %123 = vector.shape_cast %122 : vector<1x256x256xbf16> to vector<256x256xbf16>
    %cst_106 = arith.constant dense<0.000000e+00> : vector<16x256xf32>
    %124 = tpu.matmul %121, %123, %cst_106 {dimension_numbers = #tpu.dot_dimension_numbers<[1], [0], [0], [1], [0, 0, 1, 1], [], []>} : vector<16x256xbf16>, vector<256x256xbf16>, vector<16x256xf32> -> vector<16x256xf32>
    %125 = arith.addf %117, %124 : vector<16x256xf32>
    %c3_107 = arith.constant 3 : index
    %c0_108 = arith.constant 0 : index
    %c0_109 = arith.constant 0 : index
    %126 = vector.load %arg11[%c3_107, %c0_108, %c0_109] : memref<4x16x32xbf16, #tpu.memory_space<vmem>>, vector<1x16x32xbf16>
    %127 = vector.shape_cast %126 : vector<1x16x32xbf16> to vector<16x32xbf16>
    %cst_110 = arith.constant dense<0.000000e+00> : vector<16x256xf32>
    %128 = tpu.matmul %127, %102, %cst_110 {dimension_numbers = #tpu.dot_dimension_numbers<[1], [0], [0], [1], [0, 0, 1, 1], [], []>} : vector<16x32xbf16>, vector<32x256xbf16>, vector<16x256xf32> -> vector<16x256xf32>
    %129 = arith.truncf %128 : vector<16x256xf32> to vector<16x256xbf16>
    %c3_111 = arith.constant 3 : index
    %c0_112 = arith.constant 0 : index
    %c0_113 = arith.constant 0 : index
    %130 = vector.load %arg12[%c3_111, %c0_112, %c0_113] : memref<4x256x256xbf16, #tpu.memory_space<vmem>>, vector<1x256x256xbf16>
    %131 = vector.shape_cast %130 : vector<1x256x256xbf16> to vector<256x256xbf16>
    %cst_114 = arith.constant dense<0.000000e+00> : vector<16x256xf32>
    %132 = tpu.matmul %129, %131, %cst_114 {dimension_numbers = #tpu.dot_dimension_numbers<[1], [0], [0], [1], [0, 0, 1, 1], [], []>} : vector<16x256xbf16>, vector<256x256xbf16>, vector<16x256xf32> -> vector<16x256xf32>
    %133 = arith.addf %125, %132 : vector<16x256xf32>
    %c0_115 = arith.constant 0 : index
    %c0_116 = arith.constant 0 : index
    %134 = vector.load %arg13[%c0_115, %c0_116] : memref<32x256xf32, #tpu.memory_space<vmem>>, vector<32x256xf32>
    %c0_117 = arith.constant 0 : index
    %c0_118 = arith.constant 0 : index
    %135 = vector.load %arg14[%c0_117, %c0_118] : memref<256x32xf32, #tpu.memory_space<vmem>>, vector<256x32xf32>
    %cst_119 = arith.constant dense<0.000000e+00> : vector<256xf32>
    %136 = vector.multi_reduction <add>, %133, %cst_119 [0] : vector<16x256xf32> to vector<256xf32>
    %137 = vector.shape_cast %136 : vector<256xf32> to vector<1x256xf32>
    %cst_120 = arith.constant dense<0.000000e+00> : vector<1x32xf32>
    %138 = tpu.matmul %137, %135, %cst_120 {dimension_numbers = #tpu.dot_dimension_numbers<[1], [0], [0], [1], [0, 0, 1, 1], [], []>} : vector<1x256xf32>, vector<256x32xf32>, vector<1x32xf32> -> vector<1x32xf32>
    %cst_121 = arith.constant 7.812500e-03 : f32
    %139 = vector.broadcast %cst_121 : f32 to vector<1x32xf32>
    %140 = arith.mulf %138, %139 : vector<1x32xf32>
    %cst_122 = arith.constant dense<0.000000e+00> : vector<1x256xf32>
    %141 = tpu.matmul %140, %134, %cst_122 {dimension_numbers = #tpu.dot_dimension_numbers<[1], [0], [0], [1], [0, 0, 1, 1], [], []>} : vector<1x32xf32>, vector<32x256xf32>, vector<1x256xf32> -> vector<1x256xf32>
    %142 = vector.broadcast %141 : vector<1x256xf32> to vector<16x256xf32>
    %143 = arith.subf %133, %142 : vector<16x256xf32>
    %144 = arith.mulf %143, %143 : vector<16x256xf32>
    %cst_123 = arith.constant dense<0.000000e+00> : vector<256xf32>
    %145 = vector.multi_reduction <add>, %144, %cst_123 [0] : vector<16x256xf32> to vector<256xf32>
    %146 = vector.shape_cast %145 : vector<256xf32> to vector<1x256xf32>
    %cst_124 = arith.constant dense<0.000000e+00> : vector<1x32xf32>
    %147 = tpu.matmul %146, %135, %cst_124 {dimension_numbers = #tpu.dot_dimension_numbers<[1], [0], [0], [1], [0, 0, 1, 1], [], []>} : vector<1x256xf32>, vector<256x32xf32>, vector<1x32xf32> -> vector<1x32xf32>
    %cst_125 = arith.constant 7.812500e-03 : f32
    %148 = vector.broadcast %cst_125 : f32 to vector<1x32xf32>
    %149 = arith.mulf %147, %148 : vector<1x32xf32>
    %c0_126 = arith.constant 0 : index
    %c0_127 = arith.constant 0 : index
    %150 = vector.load %arg15[%c0_126, %c0_127] : memref<1x32xf32, #tpu.memory_space<vmem>>, vector<1x32xf32>
    %cst_128 = arith.constant 9.99999974E-6 : f32
    %151 = vector.broadcast %cst_128 : f32 to vector<1x32xf32>
    %152 = arith.addf %149, %151 : vector<1x32xf32>
    %153 = math.rsqrt %152 : vector<1x32xf32>
    %154 = arith.mulf %150, %153 : vector<1x32xf32>
    %cst_129 = arith.constant dense<0.000000e+00> : vector<1x256xf32>
    %155 = tpu.matmul %154, %134, %cst_129 {dimension_numbers = #tpu.dot_dimension_numbers<[1], [0], [0], [1], [0, 0, 1, 1], [], []>} : vector<1x32xf32>, vector<32x256xf32>, vector<1x256xf32> -> vector<1x256xf32>
    %c0_130 = arith.constant 0 : index
    %c0_131 = arith.constant 0 : index
    %156 = vector.load %arg16[%c0_130, %c0_131] : memref<1x32xf32, #tpu.memory_space<vmem>>, vector<1x32xf32>
    %cst_132 = arith.constant dense<0.000000e+00> : vector<1x256xf32>
    %157 = tpu.matmul %156, %134, %cst_132 {dimension_numbers = #tpu.dot_dimension_numbers<[1], [0], [0], [1], [0, 0, 1, 1], [], []>} : vector<1x32xf32>, vector<32x256xf32>, vector<1x256xf32> -> vector<1x256xf32>
    %158 = vector.broadcast %155 : vector<1x256xf32> to vector<16x256xf32>
    %159 = arith.mulf %143, %158 : vector<16x256xf32>
    %160 = vector.broadcast %157 : vector<1x256xf32> to vector<16x256xf32>
    %161 = arith.addf %159, %160 : vector<16x256xf32>
    %cst_133 = arith.constant 0.000000e+00 : f32
    %162 = vector.broadcast %cst_133 : f32 to vector<16x256xf32>
    %163 = arith.cmpf ogt, %161, %162 : vector<16x256xf32>
    %cst_134 = arith.constant 2.000000e-01 : f32
    %164 = vector.broadcast %cst_134 : f32 to vector<16x256xf32>
    %165 = arith.mulf %164, %161 : vector<16x256xf32>
    %166 = arith.select %163, %161, %165 : vector<16x256xi1>, vector<16x256xf32>
    %167 = arith.truncf %166 : vector<16x256xf32> to vector<16x256xbf16>
    %c0_135 = arith.constant 0 : index
    %c0_136 = arith.constant 0 : index
    %c0_137 = arith.constant 0 : index
    %168 = vector.load %arg17[%c0_135, %c0_136, %c0_137] : memref<4x8x16xbf16, #tpu.memory_space<vmem>>, vector<1x8x16xbf16>
    %169 = vector.shape_cast %168 : vector<1x8x16xbf16> to vector<8x16xbf16>
    %cst_138 = arith.constant dense<0.000000e+00> : vector<8x256xf32>
    %170 = tpu.matmul %169, %167, %cst_138 {dimension_numbers = #tpu.dot_dimension_numbers<[1], [0], [0], [1], [0, 0, 1, 1], [], []>} : vector<8x16xbf16>, vector<16x256xbf16>, vector<8x256xf32> -> vector<8x256xf32>
    %171 = arith.truncf %170 : vector<8x256xf32> to vector<8x256xbf16>
    %c0_139 = arith.constant 0 : index
    %c0_140 = arith.constant 0 : index
    %c0_141 = arith.constant 0 : index
    %172 = vector.load %arg18[%c0_139, %c0_140, %c0_141] : memref<4x256x256xbf16, #tpu.memory_space<vmem>>, vector<1x256x256xbf16>
    %173 = vector.shape_cast %172 : vector<1x256x256xbf16> to vector<256x256xbf16>
    %cst_142 = arith.constant dense<0.000000e+00> : vector<8x256xf32>
    %174 = tpu.matmul %171, %173, %cst_142 {dimension_numbers = #tpu.dot_dimension_numbers<[1], [0], [0], [1], [0, 0, 1, 1], [], []>} : vector<8x256xbf16>, vector<256x256xbf16>, vector<8x256xf32> -> vector<8x256xf32>
    %c1_143 = arith.constant 1 : index
    %c0_144 = arith.constant 0 : index
    %c0_145 = arith.constant 0 : index
    %175 = vector.load %arg17[%c1_143, %c0_144, %c0_145] : memref<4x8x16xbf16, #tpu.memory_space<vmem>>, vector<1x8x16xbf16>
    %176 = vector.shape_cast %175 : vector<1x8x16xbf16> to vector<8x16xbf16>
    %cst_146 = arith.constant dense<0.000000e+00> : vector<8x256xf32>
    %177 = tpu.matmul %176, %167, %cst_146 {dimension_numbers = #tpu.dot_dimension_numbers<[1], [0], [0], [1], [0, 0, 1, 1], [], []>} : vector<8x16xbf16>, vector<16x256xbf16>, vector<8x256xf32> -> vector<8x256xf32>
    %178 = arith.truncf %177 : vector<8x256xf32> to vector<8x256xbf16>
    %c1_147 = arith.constant 1 : index
    %c0_148 = arith.constant 0 : index
    %c0_149 = arith.constant 0 : index
    %179 = vector.load %arg18[%c1_147, %c0_148, %c0_149] : memref<4x256x256xbf16, #tpu.memory_space<vmem>>, vector<1x256x256xbf16>
    %180 = vector.shape_cast %179 : vector<1x256x256xbf16> to vector<256x256xbf16>
    %cst_150 = arith.constant dense<0.000000e+00> : vector<8x256xf32>
    %181 = tpu.matmul %178, %180, %cst_150 {dimension_numbers = #tpu.dot_dimension_numbers<[1], [0], [0], [1], [0, 0, 1, 1], [], []>} : vector<8x256xbf16>, vector<256x256xbf16>, vector<8x256xf32> -> vector<8x256xf32>
    %182 = arith.addf %174, %181 : vector<8x256xf32>
    %c2_151 = arith.constant 2 : index
    %c0_152 = arith.constant 0 : index
    %c0_153 = arith.constant 0 : index
    %183 = vector.load %arg17[%c2_151, %c0_152, %c0_153] : memref<4x8x16xbf16, #tpu.memory_space<vmem>>, vector<1x8x16xbf16>
    %184 = vector.shape_cast %183 : vector<1x8x16xbf16> to vector<8x16xbf16>
    %cst_154 = arith.constant dense<0.000000e+00> : vector<8x256xf32>
    %185 = tpu.matmul %184, %167, %cst_154 {dimension_numbers = #tpu.dot_dimension_numbers<[1], [0], [0], [1], [0, 0, 1, 1], [], []>} : vector<8x16xbf16>, vector<16x256xbf16>, vector<8x256xf32> -> vector<8x256xf32>
    %186 = arith.truncf %185 : vector<8x256xf32> to vector<8x256xbf16>
    %c2_155 = arith.constant 2 : index
    %c0_156 = arith.constant 0 : index
    %c0_157 = arith.constant 0 : index
    %187 = vector.load %arg18[%c2_155, %c0_156, %c0_157] : memref<4x256x256xbf16, #tpu.memory_space<vmem>>, vector<1x256x256xbf16>
    %188 = vector.shape_cast %187 : vector<1x256x256xbf16> to vector<256x256xbf16>
    %cst_158 = arith.constant dense<0.000000e+00> : vector<8x256xf32>
    %189 = tpu.matmul %186, %188, %cst_158 {dimension_numbers = #tpu.dot_dimension_numbers<[1], [0], [0], [1], [0, 0, 1, 1], [], []>} : vector<8x256xbf16>, vector<256x256xbf16>, vector<8x256xf32> -> vector<8x256xf32>
    %190 = arith.addf %182, %189 : vector<8x256xf32>
    %c3_159 = arith.constant 3 : index
    %c0_160 = arith.constant 0 : index
    %c0_161 = arith.constant 0 : index
    %191 = vector.load %arg17[%c3_159, %c0_160, %c0_161] : memref<4x8x16xbf16, #tpu.memory_space<vmem>>, vector<1x8x16xbf16>
    %192 = vector.shape_cast %191 : vector<1x8x16xbf16> to vector<8x16xbf16>
    %cst_162 = arith.constant dense<0.000000e+00> : vector<8x256xf32>
    %193 = tpu.matmul %192, %167, %cst_162 {dimension_numbers = #tpu.dot_dimension_numbers<[1], [0], [0], [1], [0, 0, 1, 1], [], []>} : vector<8x16xbf16>, vector<16x256xbf16>, vector<8x256xf32> -> vector<8x256xf32>
    %194 = arith.truncf %193 : vector<8x256xf32> to vector<8x256xbf16>
    %c3_163 = arith.constant 3 : index
    %c0_164 = arith.constant 0 : index
    %c0_165 = arith.constant 0 : index
    %195 = vector.load %arg18[%c3_163, %c0_164, %c0_165] : memref<4x256x256xbf16, #tpu.memory_space<vmem>>, vector<1x256x256xbf16>
    %196 = vector.shape_cast %195 : vector<1x256x256xbf16> to vector<256x256xbf16>
    %cst_166 = arith.constant dense<0.000000e+00> : vector<8x256xf32>
    %197 = tpu.matmul %194, %196, %cst_166 {dimension_numbers = #tpu.dot_dimension_numbers<[1], [0], [0], [1], [0, 0, 1, 1], [], []>} : vector<8x256xbf16>, vector<256x256xbf16>, vector<8x256xf32> -> vector<8x256xf32>
    %198 = arith.addf %190, %197 : vector<8x256xf32>
    %c0_167 = arith.constant 0 : index
    %c0_168 = arith.constant 0 : index
    %199 = vector.load %arg19[%c0_167, %c0_168] : memref<64x256xf32, #tpu.memory_space<vmem>>, vector<64x256xf32>
    %c0_169 = arith.constant 0 : index
    %c0_170 = arith.constant 0 : index
    %200 = vector.load %arg20[%c0_169, %c0_170] : memref<256x64xf32, #tpu.memory_space<vmem>>, vector<256x64xf32>
    %cst_171 = arith.constant dense<0.000000e+00> : vector<256xf32>
    %201 = vector.multi_reduction <add>, %198, %cst_171 [0] : vector<8x256xf32> to vector<256xf32>
    %202 = vector.shape_cast %201 : vector<256xf32> to vector<1x256xf32>
    %cst_172 = arith.constant dense<0.000000e+00> : vector<1x64xf32>
    %203 = tpu.matmul %202, %200, %cst_172 {dimension_numbers = #tpu.dot_dimension_numbers<[1], [0], [0], [1], [0, 0, 1, 1], [], []>} : vector<1x256xf32>, vector<256x64xf32>, vector<1x64xf32> -> vector<1x64xf32>
    %cst_173 = arith.constant 3.125000e-02 : f32
    %204 = vector.broadcast %cst_173 : f32 to vector<1x64xf32>
    %205 = arith.mulf %203, %204 : vector<1x64xf32>
    %cst_174 = arith.constant dense<0.000000e+00> : vector<1x256xf32>
    %206 = tpu.matmul %205, %199, %cst_174 {dimension_numbers = #tpu.dot_dimension_numbers<[1], [0], [0], [1], [0, 0, 1, 1], [], []>} : vector<1x64xf32>, vector<64x256xf32>, vector<1x256xf32> -> vector<1x256xf32>
    %207 = vector.broadcast %206 : vector<1x256xf32> to vector<8x256xf32>
    %208 = arith.subf %198, %207 : vector<8x256xf32>
    %209 = arith.mulf %208, %208 : vector<8x256xf32>
    %cst_175 = arith.constant dense<0.000000e+00> : vector<256xf32>
    %210 = vector.multi_reduction <add>, %209, %cst_175 [0] : vector<8x256xf32> to vector<256xf32>
    %211 = vector.shape_cast %210 : vector<256xf32> to vector<1x256xf32>
    %cst_176 = arith.constant dense<0.000000e+00> : vector<1x64xf32>
    %212 = tpu.matmul %211, %200, %cst_176 {dimension_numbers = #tpu.dot_dimension_numbers<[1], [0], [0], [1], [0, 0, 1, 1], [], []>} : vector<1x256xf32>, vector<256x64xf32>, vector<1x64xf32> -> vector<1x64xf32>
    %cst_177 = arith.constant 3.125000e-02 : f32
    %213 = vector.broadcast %cst_177 : f32 to vector<1x64xf32>
    %214 = arith.mulf %212, %213 : vector<1x64xf32>
    %c0_178 = arith.constant 0 : index
    %c0_179 = arith.constant 0 : index
    %215 = vector.load %arg21[%c0_178, %c0_179] : memref<1x64xf32, #tpu.memory_space<vmem>>, vector<1x64xf32>
    %cst_180 = arith.constant 9.99999974E-6 : f32
    %216 = vector.broadcast %cst_180 : f32 to vector<1x64xf32>
    %217 = arith.addf %214, %216 : vector<1x64xf32>
    %218 = math.rsqrt %217 : vector<1x64xf32>
    %219 = arith.mulf %215, %218 : vector<1x64xf32>
    %cst_181 = arith.constant dense<0.000000e+00> : vector<1x256xf32>
    %220 = tpu.matmul %219, %199, %cst_181 {dimension_numbers = #tpu.dot_dimension_numbers<[1], [0], [0], [1], [0, 0, 1, 1], [], []>} : vector<1x64xf32>, vector<64x256xf32>, vector<1x256xf32> -> vector<1x256xf32>
    %c0_182 = arith.constant 0 : index
    %c0_183 = arith.constant 0 : index
    %221 = vector.load %arg22[%c0_182, %c0_183] : memref<1x64xf32, #tpu.memory_space<vmem>>, vector<1x64xf32>
    %cst_184 = arith.constant dense<0.000000e+00> : vector<1x256xf32>
    %222 = tpu.matmul %221, %199, %cst_184 {dimension_numbers = #tpu.dot_dimension_numbers<[1], [0], [0], [1], [0, 0, 1, 1], [], []>} : vector<1x64xf32>, vector<64x256xf32>, vector<1x256xf32> -> vector<1x256xf32>
    %223 = vector.broadcast %220 : vector<1x256xf32> to vector<8x256xf32>
    %224 = arith.mulf %208, %223 : vector<8x256xf32>
    %225 = vector.broadcast %222 : vector<1x256xf32> to vector<8x256xf32>
    %226 = arith.addf %224, %225 : vector<8x256xf32>
    %cst_185 = arith.constant 0.000000e+00 : f32
    %227 = vector.broadcast %cst_185 : f32 to vector<8x256xf32>
    %228 = arith.cmpf ogt, %226, %227 : vector<8x256xf32>
    %cst_186 = arith.constant 2.000000e-01 : f32
    %229 = vector.broadcast %cst_186 : f32 to vector<8x256xf32>
    %230 = arith.mulf %229, %226 : vector<8x256xf32>
    %231 = arith.select %228, %226, %230 : vector<8x256xi1>, vector<8x256xf32>
    %232 = arith.truncf %231 : vector<8x256xf32> to vector<8x256xbf16>
    %c0_187 = arith.constant 0 : index
    %c0_188 = arith.constant 0 : index
    %c0_189 = arith.constant 0 : index
    %233 = vector.load %arg23[%c0_187, %c0_188, %c0_189] : memref<4x2x8xbf16, #tpu.memory_space<vmem>>, vector<1x2x8xbf16>
    %234 = vector.shape_cast %233 : vector<1x2x8xbf16> to vector<2x8xbf16>
    %cst_190 = arith.constant dense<0.000000e+00> : vector<2x256xf32>
    %235 = tpu.matmul %234, %232, %cst_190 {dimension_numbers = #tpu.dot_dimension_numbers<[1], [0], [0], [1], [0, 0, 1, 1], [], []>} : vector<2x8xbf16>, vector<8x256xbf16>, vector<2x256xf32> -> vector<2x256xf32>
    %236 = arith.truncf %235 : vector<2x256xf32> to vector<2x256xbf16>
    %c0_191 = arith.constant 0 : index
    %c0_192 = arith.constant 0 : index
    %c0_193 = arith.constant 0 : index
    %237 = vector.load %arg24[%c0_191, %c0_192, %c0_193] : memref<4x256x22xbf16, #tpu.memory_space<vmem>>, vector<1x256x22xbf16>
    %238 = vector.shape_cast %237 : vector<1x256x22xbf16> to vector<256x22xbf16>
    %cst_194 = arith.constant dense<0.000000e+00> : vector<2x22xf32>
    %239 = tpu.matmul %236, %238, %cst_194 {dimension_numbers = #tpu.dot_dimension_numbers<[1], [0], [0], [1], [0, 0, 1, 1], [], []>} : vector<2x256xbf16>, vector<256x22xbf16>, vector<2x22xf32> -> vector<2x22xf32>
    %c1_195 = arith.constant 1 : index
    %c0_196 = arith.constant 0 : index
    %c0_197 = arith.constant 0 : index
    %240 = vector.load %arg23[%c1_195, %c0_196, %c0_197] : memref<4x2x8xbf16, #tpu.memory_space<vmem>>, vector<1x2x8xbf16>
    %241 = vector.shape_cast %240 : vector<1x2x8xbf16> to vector<2x8xbf16>
    %cst_198 = arith.constant dense<0.000000e+00> : vector<2x256xf32>
    %242 = tpu.matmul %241, %232, %cst_198 {dimension_numbers = #tpu.dot_dimension_numbers<[1], [0], [0], [1], [0, 0, 1, 1], [], []>} : vector<2x8xbf16>, vector<8x256xbf16>, vector<2x256xf32> -> vector<2x256xf32>
    %243 = arith.truncf %242 : vector<2x256xf32> to vector<2x256xbf16>
    %c1_199 = arith.constant 1 : index
    %c0_200 = arith.constant 0 : index
    %c0_201 = arith.constant 0 : index
    %244 = vector.load %arg24[%c1_199, %c0_200, %c0_201] : memref<4x256x22xbf16, #tpu.memory_space<vmem>>, vector<1x256x22xbf16>
    %245 = vector.shape_cast %244 : vector<1x256x22xbf16> to vector<256x22xbf16>
    %cst_202 = arith.constant dense<0.000000e+00> : vector<2x22xf32>
    %246 = tpu.matmul %243, %245, %cst_202 {dimension_numbers = #tpu.dot_dimension_numbers<[1], [0], [0], [1], [0, 0, 1, 1], [], []>} : vector<2x256xbf16>, vector<256x22xbf16>, vector<2x22xf32> -> vector<2x22xf32>
    %247 = arith.addf %239, %246 : vector<2x22xf32>
    %c2_203 = arith.constant 2 : index
    %c0_204 = arith.constant 0 : index
    %c0_205 = arith.constant 0 : index
    %248 = vector.load %arg23[%c2_203, %c0_204, %c0_205] : memref<4x2x8xbf16, #tpu.memory_space<vmem>>, vector<1x2x8xbf16>
    %249 = vector.shape_cast %248 : vector<1x2x8xbf16> to vector<2x8xbf16>
    %cst_206 = arith.constant dense<0.000000e+00> : vector<2x256xf32>
    %250 = tpu.matmul %249, %232, %cst_206 {dimension_numbers = #tpu.dot_dimension_numbers<[1], [0], [0], [1], [0, 0, 1, 1], [], []>} : vector<2x8xbf16>, vector<8x256xbf16>, vector<2x256xf32> -> vector<2x256xf32>
    %251 = arith.truncf %250 : vector<2x256xf32> to vector<2x256xbf16>
    %c2_207 = arith.constant 2 : index
    %c0_208 = arith.constant 0 : index
    %c0_209 = arith.constant 0 : index
    %252 = vector.load %arg24[%c2_207, %c0_208, %c0_209] : memref<4x256x22xbf16, #tpu.memory_space<vmem>>, vector<1x256x22xbf16>
    %253 = vector.shape_cast %252 : vector<1x256x22xbf16> to vector<256x22xbf16>
    %cst_210 = arith.constant dense<0.000000e+00> : vector<2x22xf32>
    %254 = tpu.matmul %251, %253, %cst_210 {dimension_numbers = #tpu.dot_dimension_numbers<[1], [0], [0], [1], [0, 0, 1, 1], [], []>} : vector<2x256xbf16>, vector<256x22xbf16>, vector<2x22xf32> -> vector<2x22xf32>
    %255 = arith.addf %247, %254 : vector<2x22xf32>
    %c3_211 = arith.constant 3 : index
    %c0_212 = arith.constant 0 : index
    %c0_213 = arith.constant 0 : index
    %256 = vector.load %arg23[%c3_211, %c0_212, %c0_213] : memref<4x2x8xbf16, #tpu.memory_space<vmem>>, vector<1x2x8xbf16>
    %257 = vector.shape_cast %256 : vector<1x2x8xbf16> to vector<2x8xbf16>
    %cst_214 = arith.constant dense<0.000000e+00> : vector<2x256xf32>
    %258 = tpu.matmul %257, %232, %cst_214 {dimension_numbers = #tpu.dot_dimension_numbers<[1], [0], [0], [1], [0, 0, 1, 1], [], []>} : vector<2x8xbf16>, vector<8x256xbf16>, vector<2x256xf32> -> vector<2x256xf32>
    %259 = arith.truncf %258 : vector<2x256xf32> to vector<2x256xbf16>
    %c3_215 = arith.constant 3 : index
    %c0_216 = arith.constant 0 : index
    %c0_217 = arith.constant 0 : index
    %260 = vector.load %arg24[%c3_215, %c0_216, %c0_217] : memref<4x256x22xbf16, #tpu.memory_space<vmem>>, vector<1x256x22xbf16>
    %261 = vector.shape_cast %260 : vector<1x256x22xbf16> to vector<256x22xbf16>
    %cst_218 = arith.constant dense<0.000000e+00> : vector<2x22xf32>
    %262 = tpu.matmul %259, %261, %cst_218 {dimension_numbers = #tpu.dot_dimension_numbers<[1], [0], [0], [1], [0, 0, 1, 1], [], []>} : vector<2x256xbf16>, vector<256x22xbf16>, vector<2x22xf32> -> vector<2x22xf32>
    %263 = arith.addf %255, %262 : vector<2x22xf32>
    %c0_219 = arith.constant 0 : index
    %c0_220 = arith.constant 0 : index
    %264 = vector.load %arg2[%c0_219, %c0_220] : memref<2x22xf32, #tpu.memory_space<vmem>>, vector<2x22xf32>
    %265 = arith.mulf %263, %264 : vector<2x22xf32>
    %cst_221 = arith.constant dense<0.000000e+00> : vector<2xf32>
    %266 = vector.multi_reduction <add>, %265, %cst_221 [1] : vector<2x22xf32> to vector<2xf32>
    %267 = vector.shape_cast %266 : vector<2xf32> to vector<2x1xf32>
    %cst_222 = arith.constant 0.000000e+00 : f32
    %268 = vector.broadcast %cst_222 : f32 to vector<2x1xf32>
    %269 = arith.subf %268, %267 : vector<2x1xf32>
    %270 = math.exp %269 : vector<2x1xf32>
    %cst_223 = arith.constant 1.000000e+00 : f32
    %271 = vector.broadcast %cst_223 : f32 to vector<2x1xf32>
    %272 = arith.addf %271, %270 : vector<2x1xf32>
    %cst_224 = arith.constant 1.000000e+00 : f32
    %273 = vector.broadcast %cst_224 : f32 to vector<2x1xf32>
    %274 = arith.divf %273, %272 : vector<2x1xf32>
    %c0_225 = arith.constant 0 : index
    %c0_226 = arith.constant 0 : index
    %275 = vector.load %arg25[%c0_225, %c0_226] : memref<2x1xf32, #tpu.memory_space<vmem>>, vector<2x1xf32>
    tpu.vector_store %arg25[%c0_225, %c0_226], %274 {strides = array<i32>} : memref<2x1xf32, #tpu.memory_space<vmem>>, vector<2x1xf32>,
    return
  }
  func.func @transform_0(%arg0: i32) -> (i32, i32) {
    %c0_i32 = arith.constant 0 : i32
    %c0_i32_0 = arith.constant 0 : i32
    %c0_i32_1 = arith.constant 0 : i32
    return %c0_i32, %c0_i32_0 : i32, i32
  }
  func.func @transform_1(%arg0: i32) -> (i32, i32) {
    %c0_i32 = arith.constant 0 : i32
    %c0_i32_0 = arith.constant 0 : i32
    %c0_i32_1 = arith.constant 0 : i32
    return %c0_i32, %c0_i32_0 : i32, i32
  }
  func.func @transform_2(%arg0: i32) -> (i32, i32, i32) {
    %c0_i32 = arith.constant 0 : i32
    %c0_i32_0 = arith.constant 0 : i32
    %c0_i32_1 = arith.constant 0 : i32
    %c0_i32_2 = arith.constant 0 : i32
    return %c0_i32, %c0_i32_0, %c0_i32_1 : i32, i32, i32
  }
  func.func @transform_3(%arg0: i32) -> (i32, i32, i32) {
    %c0_i32 = arith.constant 0 : i32
    %c0_i32_0 = arith.constant 0 : i32
    %c0_i32_1 = arith.constant 0 : i32
    %c0_i32_2 = arith.constant 0 : i32
    return %c0_i32, %c0_i32_0, %c0_i32_1 : i32, i32, i32
  }
  func.func @transform_4(%arg0: i32) -> (i32, i32, i32) {
    %c0_i32 = arith.constant 0 : i32
    %c0_i32_0 = arith.constant 0 : i32
    %c0_i32_1 = arith.constant 0 : i32
    %c0_i32_2 = arith.constant 0 : i32
    return %c0_i32, %c0_i32_0, %c0_i32_1 : i32, i32, i32
  }
  func.func @transform_5(%arg0: i32) -> (i32, i32, i32) {
    %c0_i32 = arith.constant 0 : i32
    %c0_i32_0 = arith.constant 0 : i32
    %c0_i32_1 = arith.constant 0 : i32
    %c0_i32_2 = arith.constant 0 : i32
    return %c0_i32, %c0_i32_0, %c0_i32_1 : i32, i32, i32
  }
  func.func @transform_6(%arg0: i32) -> (i32, i32) {
    %c0_i32 = arith.constant 0 : i32
    %c0_i32_0 = arith.constant 0 : i32
    %c0_i32_1 = arith.constant 0 : i32
    return %c0_i32, %c0_i32_0 : i32, i32
  }
  func.func @transform_7(%arg0: i32) -> (i32, i32) {
    %c0_i32 = arith.constant 0 : i32
    %c0_i32_0 = arith.constant 0 : i32
    %c0_i32_1 = arith.constant 0 : i32
    return %c0_i32, %c0_i32_0 : i32, i32
  }
  func.func @transform_8(%arg0: i32) -> (i32, i32) {
    %c0_i32 = arith.constant 0 : i32
    %c0_i32_0 = arith.constant 0 : i32
    %c0_i32_1 = arith.constant 0 : i32
    return %c0_i32, %c0_i32_0 : i32, i32
  }
  func.func @transform_9(%arg0: i32) -> (i32, i32) {
    %c0_i32 = arith.constant 0 : i32
    %c0_i32_0 = arith.constant 0 : i32
    %c0_i32_1 = arith.constant 0 : i32
    return %c0_i32, %c0_i32_0 : i32, i32
  }
  func.func @transform_10(%arg0: i32) -> (i32, i32, i32) {
    %c0_i32 = arith.constant 0 : i32
    %c0_i32_0 = arith.constant 0 : i32
    %c0_i32_1 = arith.constant 0 : i32
    %c0_i32_2 = arith.constant 0 : i32
    return %c0_i32, %c0_i32_0, %c0_i32_1 : i32, i32, i32
  }
  func.func @transform_11(%arg0: i32) -> (i32, i32, i32) {
    %c0_i32 = arith.constant 0 : i32
    %c0_i32_0 = arith.constant 0 : i32
    %c0_i32_1 = arith.constant 0 : i32
    %c0_i32_2 = arith.constant 0 : i32
    return %c0_i32, %c0_i32_0, %c0_i32_1 : i32, i32, i32
  }
  func.func @transform_12(%arg0: i32) -> (i32, i32) {
    %c0_i32 = arith.constant 0 : i32
    %c0_i32_0 = arith.constant 0 : i32
    %c0_i32_1 = arith.constant 0 : i32
    return %c0_i32, %c0_i32_0 : i32, i32
  }
  func.func @transform_13(%arg0: i32) -> (i32, i32) {
    %c0_i32 = arith.constant 0 : i32
    %c0_i32_0 = arith.constant 0 : i32
    %c0_i32_1 = arith.constant 0 : i32
    return %c0_i32, %c0_i32_0 : i32, i32
  }
  func.func @transform_14(%arg0: i32) -> (i32, i32) {
    %c0_i32 = arith.constant 0 : i32
    %c0_i32_0 = arith.constant 0 : i32
    %c0_i32_1 = arith.constant 0 : i32
    return %c0_i32, %c0_i32_0 : i32, i32
  }
  func.func @transform_15(%arg0: i32) -> (i32, i32) {
    %c0_i32 = arith.constant 0 : i32
    %c0_i32_0 = arith.constant 0 : i32
    %c0_i32_1 = arith.constant 0 : i32
    return %c0_i32, %c0_i32_0 : i32, i32
  }
  func.func @transform_16(%arg0: i32) -> (i32, i32, i32) {
    %c0_i32 = arith.constant 0 : i32
    %c0_i32_0 = arith.constant 0 : i32
    %c0_i32_1 = arith.constant 0 : i32
    %c0_i32_2 = arith.constant 0 : i32
    return %c0_i32, %c0_i32_0, %c0_i32_1 : i32, i32, i32
  }
  func.func @transform_17(%arg0: i32) -> (i32, i32, i32) {
    %c0_i32 = arith.constant 0 : i32
    %c0_i32_0 = arith.constant 0 : i32
    %c0_i32_1 = arith.constant 0 : i32
    %c0_i32_2 = arith.constant 0 : i32
    return %c0_i32, %c0_i32_0, %c0_i32_1 : i32, i32, i32
  }
  func.func @transform_18(%arg0: i32) -> (i32, i32) {
    %c0_i32 = arith.constant 0 : i32
    %c0_i32_0 = arith.constant 0 : i32
    %c0_i32_1 = arith.constant 0 : i32
    return %c0_i32, %c0_i32_0 : i32, i32
  }
  func.func @transform_19(%arg0: i32) -> (i32, i32) {
    %c0_i32 = arith.constant 0 : i32
    %c0_i32_0 = arith.constant 0 : i32
    %c0_i32_1 = arith.constant 0 : i32
    return %c0_i32, %c0_i32_0 : i32, i32
  }
  func.func @transform_20(%arg0: i32) -> (i32, i32) {
    %c0_i32 = arith.constant 0 : i32
    %c0_i32_0 = arith.constant 0 : i32
    %c0_i32_1 = arith.constant 0 : i32
    return %c0_i32, %c0_i32_0 : i32, i32
  }
  func.func @transform_21(%arg0: i32) -> (i32, i32) {
    %c0_i32 = arith.constant 0 : i32
    %c0_i32_0 = arith.constant 0 : i32
    %c0_i32_1 = arith.constant 0 : i32
    return %c0_i32, %c0_i32_0 : i32, i32
  }
  func.func @transform_22(%arg0: i32) -> (i32, i32, i32) {
    %c0_i32 = arith.constant 0 : i32
    %c0_i32_0 = arith.constant 0 : i32
    %c0_i32_1 = arith.constant 0 : i32
    %c0_i32_2 = arith.constant 0 : i32
    return %c0_i32, %c0_i32_0, %c0_i32_1 : i32, i32, i32
  }
  func.func @transform_23(%arg0: i32) -> (i32, i32, i32) {
    %c0_i32 = arith.constant 0 : i32
    %c0_i32_0 = arith.constant 0 : i32
    %c0_i32_1 = arith.constant 0 : i32
    %c0_i32_2 = arith.constant 0 : i32
    return %c0_i32, %c0_i32_0, %c0_i32_1 : i32, i32, i32
  }
  func.func @transform_24(%arg0: i32) -> (i32, i32) {
    %c0_i32 = arith.constant 0 : i32
    %c0_i32_0 = arith.constant 0 : i32
    %c0_i32_1 = arith.constant 0 : i32
    return %c0_i32, %c0_i32_0 : i32, i32
  }
}

</mosaic_0001>

<bundles_post_ra>
// kernel: netd_forward.1
= control target key start
LH: loop header
LB: loop body
LE: loop exit
PB: predicated region body
PF: predicated region fallthrough
CT: control target
= control target key end

     0   :  { %s13019_s0 = inlined_call_operand.vmem [shape: bf16[128,192], index: 0, kind: input, shape index: {}]   ;;  %s13020_s1 = inlined_call_operand.vmem [shape: f32[2,22], index: 1, kind: input, shape index: {}]   ;;  %s13021_s2 = inlined_call_operand.hbm [shape: bf16[4,64,128], index: 2, kind: input, shape index: {}]   ;;  %s13022_s3 = inlined_call_operand.hbm [shape: bf16[4,192,256], index: 3, kind: input, shape index: {}]   ;;  %s13023_s4 = inlined_call_operand.hbm [shape: bf16[4,32,64], index: 4, kind: input, shape index: {}]   ;;  %s13024_s5 = inlined_call_operand.vmem [shape: bf16[4,256,256], index: 5, kind: input, shape index: {}]   ;;  %s13025_s6 = inlined_call_operand.hbm [shape: f32[16,256], index: 6, kind: input, shape index: {}]   ;;  %s13026_s7 = inlined_call_operand.vmem [shape: f32[256,16], index: 7, kind: input, shape index: {}]   ;;  %s13027_s8 = inlined_call_operand.vmem [shape: f32[1,16], index: 8, kind: input, shape index: {}]   ;;  %s13028_s9 = inlined_call_operand.vmem [shape: f32[1,16], index: 9, kind: input, shape index: {}]   ;;  %s13029_s10 = inlined_call_operand.hbm [shape: bf16[4,16,32], index: 10, kind: input, shape index: {}]   ;;  %s13030_s11 = inlined_call_operand.vmem [shape: bf16[4,256,256], index: 11, kind: input, shape index: {}]   ;;  %s13031_s12 = inlined_call_operand.hbm [shape: f32[32,256], index: 12, kind: input, shape index: {}]   ;;  %s13032_s13 = inlined_call_operand.vmem [shape: f32[256,32], index: 13, kind: input, shape index: {}]   ;;  %s13033_s14 = inlined_call_operand.vmem [shape: f32[1,32], index: 14, kind: input, shape index: {}]   ;;  %s13034_s15 = inlined_call_operand.vmem [shape: f32[1,32], index: 15, kind: input, shape index: {}]   ;;  %s13035_s16 = inlined_call_operand.vmem [shape: bf16[4,8,16], index: 16, kind: input, shape index: {}]   ;;  %s13036_s17 = inlined_call_operand.vmem [shape: bf16[4,256,256], index: 17, kind: input, shape index: {}]   ;;  %s13037_s18 = inlined_call_operand.hbm [shape: f32[64,256], index: 18, kind: input, shape index: {}]   ;;  %s13038_s19 = inlined_call_operand.vmem [shape: f32[256,64], index: 19, kind: input, shape index: {}]   ;;  %s13039_s20 = inlined_call_operand.vmem [shape: f32[1,64], index: 20, kind: input, shape index: {}]   ;;  %s13040_s21 = inlined_call_operand.vmem [shape: f32[1,64], index: 21, kind: input, shape index: {}]   ;;  %s13041_s22 = inlined_call_operand.vmem [shape: bf16[4,2,8], index: 22, kind: input, shape index: {}]   ;;  %s13042_s23 = inlined_call_operand.vmem [shape: bf16[4,256,22], index: 23, kind: input, shape index: {}]   ;;  %s13043_s24 = inlined_call_operand.vmem [shape: f32[2,1], index: 24, kind: output, shape index: {}]  }
   0x1   :  { %13054 = sst [smem:[#allocation22_spill]] %s13019_s0 }
   0x2   :  { %13055 = sst [smem:[#allocation23_spill]] %s13020_s1 }
   0x3   :  { %13056 = sst [smem:[#allocation24_spill]] %s13021_s2 }
   0x4   :  { %13057 = sst [smem:[#allocation25_spill]] %s13022_s3 }
   0x5   :  { %13058 = sst [smem:[#allocation26_spill]] %s13023_s4 }
   0x6   :  { %13059 = sst [smem:[#allocation27_spill]] %s13024_s5 }
   0x7   :  { %13060 = sst [smem:[#allocation28_spill]] %s13025_s6 }
   0x8   :  { %13061 = sst [smem:[#allocation29_spill]] %s13026_s7 }
   0x9   :  { %13062 = sst [smem:[#allocation30_spill]] %s13027_s8 }
   0xa   :  { %13063 = sst [smem:[#allocation31_spill]] %s13043_s24 }
   0xb   :  { %29 = vsyncpa [#allocation3], 0 }
   0xc   :  { %30 = vsyncpa [#allocation5], 0 }
   0xd   :  { %31 = vsyncpa [#allocation8], 0 }
   0xe   :  { %32 = vsyncpa [#allocation11], 0  ;;  %s10093_s5 = smov [#allocation4]  }
   0xf   :  { %s54_s26 = sshll.u32 %s10093_s5, 4  ;;  %s55_s26 = int_to_ptr.vmem [resolvable:$true] %s54_s26 }
  0x10   :  { %s9953_s27 = scalar_lea.vmem %s55_s26, 12288  ;;  %p9958_p1 = scmp.lt.s32.totalorder %s55_s26, %s55_s26 }
  0x11   :  { %p9954_p0 = scmp.ne.s32.totalorder %s55_s26, %s9953_s27  ;;  %p9959_p2 = scmp.lt.s32.totalorder %s9953_s27, %s9953_s27 }
  0x13   :  { %p9960_p3 = por %p9959_p2, %p9958_p1 }
  0x15   :  { %p9961_p4 = pnand %p9960_p3, %p9954_p0 }
  0x17   :  { %9964 = shalt.err (!%p9961_p4)
}
  0x18   :  { %s10094_s28 = smov 128   ;;  %s10095_s6 = smov 8  }
  0x19   :  { %s13064_s0 = sld [smem:[#allocation25_spill]]  ;;  %s10096_s7 = smov [#allocation7]  }
  0x1a   :  { %s80_s30 = sshll.u32 %s10096_s7, 4  ;;  %s81_s30 = int_to_ptr.vmem [resolvable:$true] %s80_s30 }
  0x1b   :  { %s9973_s3 = scalar_lea.vmem %s81_s30, 512  ;;  %p9978_p6 = scmp.lt.s32.totalorder %s81_s30, %s81_s30 }
  0x1c   :  { %p9974_p5 = scmp.ne.s32.totalorder %s81_s30, %s9973_s3  ;;  %p9979_p7 = scmp.lt.s32.totalorder %s9973_s3, %s9973_s3 }
  0x1e   :  { %p9980_p8 = por %p9979_p7, %p9978_p6 }
  0x1f   :  { %60 = dma.hbm_to_vmem [thread:$0]  %s13064_s0, 12288, %s55_s26, [#allocation5], %s10094_s28, %s10094_s28, %s10095_s6  }
  0x20   :  { %p9981_p9 = pnand %p9980_p8, %p9974_p5 }
  0x22   :  { %9984 = shalt.err (!%p9981_p9)
}
  0x23   :  { %s10097_s25 = smov 256   ;;  %s10098_s8 = smov 16  }
  0x24   :  { %s13065_s5 = sld [smem:[#allocation28_spill]]  ;;  %s10099_s26 = smov [#allocation10]  }
  0x25   :  { %s112_s27 = sshll.u32 %s10099_s26, 4  ;;  %s10100_s28 = smov [#allocation2]   ;;  %s113_s27 = int_to_ptr.vmem [resolvable:$true] %s112_s27 }
  0x26   :  { %s42_s6 = sshll.u32 %s10100_s28, 4  ;;  %s9993_s2 = scalar_lea.vmem %s113_s27, 1024  ;;  %s43_s6 = int_to_ptr.vmem [resolvable:$true] %s42_s6 }
  0x27   :  { %p9994_p10 = scmp.ne.s32.totalorder %s113_s27, %s9993_s2  ;;  %p9998_p11 = scmp.lt.s32.totalorder %s113_s27, %s113_s27 }
  0x28   :  { %p9999_p12 = scmp.lt.s32.totalorder %s9993_s2, %s9993_s2 }
  0x2a   :  { %86 = dma.hbm_to_vmem [thread:$0]  %s13065_s5, 512, %s81_s30, [#allocation8], %s10097_s25, %s10097_s25, %s10098_s8  }
  0x2b   :  { %p10000_p13 = por %p9999_p12, %p9998_p11 }
  0x2d   :  { %p10001_p0 = pnand %p10000_p13, %p9994_p10 }
  0x2f   :  { %10004 = shalt.err (!%p10001_p0)
}
  0x30   :  { %118 = dma.hbm_to_vmem [thread:$0]  %s13031_s12, 1024, %s113_s27, [#allocation11], %s10097_s25, %s10097_s25, %s10098_s8  }
  0x31   :  { %s10013_s7 = scalar_lea.vmem %s43_s6, 2048  ;;  %p10018_p2 = scmp.lt.s32.totalorder %s43_s6, %s43_s6 }
  0x32   :  { %p10014_p1 = scmp.ne.s32.totalorder %s43_s6, %s10013_s7  ;;  %p10019_p3 = scmp.lt.s32.totalorder %s10013_s7, %s10013_s7 }
  0x34   :  { %p10020_p4 = por %p10019_p3, %p10018_p2 }
  0x36   :  { %p10021_p5 = pnand %p10020_p4, %p10014_p1 }
  0x38   :  { %10024 = shalt.err (!%p10021_p5)
}
  0x39   :  { %s10101_s30 = smov 64   ;;  %s10102_s3 = smov 4  }
  0x3a   :  { %s13066_s5 = sld [smem:[#allocation24_spill]]  ;;  %s10103_s26 = smov [#allocation6]  }
  0x3b   :  { %s66_s28 = sshll.u32 %s10103_s26, 4  ;;  %s10104_s2 = smov [#allocation9]   ;;  %s67_s28 = int_to_ptr.vmem [resolvable:$true] %s66_s28 }
  0x3c   :  { %s98_s24 = sshll.u32 %s10104_s2, 4  ;;  %s10033_s12 = scalar_lea.vmem %s67_s28, 1024  ;;  %s99_s24 = int_to_ptr.vmem [resolvable:$true] %s98_s24 }
  0x3d   :  { %p10034_p6 = scmp.ne.s32.totalorder %s67_s28, %s10033_s12  ;;  %p10038_p7 = scmp.lt.s32.totalorder %s67_s28, %s67_s28 }
  0x3e   :  { %p10039_p8 = scmp.lt.s32.totalorder %s10033_s12, %s10033_s12 }
  0x40   :  { %48 = dma.hbm_to_vmem [thread:$0]  %s13066_s5, 2048, %s43_s6, [#allocation3], %s10101_s30, %s10101_s30, %s10102_s3  }
  0x41   :  { %p10040_p9 = por %p10039_p8, %p10038_p7 }
  0x43   :  { %p10041_p10 = pnand %p10040_p9, %p10034_p6 }
  0x45   :  { %10044 = shalt.err (!%p10041_p10)
}
  0x46   :  { %s13067_s0 = sld [smem:[#allocation26_spill]]  ;;  %s10053_s7 = scalar_lea.vmem %s99_s24, 512 }
  0x47   :  { %p10054_p11 = scmp.ne.s32.totalorder %s99_s24, %s10053_s7  ;;  %p10058_p12 = scmp.lt.s32.totalorder %s99_s24, %s99_s24 }
  0x48   :  { %p10059_p13 = scmp.lt.s32.totalorder %s10053_s7, %s10053_s7 }
  0x4a   :  { %p10060_p0 = por %p10059_p13, %p10058_p12 }
  0x4c   :  { %72 = dma.hbm_to_vmem [thread:$0]  %s13067_s0, 1024, %s67_s28, [#allocation5], %s10101_s30, %s10101_s30, %s10102_s3  }
  0x4d   :  { %p10061_p1 = pnand %p10060_p0, %p10054_p11 }
  0x4f   :  { %10064 = shalt.err (!%p10061_p1)
}
  0x50   :  { %104 = dma.hbm_to_vmem [thread:$0]  %s13029_s10, 512, %s99_s24, [#allocation8], %s10101_s30, %s10101_s30, %s10102_s3  }
  0x51   :  { %s10105_s1 = smov [#allocation12]  }
  0x52   :  { %s134_s5 = sshll.u32 %s10105_s1, 4  ;;  %s135_s5 = int_to_ptr.vmem [resolvable:$true] %s134_s5 }
  0x53   :  { %s10073_s26 = scalar_lea.vmem %s135_s5, 2048  ;;  %p10078_p3 = scmp.lt.s32.totalorder %s135_s5, %s135_s5 }
  0x54   :  { %p10074_p2 = scmp.ne.s32.totalorder %s135_s5, %s10073_s26  ;;  %p10079_p4 = scmp.lt.s32.totalorder %s10073_s26, %s10073_s26 }
  0x56   :  { %p10080_p5 = por %p10079_p4, %p10078_p3 }
  0x58   :  { %p10081_p6 = pnand %p10080_p5, %p10074_p2 }
  0x5a   :  { %10084 = shalt.err (!%p10081_p6)
}
  0x5b   :  { %140 = dma.hbm_to_vmem [thread:$0]  %s13037_s18, 2048, %s135_s5, [#allocation11], %s10097_s25, %s10097_s25, %s10098_s8  }
  0x5c   :  { %10085 = dma.done.wait [#allocation3], 2048  }
  0x5d   :  { %10086 = vsyncadd [#allocation3], 4294965248 }
  0x5e   :  { %10087 = dma.done.wait [#allocation5], 13312  }
  0x5f   :  { %10088 = vsyncadd [#allocation5], 4294953984 }
  0x60   :  { %10089 = dma.done.wait [#allocation8], 1024  }
  0x61   :  { %10090 = vsyncadd [#allocation8], 4294966272 }
  0x62   :  { %10091 = dma.done.wait [#allocation11], 3072  }
  0x63   :  { %10092 = vsyncadd [#allocation11], 4294964224  ;;  %v13047_v0 = vmov 0   ;;  %s13068_s30 = sld [smem:[#allocation22_spill]]  ;;  %v9117_v17 = vld [vmem:[#allocation4 + $0x134] ss:$8 sps:$4 sm:$0xff]  }
  0x64   :  { %333 = vmatprep.mubr.bf16.mxu0 %v13047_v0  ;;  %471 = vmatprep.mubr.bf16.mxu1 %v13047_v0  ;;  %v9120_v18 = vld [vmem:[#allocation4 + $0x74] ss:$8 sps:$4 sm:$0xff]   ;;  %v9107_v19 = vld [vmem:[#allocation2] sm:$0xff]   ;;  %v9115_v21 = vld [vmem:[#allocation4 + $0x130] ss:$8 sps:$4 sm:$0xff]   ;;  %vm665_vm0 = vcmask 523264  }
  0x65   :  { %v9108_v20 = vld [vmem:[#allocation2 + $0x20] sm:$0xff]   ;;  %v9118_v22 = vld [vmem:[#allocation4 + $0x70] ss:$8 sps:$4 sm:$0xff]   ;;  %v9129_v27 = vld [vmem:[#allocation4 + $0x114] ss:$8 sps:$4 sm:$0xff]   ;;  %s13069_s6 = sld [smem:[#allocation27_spill]] }
  0x66   :  { %v9123_v23 = vld [vmem:[#allocation4 + $0x124] ss:$8 sps:$4 sm:$0xff]   ;;  %v9121_v25 = vld [vmem:[#allocation4 + $0x120] ss:$8 sps:$4 sm:$0xff]   ;;  %v9132_v28 = vld [vmem:[#allocation4 + $0x54] ss:$8 sps:$4 sm:$0xff]  }
  0x67   :  { %v9126_v24 = vld [vmem:[#allocation4 + $0x64] ss:$8 sps:$4 sm:$0xff]   ;;  %v9124_v26 = vld [vmem:[#allocation4 + $0x60] ss:$8 sps:$4 sm:$0xff]   ;;  %v9127_v31 = vld [vmem:[#allocation4 + $0x110] ss:$8 sps:$4 sm:$0xff]  }
  0x68   :  { %v9109_v29 = vld [vmem:[#allocation2 + $0x8] sm:$0xff]   ;;  %v9130_v32 = vld [vmem:[#allocation4 + $0x50] ss:$8 sps:$4 sm:$0xff]   ;;  %v9141_v39 = vld [vmem:[#allocation4 + $0xf4] ss:$8 sps:$4 sm:$0xff]   ;;  %s13070_s26 = sld [smem:[#allocation29_spill]] }
  0x69   :  { %v10268_v1 = vld [vmem:[%s13068_s30 + $0x74] ss:$8 sps:$4 sm:$0xff]   ;;  %v9085_v2 = vld [vmem:[%s13068_s30 + $0x70] ss:$8 sps:$4 sm:$0xff]   ;;  %v9086_v3 = vld [vmem:[%s13068_s30 + $0x64] ss:$8 sps:$4 sm:$0xff]  }
  0x6a   :  { %301 = vmatprep.subr.bf16.mxu0 %v10268_v1  ;;  %439 = vmatprep.subr.bf16.mxu1 %v10268_v1  ;;  %v9088_v4 = vld [vmem:[%s13068_s30 + $0x60] ss:$8 sps:$4 sm:$0xff]   ;;  %v9089_v5 = vld [vmem:[%s13068_s30 + $0x54] ss:$8 sps:$4 sm:$0xff]   ;;  %v9091_v6 = vld [vmem:[%s13068_s30 + $0x50] ss:$8 sps:$4 sm:$0xff]  }
  0x6b   :  { %302 = vmatpush1.bf16.msra.mxu0 %v9085_v2  ;;  %440 = vmatpush1.bf16.msra.mxu1 %v9085_v2  ;;  %v9092_v7 = vld [vmem:[%s13068_s30 + $0x44] ss:$8 sps:$4 sm:$0xff]   ;;  %v9094_v8 = vld [vmem:[%s13068_s30 + $0x40] ss:$8 sps:$4 sm:$0xff]   ;;  %v9095_v9 = vld [vmem:[%s13068_s30 + $0x34] ss:$8 sps:$4 sm:$0xff]  }
  0x6c   :  { %303 = vmatprep.subr.bf16.mxu0 %v9086_v3  ;;  %441 = vmatprep.subr.bf16.mxu1 %v9086_v3  ;;  %v9097_v10 = vld [vmem:[%s13068_s30 + $0x30] ss:$8 sps:$4 sm:$0xff]   ;;  %v9098_v11 = vld [vmem:[%s13068_s30 + $0x24] ss:$8 sps:$4 sm:$0xff]   ;;  %v9100_v12 = vld [vmem:[%s13068_s30 + $0x20] ss:$8 sps:$4 sm:$0xff]  }
  0x6d   :  { %v9101_v13 = vld [vmem:[%s13068_s30 + $0x14] ss:$8 sps:$4 sm:$0xff]   ;;  %v9103_v14 = vld [vmem:[%s13068_s30 + $0x10] ss:$8 sps:$4 sm:$0xff]   ;;  %v9104_v15 = vld [vmem:[%s13068_s30 + $0x4] ss:$8 sps:$4 sm:$0xff]  }
  0x6e   :  { %v9106_v16 = vld [vmem:[%s13068_s30] ss:$8 sps:$4 sm:$0xff]   ;;  %v9135_v33 = vld [vmem:[#allocation4 + $0x104] ss:$8 sps:$4 sm:$0xff]   ;;  %v9111_v37 = vld [vmem:[#allocation2 + $0x10] sm:$0xff]   ;;  %s13081_s27 = sld [smem:[#allocation30_spill]] }
  0x6f   :  { %304 = vmatpush1.bf16.msra.mxu0 %v9088_v4  ;;  %442 = vmatpush1.bf16.msra.mxu1 %v9088_v4  ;;  %v9110_v30 = vld [vmem:[#allocation2 + $0x28] sm:$0xff]   ;;  %v9112_v38 = vld [vmem:[#allocation2 + $0x30] sm:$0xff]   ;;  %v9113_v49 = vld [vmem:[#allocation2 + $0x18] sm:$0xff]  }
  0x70   :  { %305 = vmatprep.subr.bf16.mxu0 %v9089_v5  ;;  %443 = vmatprep.subr.bf16.mxu1 %v9089_v5  ;;  %v9138_v34 = vld [vmem:[#allocation4 + $0x44] ss:$8 sps:$4 sm:$0xff]   ;;  %v9133_v35 = vld [vmem:[#allocation4 + $0x100] ss:$8 sps:$4 sm:$0xff]   ;;  %v9144_v40 = vld [vmem:[#allocation4 + $0x34] ss:$8 sps:$4 sm:$0xff]  }
  0x71   :  { %v9136_v36 = vld [vmem:[#allocation4 + $0x40] ss:$8 sps:$4 sm:$0xff]   ;;  %v9139_v41 = vld [vmem:[#allocation4 + $0xf0] ss:$8 sps:$4 sm:$0xff]   ;;  %v9147_v43 = vld [vmem:[#allocation4 + $0xe4] ss:$8 sps:$4 sm:$0xff]  }
  0x72   :  { %v9142_v42 = vld [vmem:[#allocation4 + $0x30] ss:$8 sps:$4 sm:$0xff]   ;;  %v9150_v44 = vld [vmem:[#allocation4 + $0x24] ss:$8 sps:$4 sm:$0xff]   ;;  %v9145_v45 = vld [vmem:[#allocation4 + $0xe0] ss:$8 sps:$4 sm:$0xff]  }
  0x73   :  { %306 = vmatpush1.bf16.msra.mxu0 %v9091_v6  ;;  %444 = vmatpush1.bf16.msra.mxu1 %v9091_v6  ;;  %v9148_v46 = vld [vmem:[#allocation4 + $0x20] ss:$8 sps:$4 sm:$0xff]   ;;  %v9153_v47 = vld [vmem:[#allocation4 + $0xd4] ss:$8 sps:$4 sm:$0xff]   ;;  %v9151_v51 = vld [vmem:[#allocation4 + $0xd0] ss:$8 sps:$4 sm:$0xff]  }
  0x74   :  { %307 = vmatprep.subr.bf16.mxu0 %v9092_v7  ;;  %445 = vmatprep.subr.bf16.mxu1 %v9092_v7  ;;  %v9156_v48 = vld [vmem:[#allocation4 + $0x14] ss:$8 sps:$4 sm:$0xff]   ;;  %v9154_v52 = vld [vmem:[#allocation4 + $0x10] ss:$8 sps:$4 sm:$0xff]   ;;  %v9159_v53 = vld [vmem:[#allocation4 + $0xc4] ss:$8 sps:$4 sm:$0xff]  }
  0x75   :  { %v9114_v50 = vld [vmem:[#allocation2 + $0x38] sm:$0xff]   ;;  %v9162_v54 = vld [vmem:[#allocation4 + $0x4] ss:$8 sps:$4 sm:$0xff]   ;;  %v9157_v55 = vld [vmem:[#allocation4 + $0xc0] ss:$8 sps:$4 sm:$0xff]  }
  0x76   :  { %v9160_v56 = vld [vmem:[#allocation4] ss:$8 sps:$4 sm:$0xff]   ;;  %v9165_v57 = vld [vmem:[#allocation4 + $0x174] ss:$8 sps:$4 sm:$0xff]   ;;  %v9163_v59 = vld [vmem:[#allocation4 + $0x170] ss:$8 sps:$4 sm:$0xff]  }
  0x77   :  { %308 = vmatpush1.bf16.msra.mxu0 %v9094_v8  ;;  %446 = vmatpush1.bf16.msra.mxu1 %v9094_v8  ;;  %v9168_v58 = vld [vmem:[#allocation4 + $0xb4] ss:$8 sps:$4 sm:$0xff]   ;;  %v9166_v60 = vld [vmem:[#allocation4 + $0xb0] ss:$8 sps:$4 sm:$0xff]   ;;  %v9171_v61 = vld [vmem:[#allocation4 + $0x164] ss:$8 sps:$4 sm:$0xff]  }
  0x78   :  { %309 = vmatprep.subr.bf16.mxu0 %v9095_v9  ;;  %447 = vmatprep.subr.bf16.mxu1 %v9095_v9  ;;  %v9174_v62 = vld [vmem:[#allocation4 + $0xa4] ss:$8 sps:$4 sm:$0xff]   ;;  %v9169_v63 = vld [vmem:[#allocation4 + $0x160] ss:$8 sps:$4 sm:$0xff]   ;;  %v9177_v3 = vld [vmem:[#allocation4 + $0x154] ss:$8 sps:$4 sm:$0xff]  }
  0x79   :  { %v9172_v2 = vld [vmem:[#allocation4 + $0xa0] ss:$8 sps:$4 sm:$0xff]   ;;  %v9180_v4 = vld [vmem:[#allocation4 + $0x94] ss:$8 sps:$4 sm:$0xff]   ;;  %v9175_v5 = vld [vmem:[#allocation4 + $0x150] ss:$8 sps:$4 sm:$0xff]  }
  0x7a   :  { %v9178_v6 = vld [vmem:[#allocation4 + $0x90] ss:$8 sps:$4 sm:$0xff]   ;;  %v9183_v7 = vld [vmem:[#allocation4 + $0x144] ss:$8 sps:$4 sm:$0xff]   ;;  %v9181_v9 = vld [vmem:[#allocation4 + $0x140] ss:$8 sps:$4 sm:$0xff]  }
  0x7b   :  { %310 = vmatpush1.bf16.msra.mxu0 %v9097_v10  ;;  %448 = vmatpush1.bf16.msra.mxu1 %v9097_v10  ;;  %v9186_v8 = vld [vmem:[#allocation4 + $0x84] ss:$8 sps:$4 sm:$0xff]   ;;  %v9184_v10 = vld [vmem:[#allocation4 + $0x80] ss:$8 sps:$4 sm:$0xff]  }
  0x7c   :  { %311 = vmatprep.subr.bf16.mxu0 %v9098_v11  ;;  %449 = vmatprep.subr.bf16.mxu1 %v9098_v11  ;;  %v9197_v11 = vld [vmem:[#allocation4 + $0x1f4] ss:$8 sps:$4 sm:$0xff]  }
  0x7f   :  { %312 = vmatpush1.bf16.msra.mxu0 %v9100_v12  ;;  %450 = vmatpush1.bf16.msra.mxu1 %v9100_v12 }
  0x80   :  { %313 = vmatprep.subr.bf16.mxu0 %v9101_v13  ;;  %451 = vmatprep.subr.bf16.mxu1 %v9101_v13 }
  0x83   :  { %314 = vmatpush1.bf16.msra.mxu0 %v9103_v14  ;;  %452 = vmatpush1.bf16.msra.mxu1 %v9103_v14 }
  0x84   :  { %315 = vmatprep.subr.bf16.mxu0 %v9104_v15  ;;  %453 = vmatprep.subr.bf16.mxu1 %v9104_v15 }
  0x87   :  { %316 = vmatpush1.bf16.msra.mxu0 %v9106_v16  ;;  %454 = vmatpush1.bf16.msra.mxu1 %v9106_v16 }
  0x88   :  { %678 = vmatprep.subr.bf16.mxu0 %v9117_v17  ;;  %883 = vmatprep.subr.bf16.mxu1 %v9120_v18  ;;  %v9195_v18 = vld [vmem:[#allocation4 + $0x1f0] ss:$8 sps:$4 sm:$0xff]  }
  0x8a   :  { %334 = vmatmul.mubr.bf16.vlgmr.msra.gmra.mxu0 %v9107_v19  ;;  %472 = vmatmul.mubr.bf16.vlgmr.msra.gmra.mxu1 %v9108_v20 }
  0x8b   :  { %343 = vmatprep.mubr.bf16.mxu0 %v13047_v0  ;;  %481 = vmatprep.mubr.bf16.mxu1 %v13047_v0 }
  0x8c   :  { %679 = vmatpush1.bf16.msra.mxu0 %v9115_v21  ;;  %884 = vmatpush1.bf16.msra.mxu1 %v9118_v22  ;;  %v9200_v22 = vld [vmem:[#allocation4 + $0x1e4] ss:$8 sps:$4 sm:$0xff]  }
  0x8d   :  { %680 = vmatprep.subr.bf16.mxu0 %v9123_v23  ;;  %885 = vmatprep.subr.bf16.mxu1 %v9126_v24 }
  0x90   :  { %681 = vmatpush1.bf16.msra.mxu0 %v9121_v25  ;;  %886 = vmatpush1.bf16.msra.mxu1 %v9124_v26 }
  0x91   :  { %682 = vmatprep.subr.bf16.mxu0 %v9129_v27  ;;  %887 = vmatprep.subr.bf16.mxu1 %v9132_v28 }
  0x92   :  { %344 = vmatmul.mubr.bf16.gmra.mxu0 %v9109_v29  ;;  %482 = vmatmul.mubr.bf16.gmra.mxu1 %v9110_v30  ;;  %v10329_v30 = vld [vmem:[%s13068_s30 + $0x70] ss:$8 sps:$4 sm:$0xff]  }
  0x93   :  { %353 = vmatprep.mubr.bf16.mxu0 %v13047_v0  ;;  %491 = vmatprep.mubr.bf16.mxu1 %v13047_v0 }
  0x94   :  { %683 = vmatpush1.bf16.msra.mxu0 %v9127_v31  ;;  %888 = vmatpush1.bf16.msra.mxu1 %v9130_v32 }
  0x95   :  { %684 = vmatprep.subr.bf16.mxu0 %v9135_v33  ;;  %889 = vmatprep.subr.bf16.mxu1 %v9138_v34  ;;  %v10335_v33 = vld [vmem:[%s13068_s30 + $0x64] ss:$8 sps:$4 sm:$0xff]  }
  0x98   :  { %685 = vmatpush1.bf16.msra.mxu0 %v9133_v35  ;;  %890 = vmatpush1.bf16.msra.mxu1 %v9136_v36 }
  0x99   :  { %686 = vmatprep.subr.bf16.mxu0 %v9141_v39  ;;  %891 = vmatprep.subr.bf16.mxu1 %v9144_v40  ;;  %v10341_v39 = vld [vmem:[%s13068_s30 + $0x60] ss:$8 sps:$4 sm:$0xff]  }
  0x9a   :  { %354 = vmatmul.mubr.bf16.gmra.mxu0 %v9111_v37  ;;  %492 = vmatmul.mubr.bf16.gmra.mxu1 %v9112_v38 }
  0x9b   :  { %363 = vmatprep.mubr.bf16.mxu0 %v13047_v0  ;;  %501 = vmatprep.mubr.bf16.mxu1 %v13047_v0 }
  0x9c   :  { %687 = vmatpush1.bf16.msra.mxu0 %v9139_v41  ;;  %892 = vmatpush1.bf16.msra.mxu1 %v9142_v42 }
  0x9d   :  { %688 = vmatprep.subr.bf16.mxu0 %v9147_v43  ;;  %893 = vmatprep.subr.bf16.mxu1 %v9150_v44  ;;  %v10347_v43 = vld [vmem:[%s13068_s30 + $0x54] ss:$8 sps:$4 sm:$0xff]  }
  0xa0   :  { %689 = vmatpush1.bf16.msra.mxu0 %v9145_v45  ;;  %894 = vmatpush1.bf16.msra.mxu1 %v9148_v46  ;;  %v9933_v46 = vld [vmem:[%s13068_s30 + $0x50] ss:$8 sps:$4 sm:$0xff]  }
  0xa1   :  { %690 = vmatprep.subr.bf16.mxu0 %v9153_v47  ;;  %895 = vmatprep.subr.bf16.mxu1 %v9156_v48 }
  0xa2   :  { %364 = vmatmul.mubr.bf16.gmra.mxu0 %v9113_v49  ;;  %502 = vmatmul.mubr.bf16.gmra.mxu1 %v9114_v50  ;;  %v9934_v49 = vld [vmem:[%s13068_s30 + $0x44] ss:$8 sps:$4 sm:$0xff]  }
  0xa4   :  { %691 = vmatpush1.bf16.msra.mxu0 %v9151_v51  ;;  %896 = vmatpush1.bf16.msra.mxu1 %v9154_v52 }
  0xa5   :  { %692 = vmatprep.subr.bf16.mxu0 %v9159_v53  ;;  %897 = vmatprep.subr.bf16.mxu1 %v9162_v54 }
  0xa8   :  { %693 = vmatpush1.bf16.msra.mxu0 %v9157_v55  ;;  %898 = vmatpush1.bf16.msra.mxu1 %v9160_v56  ;;  %v9935_v55 = vld [vmem:[%s13068_s30 + $0x40] ss:$8 sps:$4 sm:$0xff]  }
  0xa9   :  { %702 = vmatprep.subr.bf16.mxu0 %v9165_v57  ;;  %907 = vmatprep.subr.bf16.mxu1 %v9168_v58 }
  0xac   :  { %703 = vmatpush2.bf16.msra.mxu0 %v9163_v59  ;;  %908 = vmatpush2.bf16.msra.mxu1 %v9166_v60  ;;  %v9936_v59 = vld [vmem:[%s13068_s30 + $0x34] ss:$8 sps:$4 sm:$0xff]  }
  0xad   :  { %704 = vmatprep.subr.bf16.mxu0 %v9171_v61  ;;  %909 = vmatprep.subr.bf16.mxu1 %v9174_v62  ;;  %v9937_v62 = vld [vmem:[%s13068_s30 + $0x30] ss:$8 sps:$4 sm:$0xff]  }
  0xb0   :  { %705 = vmatpush2.bf16.msra.mxu0 %v9169_v63  ;;  %910 = vmatpush2.bf16.msra.mxu1 %v9172_v2 }
  0xb1   :  { %706 = vmatprep.subr.bf16.mxu0 %v9177_v3  ;;  %911 = vmatprep.subr.bf16.mxu1 %v9180_v4  ;;  %v9938_v3 = vld [vmem:[%s13068_s30 + $0x24] ss:$8 sps:$4 sm:$0xff]  }
  0xb4   :  { %707 = vmatpush2.bf16.msra.mxu0 %v9175_v5  ;;  %912 = vmatpush2.bf16.msra.mxu1 %v9178_v6 }
  0xb5   :  { %708 = vmatprep.subr.bf16.mxu0 %v9183_v7  ;;  %913 = vmatprep.subr.bf16.mxu1 %v9186_v8 }
  0xb8   :  { %709 = vmatpush2.bf16.msra.mxu0 %v9181_v9  ;;  %914 = vmatpush2.bf16.msra.mxu1 %v9184_v10  ;;  %v9939_v9 = vld [vmem:[%s13068_s30 + $0x20] ss:$8 sps:$4 sm:$0xff]  }
  0xb9   :  { %989 = vmatprep.subr.bf16.mxu0 %v10268_v1  ;;  %1227 = vmatprep.subr.bf16.mxu1 %v9197_v11  ;;  %v9198_v1 = vld [vmem:[#allocation4 + $0x1e0] ss:$8 sps:$4 sm:$0xff]   ;;  %v9940_v11 = vld [vmem:[%s13068_s30 + $0x14] ss:$8 sps:$4 sm:$0xff]  }
 0x14a   :  { %v335_v12 = vpop.f32.mrf.mxu0  ;;  %v473_v13 = vpop.f32.mrf.mxu1 }
 0x14c   :  { %v337_v14 = vpop.f32.mrf.mxu0  ;;  %v475_v15 = vpop.f32.mrf.mxu1 }
 0x14e   :  { %v339_v16 = vpop.f32.mrf.mxu0  ;;  %v477_v17 = vpop.f32.mrf.mxu1 }
 0x14f   :  { %v374_v19 = vpack.c.bf16 %v339_v16, %v335_v12  ;;  %v512_v25 = vpack.c.bf16 %v477_v17, %v473_v13  ;;  %v9941_v12 = vld [vmem:[%s13068_s30 + $0x10] ss:$8 sps:$4 sm:$0xff]   ;;  %v9942_v13 = vld [vmem:[%s13068_s30 + $0x4] ss:$8 sps:$4 sm:$0xff]   ;;  %v9944_v16 = vld [vmem:[%s13068_s30 + $0x74] ss:$8 sps:$4 sm:$0xff]  }
 0x150   :  { %v341_v20 = vpop.f32.mrf.mxu0  ;;  %v479_v21 = vpop.f32.mrf.mxu1  ;;  %v9188_v17 = vld [vmem:[#allocation2 + $0x48] sm:$0xff]  }
 0x151   :  { %v375_v23 = vpack.c.bf16 %v341_v20, %v337_v14  ;;  %v513_v24 = vpack.c.bf16 %v479_v21, %v475_v15  ;;  %v9187_v14 = vld [vmem:[#allocation2 + $0x40] sm:$0xff]   ;;  %v9203_v21 = vld [vmem:[#allocation4 + $0x1d4] ss:$8 sps:$4 sm:$0xff]  }
 0x152   :  { %v345_v26 = vpop.f32.mrf.mxu0  ;;  %v483_v27 = vpop.f32.mrf.mxu1  ;;  %v9943_v15 = vld [vmem:[%s13068_s30] ss:$8 sps:$4 sm:$0xff]   ;;  %s13084_s30 = sld [smem:[#allocation31_spill]] }
 0x153   :  { %7791 = vmatprep.mubr.msk.bf16.mxu0 %vm665_vm0, %v513_v24  ;;  %7819 = vmatprep.mubr.msk.bf16.mxu1 %vm665_vm0, %v375_v23  ;;  %v9191_v20 = vld [vmem:[#allocation2 + $0x60] sm:$0xff]   ;;  %v9192_v24 = vld [vmem:[#allocation2 + $0x68] sm:$0xff]  }
 0x154   :  { %v347_v28 = vpop.f32.mrf.mxu0  ;;  %v485_v29 = vpop.f32.mrf.mxu1  ;;  %711 = vmatmul.mubr.bf16.vlgmr.msra.gmra.mxu0 %v512_v25  ;;  %916 = vmatmul.mubr.bf16.vlgmr.msra.gmra.mxu1 %v374_v19  ;;  %v9190_v19 = vld [vmem:[#allocation2 + $0x58] sm:$0xff]   ;;  %v9206_v23 = vld [vmem:[#allocation4 + $0x1c4] ss:$8 sps:$4 sm:$0xff]   ;;  %v9204_v25 = vld [vmem:[#allocation4 + $0x1c0] ss:$8 sps:$4 sm:$0xff]  }
 0x155   :  { %990 = vmatpush1.bf16.msra.mxu0 %v10329_v30  ;;  %1228 = vmatpush1.bf16.msra.mxu1 %v9195_v18  ;;  %v9189_v18 = vld [vmem:[#allocation2 + $0x50] sm:$0xff]  }
 0x156   :  { %v349_v31 = vpop.f32.mrf.mxu0  ;;  %v487_v32 = vpop.f32.mrf.mxu1  ;;  %991 = vmatprep.subr.bf16.mxu0 %v10335_v33  ;;  %1229 = vmatprep.subr.bf16.mxu1 %v9200_v22  ;;  %v9201_v22 = vld [vmem:[#allocation4 + $0x1d0] ss:$8 sps:$4 sm:$0xff]  }
 0x157   :  { %v376_v34 = vpack.c.bf16 %v349_v31, %v345_v26  ;;  %v514_v40 = vpack.c.bf16 %v487_v32, %v483_v27  ;;  %v9209_v26 = vld [vmem:[#allocation4 + $0x1b4] ss:$8 sps:$4 sm:$0xff]   ;;  %v9207_v27 = vld [vmem:[#allocation4 + $0x1b0] ss:$8 sps:$4 sm:$0xff]   ;;  %v9218_v32 = vld [vmem:[#allocation4 + $0x184] ss:$8 sps:$4 sm:$0xff]  }
 0x158   :  { %v351_v35 = vpop.f32.mrf.mxu0  ;;  %v489_v36 = vpop.f32.mrf.mxu1  ;;  %v9213_v31 = vld [vmem:[#allocation4 + $0x190] ss:$8 sps:$4 sm:$0xff]  }
 0x159   :  { %v377_v37 = vpack.c.bf16 %v351_v35, %v347_v28  ;;  %v515_v38 = vpack.c.bf16 %v489_v36, %v485_v29  ;;  %992 = vmatpush1.bf16.msra.mxu0 %v10341_v39  ;;  %1230 = vmatpush1.bf16.msra.mxu1 %v9198_v1  ;;  %v9212_v1 = vld [vmem:[#allocation4 + $0x1a4] ss:$8 sps:$4 sm:$0xff]   ;;  %v9193_v28 = vld [vmem:[#allocation2 + $0x70] sm:$0xff]   ;;  %v9210_v29 = vld [vmem:[#allocation4 + $0x1a0] ss:$8 sps:$4 sm:$0xff]  }
 0x15a   :  { %v355_v41 = vpop.f32.mrf.mxu0  ;;  %v493_v42 = vpop.f32.mrf.mxu1  ;;  %993 = vmatprep.subr.bf16.mxu0 %v10347_v43  ;;  %1231 = vmatprep.subr.bf16.mxu1 %v9203_v21  ;;  %v9221_v35 = vld [vmem:[#allocation4 + $0x234] ss:$8 sps:$4 sm:$0xff]   ;;  %v9219_v36 = vld [vmem:[#allocation4 + $0x230] ss:$8 sps:$4 sm:$0xff]  }
 0x15b   :  { %7792 = vmatprep.mubr.msk.bf16.mxu0 %vm665_vm0, %v515_v38  ;;  %7820 = vmatprep.mubr.msk.bf16.mxu1 %vm665_vm0, %v377_v37  ;;  %v9224_v37 = vld [vmem:[#allocation4 + $0x224] ss:$8 sps:$4 sm:$0xff]   ;;  %v9222_v38 = vld [vmem:[#allocation4 + $0x220] ss:$8 sps:$4 sm:$0xff]  }
 0x15c   :  { %v357_v44 = vpop.f32.mrf.mxu0  ;;  %v495_v45 = vpop.f32.mrf.mxu1  ;;  %721 = vmatmul.mubr.bf16.gmra.mxu0 %v514_v40  ;;  %926 = vmatmul.mubr.bf16.gmra.mxu1 %v376_v34  ;;  %v9216_v34 = vld [vmem:[#allocation4 + $0x180] ss:$8 sps:$4 sm:$0xff]   ;;  %v9225_v40 = vld [vmem:[#allocation4 + $0x210] ss:$8 sps:$4 sm:$0xff]  }
 0x15d   :  { %994 = vmatpush1.bf16.msra.mxu0 %v9933_v46  ;;  %1232 = vmatpush1.bf16.msra.mxu1 %v9201_v22 }
 0x15e   :  { %v359_v47 = vpop.f32.mrf.mxu0  ;;  %v497_v48 = vpop.f32.mrf.mxu1  ;;  %995 = vmatprep.subr.bf16.mxu0 %v9934_v49  ;;  %1233 = vmatprep.subr.bf16.mxu1 %v9206_v23 }
 0x15f   :  { %v378_v50 = vpack.c.bf16 %v359_v47, %v355_v41  ;;  %v516_v56 = vpack.c.bf16 %v497_v48, %v493_v42  ;;  %v9230_v41 = vld [vmem:[#allocation4 + $0x204] ss:$8 sps:$4 sm:$0xff]   ;;  %v9228_v42 = vld [vmem:[#allocation4 + $0x200] ss:$8 sps:$4 sm:$0xff]  }
 0x160   :  { %v361_v51 = vpop.f32.mrf.mxu0  ;;  %v499_v52 = vpop.f32.mrf.mxu1 }
 0x161   :  { %v379_v53 = vpack.c.bf16 %v361_v51, %v357_v44  ;;  %v517_v54 = vpack.c.bf16 %v499_v52, %v495_v45  ;;  %996 = vmatpush1.bf16.msra.mxu0 %v9935_v55  ;;  %1234 = vmatpush1.bf16.msra.mxu1 %v9204_v25 }
 0x162   :  { %v365_v57 = vpop.f32.mrf.mxu0  ;;  %v503_v58 = vpop.f32.mrf.mxu1  ;;  %997 = vmatprep.subr.bf16.mxu0 %v9936_v59  ;;  %1235 = vmatprep.subr.bf16.mxu1 %v9209_v26  ;;  %v9231_v26 = vld [vmem:[#allocation4 + $0x2b0] ss:$8 sps:$4 sm:$0xff]  }
 0x163   :  { %7793 = vmatprep.mubr.msk.bf16.mxu0 %vm665_vm0, %v517_v54  ;;  %7821 = vmatprep.mubr.msk.bf16.mxu1 %vm665_vm0, %v379_v53 }
 0x164   :  { %v367_v60 = vpop.f32.mrf.mxu0  ;;  %v505_v61 = vpop.f32.mrf.mxu1  ;;  %731 = vmatmul.mubr.bf16.gmra.mxu0 %v516_v56  ;;  %936 = vmatmul.mubr.bf16.gmra.mxu1 %v378_v50 }
 0x165   :  { %998 = vmatpush1.bf16.msra.mxu0 %v9937_v62  ;;  %1236 = vmatpush1.bf16.msra.mxu1 %v9207_v27 }
 0x166   :  { %v369_v63 = vpop.f32.mrf.mxu0  ;;  %v507_v2 = vpop.f32.mrf.mxu1  ;;  %999 = vmatprep.subr.bf16.mxu0 %v9938_v3  ;;  %1237 = vmatprep.subr.bf16.mxu1 %v9212_v1 }
 0x167   :  { %v380_v4 = vpack.c.bf16 %v369_v63, %v365_v57  ;;  %v518_v10 = vpack.c.bf16 %v507_v2, %v503_v58 }
 0x168   :  { %v371_v5 = vpop.f32.mrf.mxu0  ;;  %v509_v6 = vpop.f32.mrf.mxu1 }
 0x169   :  { %v381_v7 = vpack.c.bf16 %v371_v5, %v367_v60  ;;  %v519_v8 = vpack.c.bf16 %v509_v6, %v505_v61  ;;  %1000 = vmatpush1.bf16.msra.mxu0 %v9939_v9  ;;  %1238 = vmatpush1.bf16.msra.mxu1 %v9210_v29 }
 0x16a   :  { %1001 = vmatprep.subr.bf16.mxu0 %v9940_v11 }
 0x16b   :  { %7794 = vmatprep.mubr.msk.bf16.mxu0 %vm665_vm0, %v519_v8  ;;  %7822 = vmatprep.mubr.msk.bf16.mxu1 %vm665_vm0, %v381_v7 }
 0x16c   :  { %741 = vmatmul.mubr.bf16.gmra.mxu0 %v518_v10  ;;  %946 = vmatmul.mubr.bf16.gmra.mxu1 %v380_v4 }
 0x16d   :  { %1002 = vmatpush1.bf16.msra.mxu0 %v9941_v12  ;;  %1021 = vmatprep.mubr.bf16.mxu0 %v13047_v0 }
 0x16e   :  { %1003 = vmatprep.subr.bf16.mxu0 %v9942_v13 }
 0x171   :  { %1004 = vmatpush1.bf16.msra.mxu0 %v9943_v15 }
 0x172   :  { %1349 = vmatprep.subr.bf16.mxu0 %v9944_v16 }
 0x174   :  { %1022 = vmatmul.mubr.bf16.vlgmr.msra.gmra.mxu0 %v9187_v14 }
 0x175   :  { %1031 = vmatprep.mubr.bf16.mxu0 %v13047_v0  ;;  %1350 = vmatpush1.bf16.msra.mxu0 %v10329_v30  ;;  %v9215_v30 = vld [vmem:[#allocation4 + $0x194] ss:$8 sps:$4 sm:$0xff]  }
 0x176   :  { %1351 = vmatprep.subr.bf16.mxu0 %v10335_v33  ;;  %1239 = vmatprep.subr.bf16.mxu1 %v9215_v30  ;;  %v9194_v33 = vld [vmem:[#allocation2 + $0x78] sm:$0xff]   ;;  %v9234_v30 = vld [vmem:[#allocation4 + $0x2a0] ss:$8 sps:$4 sm:$0xff]  }
 0x177   :  { %1240 = vmatpush1.bf16.msra.mxu1 %v9213_v31 }
 0x178   :  { %1241 = vmatprep.subr.bf16.mxu1 %v9218_v32  ;;  %v9239_v32 = vld [vmem:[#allocation4 + $0x294] ss:$8 sps:$4 sm:$0xff]  }
 0x179   :  { %1352 = vmatpush1.bf16.msra.mxu0 %v10341_v39  ;;  %v9227_v39 = vld [vmem:[#allocation4 + $0x214] ss:$8 sps:$4 sm:$0xff]  }
 0x17a   :  { %1353 = vmatprep.subr.bf16.mxu0 %v10347_v43  ;;  %v9233_v43 = vld [vmem:[#allocation4 + $0x2b4] ss:$8 sps:$4 sm:$0xff]  }
 0x17b   :  { %1242 = vmatpush1.bf16.msra.mxu1 %v9216_v34 }
 0x17c   :  { %1032 = vmatmul.mubr.bf16.gmra.mxu0 %v9188_v17  ;;  %1251 = vmatprep.subr.bf16.mxu1 %v9221_v35 }
 0x17d   :  { %1041 = vmatprep.mubr.bf16.mxu0 %v13047_v0  ;;  %1354 = vmatpush1.bf16.msra.mxu0 %v9933_v46 }
 0x17e   :  { %1355 = vmatprep.subr.bf16.mxu0 %v9934_v49 }
 0x17f   :  { %1252 = vmatpush2.bf16.msra.mxu1 %v9219_v36  ;;  %v9237_v36 = vld [vmem:[#allocation4 + $0x290] ss:$8 sps:$4 sm:$0xff]  }
 0x180   :  { %1253 = vmatprep.subr.bf16.mxu1 %v9224_v37 }
 0x181   :  { %1356 = vmatpush1.bf16.msra.mxu0 %v9935_v55 }
 0x182   :  { %1357 = vmatprep.subr.bf16.mxu0 %v9936_v59 }
 0x183   :  { %1254 = vmatpush2.bf16.msra.mxu1 %v9222_v38  ;;  %v9242_v38 = vld [vmem:[#allocation4 + $0x284] ss:$8 sps:$4 sm:$0xff]  }
 0x184   :  { %1042 = vmatmul.mubr.bf16.gmra.mxu0 %v9189_v18  ;;  %1255 = vmatprep.subr.bf16.mxu1 %v9227_v39 }
 0x185   :  { %1051 = vmatprep.mubr.bf16.mxu0 %v13047_v0  ;;  %1358 = vmatpush1.bf16.msra.mxu0 %v9937_v62 }
 0x186   :  { %1359 = vmatprep.subr.bf16.mxu0 %v9938_v3 }
 0x187   :  { %1256 = vmatpush2.bf16.msra.mxu1 %v9225_v40  ;;  %v9240_v40 = vld [vmem:[#allocation4 + $0x280] ss:$8 sps:$4 sm:$0xff]  }
 0x188   :  { %1257 = vmatprep.subr.bf16.mxu1 %v9230_v41 }
 0x189   :  { %1360 = vmatpush1.bf16.msra.mxu0 %v9939_v9 }
 0x18a   :  { %1361 = vmatprep.subr.bf16.mxu0 %v9940_v11 }
 0x18b   :  { %1258 = vmatpush2.bf16.msra.mxu1 %v9228_v42  ;;  %v9245_v42 = vld [vmem:[#allocation4 + $0x274] ss:$8 sps:$4 sm:$0xff]  }
 0x18c   :  { %1052 = vmatmul.mubr.bf16.gmra.mxu0 %v9190_v19  ;;  %1587 = vmatprep.subr.bf16.mxu1 %v9233_v43 }
 0x18d   :  { %1362 = vmatpush1.bf16.msra.mxu0 %v9941_v12  ;;  %1381 = vmatprep.mubr.bf16.mxu0 %v13047_v0 }
 0x18e   :  { %1363 = vmatprep.subr.bf16.mxu0 %v9942_v13 }
 0x191   :  { %1364 = vmatpush1.bf16.msra.mxu0 %v9943_v15 }
 0x194   :  { %1382 = vmatmul.mubr.bf16.vlgmr.msra.gmra.mxu0 %v9191_v20 }
 0x195   :  { %1391 = vmatprep.mubr.bf16.mxu0 %v13047_v0 }
 0x19c   :  { %1392 = vmatmul.mubr.bf16.gmra.mxu0 %v9192_v24 }
 0x19d   :  { %1401 = vmatprep.mubr.bf16.mxu0 %v13047_v0 }
 0x1a4   :  { %1402 = vmatmul.mubr.bf16.gmra.mxu0 %v9193_v28  ;;  %v9236_v28 = vld [vmem:[#allocation4 + $0x2a4] ss:$8 sps:$4 sm:$0xff]  }
 0x1a5   :  { %1411 = vmatprep.mubr.bf16.mxu0 %v13047_v0 }
 0x1ac   :  { %1412 = vmatmul.mubr.bf16.gmra.mxu0 %v9194_v33 }
 0x1ad   :  { %1784 = vmatprep.mubr.bf16.mxu0 %v13047_v0 }
 0x214   :  { %v712_v44 = vpop.f32.mrf.mxu0  ;;  %v917_v45 = vpop.f32.mrf.mxu1 }
 0x215   :  { %v10405_v46 = vadd.f32 %v917_v45, %v712_v44 }
 0x216   :  { %v10407_v47 = vpop.f32.mrf.mxu0  ;;  %v10409_v48 = vpop.f32.mrf.mxu1 }
 0x218   :  { %v716_v49 = vpop.f32.mrf.mxu0  ;;  %v921_v50 = vpop.f32.mrf.mxu1 }
 0x219   :  { %v10411_v51 = vadd.f32 %v921_v50, %v716_v49  ;;  %v9243_v49 = vld [vmem:[#allocation4 + $0x270] ss:$8 sps:$4 sm:$0xff]  }
 0x21a   :  { %v10413_v52 = vpop.f32.mrf.mxu0  ;;  %v10415_v53 = vpop.f32.mrf.mxu1 }
 0x21c   :  { %v722_v54 = vpop.f32.mrf.mxu0  ;;  %v927_v55 = vpop.f32.mrf.mxu1 }
 0x21d   :  { %v10417_v56 = vadd.f32 %v927_v55, %v722_v54  ;;  %v9248_v54 = vld [vmem:[#allocation4 + $0x264] ss:$8 sps:$4 sm:$0xff]  }
 0x21e   :  { %v10419_v57 = vpop.f32.mrf.mxu0  ;;  %v10421_v58 = vpop.f32.mrf.mxu1 }
 0x220   :  { %v726_v59 = vpop.f32.mrf.mxu0  ;;  %v931_v60 = vpop.f32.mrf.mxu1 }
 0x221   :  { %v10423_v61 = vadd.f32 %v931_v60, %v726_v59  ;;  %v9246_v59 = vld [vmem:[#allocation4 + $0x260] ss:$8 sps:$4 sm:$0xff]  }
 0x222   :  { %v10425_v62 = vpop.f32.mrf.mxu0  ;;  %v10427_v63 = vpop.f32.mrf.mxu1 }
 0x224   :  { %v732_v2 = vpop.f32.mrf.mxu0  ;;  %v937_v3 = vpop.f32.mrf.mxu1 }
 0x225   :  { %v10429_v4 = vadd.f32 %v937_v3, %v732_v2  ;;  %v9251_v2 = vld [vmem:[#allocation4 + $0x254] ss:$8 sps:$4 sm:$0xff]  }
 0x226   :  { %v734_v5 = vpop.f32.mrf.mxu0  ;;  %v939_v6 = vpop.f32.mrf.mxu1 }
 0x227   :  { %v10431_v7 = vadd.f32 %v939_v6, %v734_v5 }
 0x228   :  { %v736_v8 = vpop.f32.mrf.mxu0  ;;  %v941_v9 = vpop.f32.mrf.mxu1 }
 0x229   :  { %v10433_v10 = vadd.f32 %v941_v9, %v736_v8  ;;  %v9249_v8 = vld [vmem:[#allocation4 + $0x250] ss:$8 sps:$4 sm:$0xff]   ;;  %v9254_v9 = vld [vmem:[#allocation4 + $0x244] ss:$8 sps:$4 sm:$0xff]  }
 0x22a   :  { %v10435_v11 = vpop.f32.mrf.mxu0  ;;  %v10437_v12 = vpop.f32.mrf.mxu1 }
 0x22c   :  { %v742_v13 = vpop.f32.mrf.mxu0  ;;  %v947_v14 = vpop.f32.mrf.mxu1 }
 0x22d   :  { %v10439_v15 = vadd.f32 %v947_v14, %v742_v13 }
 0x22e   :  { %v744_v16 = vpop.f32.mrf.mxu0  ;;  %v949_v17 = vpop.f32.mrf.mxu1 }
 0x22f   :  { %v10441_v18 = vadd.f32 %v949_v17, %v744_v16  ;;  %v9252_v16 = vld [vmem:[#allocation4 + $0x240] ss:$8 sps:$4 sm:$0xff]   ;;  %v9257_v17 = vld [vmem:[#allocation4 + $0x2f4] ss:$8 sps:$4 sm:$0xff]  }
 0x230   :  { %v10443_v19 = vpop.f32.mrf.mxu0 }
 0x232   :  { %v10445_v20 = vpop.f32.mrf.mxu0 }
 0x234   :  { %v1023_v21 = vpop.f32.mrf.mxu0 }
 0x236   :  { %v1025_v22 = vpop.f32.mrf.mxu0 }
 0x238   :  { %v1027_v23 = vpop.f32.mrf.mxu0 }
 0x239   :  { %v1062_v27 = vpack.c.bf16 %v1027_v23, %v1023_v21  ;;  %v9255_v23 = vld [vmem:[#allocation4 + $0x2f0] ss:$8 sps:$4 sm:$0xff]  }
 0x23a   :  { %v1029_v24 = vpop.f32.mrf.mxu0 }
 0x23b   :  { %v1063_v25 = vpack.c.bf16 %v1029_v24, %v1025_v22 }
 0x23c   :  { %v1033_v1 = vpop.f32.mrf.mxu0 }
 0x23d   :  { %7851 = vmatprep.mubr.msk.bf16.mxu1 %vm665_vm0, %v1063_v25  ;;  %v9260_v25 = vld [vmem:[#allocation4 + $0x2e4] ss:$8 sps:$4 sm:$0xff]  }
 0x23e   :  { %v1035_v29 = vpop.f32.mrf.mxu0  ;;  %1260 = vmatmul.mubr.bf16.vlgmr.msra.gmra.mxu1 %v1062_v27 }
 0x23f   :  { %1588 = vmatpush1.bf16.msra.mxu1 %v9231_v26 }
 0x240   :  { %v1037_v31 = vpop.f32.mrf.mxu0  ;;  %1589 = vmatprep.subr.bf16.mxu1 %v9236_v28  ;;  %v9263_v28 = vld [vmem:[#allocation4 + $0x2d4] ss:$8 sps:$4 sm:$0xff]  }
 0x241   :  { %v1064_v33 = vpack.c.bf16 %v1037_v31, %v1033_v1  ;;  %v9258_v1 = vld [vmem:[#allocation4 + $0x2e0] ss:$8 sps:$4 sm:$0xff]   ;;  %v9261_v31 = vld [vmem:[#allocation4 + $0x2d0] ss:$8 sps:$4 sm:$0xff]  }
 0x242   :  { %v1039_v34 = vpop.f32.mrf.mxu0 }
 0x243   :  { %v1065_v35 = vpack.c.bf16 %v1039_v34, %v1035_v29  ;;  %1590 = vmatpush1.bf16.msra.mxu1 %v9234_v30 }
 0x244   :  { %v1043_v37 = vpop.f32.mrf.mxu0  ;;  %1591 = vmatprep.subr.bf16.mxu1 %v9239_v32  ;;  %v9266_v32 = vld [vmem:[#allocation4 + $0x2c4] ss:$8 sps:$4 sm:$0xff]  }
 0x245   :  { %7852 = vmatprep.mubr.msk.bf16.mxu1 %vm665_vm0, %v1065_v35  ;;  %v9264_v35 = vld [vmem:[#allocation4 + $0x2c0] ss:$8 sps:$4 sm:$0xff]  }
 0x246   :  { %v1045_v39 = vpop.f32.mrf.mxu0  ;;  %1270 = vmatmul.mubr.bf16.gmra.mxu1 %v1064_v33 }
 0x247   :  { %1592 = vmatpush1.bf16.msra.mxu1 %v9237_v36 }
 0x248   :  { %v1047_v41 = vpop.f32.mrf.mxu0  ;;  %1593 = vmatprep.subr.bf16.mxu1 %v9242_v38 }
 0x249   :  { %v1066_v43 = vpack.c.bf16 %v1047_v41, %v1043_v37 }
 0x24a   :  { %v1049_v44 = vpop.f32.mrf.mxu0 }
 0x24b   :  { %v1067_v45 = vpack.c.bf16 %v1049_v44, %v1045_v39  ;;  %1594 = vmatpush1.bf16.msra.mxu1 %v9240_v40 }
 0x24c   :  { %v1053_v50 = vpop.f32.mrf.mxu0  ;;  %1595 = vmatprep.subr.bf16.mxu1 %v9245_v42 }
 0x24d   :  { %7853 = vmatprep.mubr.msk.bf16.mxu1 %vm665_vm0, %v1067_v45 }
 0x24e   :  { %v1055_v55 = vpop.f32.mrf.mxu0  ;;  %1280 = vmatmul.mubr.bf16.gmra.mxu1 %v1066_v43 }
 0x24f   :  { %1596 = vmatpush1.bf16.msra.mxu1 %v9243_v49 }
 0x250   :  { %v1057_v60 = vpop.f32.mrf.mxu0  ;;  %1597 = vmatprep.subr.bf16.mxu1 %v9248_v54 }
 0x251   :  { %v1068_v3 = vpack.c.bf16 %v1057_v60, %v1053_v50  ;;  %v9272_v60 = vld [vmem:[%s13069_s6 + $0x164] ss:$8 sps:$4 sm:$0xff]  }
 0x252   :  { %v1059_v5 = vpop.f32.mrf.mxu0 }
 0x253   :  { %v1069_v6 = vpack.c.bf16 %v1059_v5, %v1055_v55  ;;  %1598 = vmatpush1.bf16.msra.mxu1 %v9246_v59  ;;  %v9269_v55 = vld [vmem:[%s13069_s6 + $0x174] ss:$8 sps:$4 sm:$0xff]   ;;  %v9267_v59 = vld [vmem:[%s13069_s6 + $0x170] ss:$8 sps:$4 sm:$0xff]  }
 0x254   :  { %1599 = vmatprep.subr.bf16.mxu1 %v9251_v2  ;;  %v1383_v13 = vpop.f32.mrf.mxu0  ;;  %v9270_v2 = vld [vmem:[%s13069_s6 + $0x160] ss:$8 sps:$4 sm:$0xff]   ;;  %v9273_v5 = vld [vmem:[%s13069_s6 + $0x150] ss:$8 sps:$4 sm:$0xff]  }
 0x255   :  { %7854 = vmatprep.mubr.msk.bf16.mxu1 %vm665_vm0, %v1069_v6  ;;  %v9278_v6 = vld [vmem:[%s13069_s6 + $0x144] ss:$8 sps:$4 sm:$0xff]  }
 0x256   :  { %1290 = vmatmul.mubr.bf16.gmra.mxu1 %v1068_v3  ;;  %v1385_v14 = vpop.f32.mrf.mxu0  ;;  %v9275_v3 = vld [vmem:[%s13069_s6 + $0x154] ss:$8 sps:$4 sm:$0xff]  }
 0x257   :  { %1600 = vmatpush1.bf16.msra.mxu1 %v9249_v8  ;;  %v9276_v8 = vld [vmem:[%s13069_s6 + $0x140] ss:$8 sps:$4 sm:$0xff]  }
 0x258   :  { %1601 = vmatprep.subr.bf16.mxu1 %v9254_v9  ;;  %v1387_v21 = vpop.f32.mrf.mxu0  ;;  %v9281_v9 = vld [vmem:[%s13069_s6 + $0x134] ss:$8 sps:$4 sm:$0xff]  }
 0x259   :  { %v1422_v39 = vpack.c.bf16 %v1387_v21, %v1383_v13  ;;  %v9279_v13 = vld [vmem:[%s13069_s6 + $0x130] ss:$8 sps:$4 sm:$0xff]  }
 0x25a   :  { %v1389_v22 = vpop.f32.mrf.mxu0  ;;  %v9285_v21 = vld [vmem:[%s13069_s6 + $0x110] ss:$8 sps:$4 sm:$0xff]  }
 0x25b   :  { %1602 = vmatpush1.bf16.msra.mxu1 %v9252_v16  ;;  %v1423_v24 = vpack.c.bf16 %v1389_v22, %v1385_v14  ;;  %v9284_v14 = vld [vmem:[%s13069_s6 + $0x124] ss:$8 sps:$4 sm:$0xff]   ;;  %v9282_v16 = vld [vmem:[%s13069_s6 + $0x120] ss:$8 sps:$4 sm:$0xff]  }
 0x25c   :  { %1611 = vmatprep.subr.bf16.mxu1 %v9257_v17  ;;  %v1393_v26 = vpop.f32.mrf.mxu0  ;;  %v9287_v17 = vld [vmem:[%s13069_s6 + $0x114] ss:$8 sps:$4 sm:$0xff]   ;;  %v9290_v22 = vld [vmem:[%s13069_s6 + $0x104] ss:$8 sps:$4 sm:$0xff]  }
 0x25d   :  { %7883 = vmatprep.mubr.msk.bf16.mxu1 %vm665_vm0, %v1423_v24  ;;  %v9293_v24 = vld [vmem:[%s13069_s6 + $0x1f4] ss:$8 sps:$4 sm:$0xff]  }
 0x25e   :  { %v1395_v27 = vpop.f32.mrf.mxu0 }
 0x25f   :  { %1612 = vmatpush2.bf16.msra.mxu1 %v9255_v23  ;;  %v9288_v23 = vld [vmem:[%s13069_s6 + $0x100] ss:$8 sps:$4 sm:$0xff]  }
 0x260   :  { %1613 = vmatprep.subr.bf16.mxu1 %v9260_v25  ;;  %v1397_v29 = vpop.f32.mrf.mxu0  ;;  %v9291_v25 = vld [vmem:[%s13069_s6 + $0x1f0] ss:$8 sps:$4 sm:$0xff]  }
 0x261   :  { %v1424_v43 = vpack.c.bf16 %v1397_v29, %v1393_v26  ;;  %v9296_v26 = vld [vmem:[%s13069_s6 + $0x1e4] ss:$8 sps:$4 sm:$0xff]  }
 0x262   :  { %v1399_v30 = vpop.f32.mrf.mxu0  ;;  %v9302_v29 = vld [vmem:[%s13069_s6 + $0x1c4] ss:$8 sps:$4 sm:$0xff]  }
 0x263   :  { %1614 = vmatpush2.bf16.msra.mxu1 %v9258_v1  ;;  %v1425_v38 = vpack.c.bf16 %v1399_v30, %v1395_v27  ;;  %v9294_v27 = vld [vmem:[%s13069_s6 + $0x1e0] ss:$8 sps:$4 sm:$0xff]   ;;  %v9299_v1 = vld [vmem:[%s13069_s6 + $0x1d4] ss:$8 sps:$4 sm:$0xff]  }
 0x264   :  { %1615 = vmatprep.subr.bf16.mxu1 %v9263_v28  ;;  %v1403_v33 = vpop.f32.mrf.mxu0  ;;  %v9297_v28 = vld [vmem:[%s13069_s6 + $0x1d0] ss:$8 sps:$4 sm:$0xff]   ;;  %v9300_v30 = vld [vmem:[%s13069_s6 + $0x1c0] ss:$8 sps:$4 sm:$0xff]  }
 0x266   :  { %v1405_v34 = vpop.f32.mrf.mxu0 }
 0x267   :  { %1616 = vmatpush2.bf16.msra.mxu1 %v9261_v31  ;;  %v9305_v31 = vld [vmem:[%s13069_s6 + $0x1b4] ss:$8 sps:$4 sm:$0xff]  }
 0x268   :  { %1617 = vmatprep.subr.bf16.mxu1 %v9266_v32  ;;  %v1407_v36 = vpop.f32.mrf.mxu0  ;;  %v9303_v32 = vld [vmem:[%s13069_s6 + $0x1b0] ss:$8 sps:$4 sm:$0xff]  }
 0x269   :  { %v1426_v50 = vpack.c.bf16 %v1407_v36, %v1403_v33  ;;  %v9308_v33 = vld [vmem:[%s13069_s6 + $0x1a4] ss:$8 sps:$4 sm:$0xff]   ;;  %v9309_v36 = vld [vmem:[%s13069_s6 + $0x190] ss:$8 sps:$4 sm:$0xff]  }
 0x26a   :  { %v1409_v37 = vpop.f32.mrf.mxu0 }
 0x26b   :  { %1618 = vmatpush2.bf16.msra.mxu1 %v9264_v35  ;;  %v1427_v42 = vpack.c.bf16 %v1409_v37, %v1405_v34  ;;  %v9306_v34 = vld [vmem:[%s13069_s6 + $0x1a0] ss:$8 sps:$4 sm:$0xff]   ;;  %v9311_v35 = vld [vmem:[%s13069_s6 + $0x194] ss:$8 sps:$4 sm:$0xff]   ;;  %v9314_v37 = vld [vmem:[%s13069_s6 + $0x184] ss:$8 sps:$4 sm:$0xff]  }
 0x26c   :  { %v1413_v40 = vpop.f32.mrf.mxu0  ;;  %2112 = vmatprep.subr.bf16.mxu1 %v9269_v55 }
 0x26e   :  { %1620 = vmatmul.mubr.bf16.vlgmr.msra.gmra.mxu1 %v1422_v39  ;;  %v1415_v41 = vpop.f32.mrf.mxu0  ;;  %v951_v39 = vpop.f32.mrf.mxu1 }
 0x26f   :  { %7884 = vmatprep.mubr.msk.bf16.mxu1 %vm665_vm0, %v1425_v38  ;;  %2113 = vmatpush1.bf16.msra.mxu1 %v9267_v59  ;;  %v9312_v38 = vld [vmem:[%s13069_s6 + $0x180] ss:$8 sps:$4 sm:$0xff]  }
 0x270   :  { %v1417_v44 = vpop.f32.mrf.mxu0  ;;  %2114 = vmatprep.subr.bf16.mxu1 %v9272_v60 }
 0x271   :  { %v1428_v54 = vpack.c.bf16 %v1417_v44, %v1413_v40  ;;  %v10551_v40 = vpop.f32.mrf.mxu1 }
 0x272   :  { %v1419_v45 = vpop.f32.mrf.mxu0 }
 0x273   :  { %v1429_v49 = vpack.c.bf16 %v1419_v45, %v1415_v41  ;;  %2115 = vmatpush1.bf16.msra.mxu1 %v9270_v2 }
 0x274   :  { %2116 = vmatprep.subr.bf16.mxu1 %v9275_v3 }
 0x276   :  { %1630 = vmatmul.mubr.bf16.gmra.mxu1 %v1424_v43 }
 0x277   :  { %7885 = vmatprep.mubr.msk.bf16.mxu1 %vm665_vm0, %v1427_v42  ;;  %2117 = vmatpush1.bf16.msra.mxu1 %v9273_v5 }
 0x278   :  { %2118 = vmatprep.subr.bf16.mxu1 %v9278_v6 }
 0x27b   :  { %2119 = vmatpush1.bf16.msra.mxu1 %v9276_v8 }
 0x27c   :  { %2120 = vmatprep.subr.bf16.mxu1 %v9281_v9 }
 0x27e   :  { %1640 = vmatmul.mubr.bf16.gmra.mxu1 %v1426_v50 }
 0x27f   :  { %7886 = vmatprep.mubr.msk.bf16.mxu1 %vm665_vm0, %v1429_v49  ;;  %2121 = vmatpush1.bf16.msra.mxu1 %v9279_v13 }
 0x280   :  { %2122 = vmatprep.subr.bf16.mxu1 %v9284_v14 }
 0x283   :  { %2123 = vmatpush1.bf16.msra.mxu1 %v9282_v16 }
 0x284   :  { %2124 = vmatprep.subr.bf16.mxu1 %v9287_v17 }
 0x286   :  { %1650 = vmatmul.mubr.bf16.gmra.mxu1 %v1428_v54 }
 0x287   :  { %2125 = vmatpush1.bf16.msra.mxu1 %v9285_v21 }
 0x288   :  { %2126 = vmatprep.subr.bf16.mxu1 %v9290_v22 }
 0x28b   :  { %2127 = vmatpush1.bf16.msra.mxu1 %v9288_v23 }
 0x28c   :  { %2128 = vmatprep.subr.bf16.mxu1 %v9293_v24 }
 0x28f   :  { %2129 = vmatpush2.bf16.msra.mxu1 %v9291_v25 }
 0x290   :  { %2130 = vmatprep.subr.bf16.mxu1 %v9296_v26 }
 0x293   :  { %2131 = vmatpush2.bf16.msra.mxu1 %v9294_v27 }
 0x294   :  { %2132 = vmatprep.subr.bf16.mxu1 %v9299_v1 }
 0x297   :  { %2133 = vmatpush2.bf16.msra.mxu1 %v9297_v28 }
 0x298   :  { %2134 = vmatprep.subr.bf16.mxu1 %v9302_v29 }
 0x29b   :  { %2135 = vmatpush2.bf16.msra.mxu1 %v9300_v30 }
 0x29c   :  { %2136 = vmatprep.subr.bf16.mxu1 %v9305_v31 }
 0x29f   :  { %2137 = vmatpush2.bf16.msra.mxu1 %v9303_v32 }
 0x2a0   :  { %2138 = vmatprep.subr.bf16.mxu1 %v9308_v33 }
 0x2a3   :  { %2139 = vmatpush2.bf16.msra.mxu1 %v9306_v34 }
 0x2a4   :  { %2140 = vmatprep.subr.bf16.mxu1 %v9311_v35 }
 0x2a7   :  { %2141 = vmatpush2.bf16.msra.mxu1 %v9309_v36 }
 0x2a8   :  { %2142 = vmatprep.subr.bf16.mxu1 %v9314_v37 }
 0x2ab   :  { %2143 = vmatpush2.bf16.msra.mxu1 %v9312_v38 }
 0x2fe   :  { %v1261_v41 = vpop.f32.mrf.mxu1 }
 0x2ff   :  { %v1300_v42 = vadd.f32 %v1261_v41, %v10405_v46 }
 0x300   :  { %v10554_v43 = vpop.f32.mrf.mxu1 }
 0x302   :  { %v1265_v44 = vpop.f32.mrf.mxu1 }
 0x303   :  { %v1302_v45 = vadd.f32 %v1265_v44, %v10411_v51 }
 0x304   :  { %v10557_v49 = vpop.f32.mrf.mxu1 }
 0x306   :  { %v1271_v50 = vpop.f32.mrf.mxu1 }
 0x307   :  { %v1304_v23 = vadd.f32 %v1271_v50, %v10417_v56 }
 0x308   :  { %v10559_v54 = vpop.f32.mrf.mxu1 }
 0x30a   :  { %v1275_v55 = vpop.f32.mrf.mxu1 }
 0x30b   :  { %v1306_v30 = vadd.f32 %v1275_v55, %v10423_v61 }
 0x30c   :  { %v10561_v59 = vpop.f32.mrf.mxu1 }
 0x30e   :  { %v1281_v60 = vpop.f32.mrf.mxu1 }
 0x30f   :  { %v1308_v35 = vadd.f32 %v1281_v60, %v10429_v4 }
 0x310   :  { %v1283_v2 = vpop.f32.mrf.mxu1 }
 0x312   :  { %v1285_v3 = vpop.f32.mrf.mxu1 }
 0x314   :  { %v1287_v5 = vpop.f32.mrf.mxu1 }
 0x316   :  { %v1291_v6 = vpop.f32.mrf.mxu1 }
 0x317   :  { %v1312_v4 = vadd.f32 %v1291_v6, %v10439_v15  ;;  %v924_v6 = vadd.f32 %v10415_v53, %v10413_v52 }
 0x318   :  { %v1293_v8 = vpop.f32.mrf.mxu1 }
 0x31a   :  { %v1295_v46 = vpop.f32.mrf.mxu1 }
 0x31c   :  { %v10563_v9 = vpop.f32.mrf.mxu1 }
 0x32e   :  { %v1621_v13 = vpop.f32.mrf.mxu1 }
 0x32f   :  { %v1660_v14 = vadd.f32 %v1621_v13, %v1300_v42  ;;  %v944_v13 = vadd.f32 %v10437_v12, %v10435_v11  ;;  %v1309_v11 = vadd.f32 %v1283_v2, %v10431_v7 }
 0x330   :  { %v10565_v51 = vpop.f32.mrf.mxu1 }
 0x331   :  { %v1692_v17 = vmul.f32 0.2, %v1660_v14  ;;  %vm1676_vm1 = vcmp.gt.f32.partialorder %v1660_v14, 0.0 }
 0x332   :  { %v1625_v16 = vpop.f32.mrf.mxu1 }
 0x333   :  { %v1662_v21 = vadd.f32 %v1625_v16, %v1302_v45  ;;  %v1708_v26 = vsel %vm1676_vm1, %v1660_v14, %v1692_v17  ;;  %v1310_v45 = vadd.f32 %v1285_v3, %v10433_v10  ;;  %v952_v16 = vadd.f32 %v951_v39, %v10443_v19 }
 0x334   :  { %v10567_v22 = vpop.f32.mrf.mxu1  ;;  %v1311_v17 = vadd.f32 %v1287_v5, %v944_v13  ;;  %v954_v19 = vadd.f32 %v10551_v40, %v10445_v20  ;;  %v920_v5 = vadd.f32 %v10409_v48, %v10407_v47  ;;  %v9315_v13 = vld [vmem:[#allocation6] sm:$0xff]  }
 0x335   :  { %vm1678_vm2 = vcmp.gt.f32.partialorder %v1662_v21, 0.0  ;;  %v1694_v24 = vmul.f32 0.2, %v1662_v21  ;;  %v1314_v39 = vadd.f32 %v1295_v46, %v952_v16  ;;  %v9319_v16 = vld [vmem:[%s13069_s6 + $0x70] ss:$8 sps:$4 sm:$0xff]  }
 0x336   :  { %v1631_v25 = vpop.f32.mrf.mxu1 }
 0x337   :  { %v1710_v27 = vsel %vm1678_vm2, %v1662_v21, %v1694_v24  ;;  %v1664_v1 = vadd.f32 %v1631_v25, %v1304_v23  ;;  %v1313_v23 = vadd.f32 %v1293_v8, %v10441_v18  ;;  %v934_v25 = vadd.f32 %v10427_v63, %v10425_v62 }
 0x338   :  { %v10570_v28 = vpack.c.bf16 %v1710_v27, %v1708_v26  ;;  %v1633_v29 = vpop.f32.mrf.mxu1  ;;  %v930_v62 = vadd.f32 %v10421_v58, %v10419_v57  ;;  %v1303_v8 = vadd.f32 %v10557_v49, %v924_v6  ;;  %v1315_v27 = vadd.f32 %v10563_v9, %v954_v19  ;;  %v9334_v6 = vld [vmem:[%s13069_s6 + $0x20] ss:$8 sps:$4 sm:$0xff]   ;;  %v9339_v19 = vld [vmem:[%s13069_s6 + $0x14] ss:$8 sps:$4 sm:$0xff]  }
 0x339   :  { %v1696_v32 = vmul.f32 0.2, %v1664_v1  ;;  %vm1680_vm3 = vcmp.gt.f32.partialorder %v1664_v1, 0.0  ;;  %v1307_v63 = vadd.f32 %v10561_v59, %v934_v25  ;;  %v9328_v25 = vld [vmem:[%s13069_s6 + $0x40] ss:$8 sps:$4 sm:$0xff]   ;;  %vm3167_vm2 = vcmask 130048  }
 0x33a   :  { %v1635_v31 = vpop.f32.mrf.mxu1  ;;  %v1305_v20 = vadd.f32 %v10559_v54, %v930_v62  ;;  %v1663_v54 = vadd.f32 %v10567_v22, %v1303_v8  ;;  %v9345_v62 = vld [vmem:[%s13069_s6 + $0xf4] ss:$8 sps:$4 sm:$0xff]  }
 0x33b   :  { %v1666_v33 = vadd.f32 %v1635_v31, %v1306_v30  ;;  %v1712_v37 = vsel %vm1680_vm3, %v1664_v1, %v1696_v32  ;;  %v1301_v31 = vadd.f32 %v10554_v43, %v920_v5  ;;  %v9340_v5 = vld [vmem:[%s13069_s6] ss:$8 sps:$4 sm:$0xff]   ;;  %v9351_v8 = vld [vmem:[%s13069_s6 + $0xd4] ss:$8 sps:$4 sm:$0xff]  }
 0x33c   :  { %v1637_v34 = vpop.f32.mrf.mxu1  ;;  %v1665_v58 = vadd.f32 %v1633_v29, %v1305_v20  ;;  %v1695_v43 = vmul.f32 0.2, %v1663_v54  ;;  %vm1679_vm15 = vcmp.gt.f32.partialorder %v1663_v54, 0.0  ;;  %v9357_v20 = vld [vmem:[%s13069_s6 + $0xb4] ss:$8 sps:$4 sm:$0xff]  }
 0x33d   :  { %vm1682_vm4 = vcmp.gt.f32.partialorder %v1666_v33, 0.0  ;;  %v1698_v56 = vmul.f32 0.2, %v1666_v33  ;;  %v1667_v40 = vadd.f32 %v1637_v34, %v1307_v63  ;;  %v9343_v63 = vld [vmem:[%s13069_s6 + $0xf0] ss:$8 sps:$4 sm:$0xff]  }
 0x33e   :  { %v1641_v36 = vpop.f32.mrf.mxu1  ;;  %vm1681_vm14 = vcmp.gt.f32.partialorder %v1665_v58, 0.0 }
 0x33f   :  { %v1714_v38 = vsel %vm1682_vm4, %v1666_v33, %v1698_v56  ;;  %v1668_v41 = vadd.f32 %v1641_v36, %v1308_v35  ;;  %v1699_v33 = vmul.f32 0.2, %v1667_v40  ;;  %vm1683_vm13 = vcmp.gt.f32.partialorder %v1667_v40, 0.0 }
 0x340   :  { %v10574_v42 = vpack.c.bf16 %v1714_v38, %v1712_v37  ;;  %v1643_v44 = vpop.f32.mrf.mxu1  ;;  %v1661_v36 = vadd.f32 %v10565_v51, %v1301_v31  ;;  %v1697_v37 = vmul.f32 0.2, %v1665_v58 }
 0x341   :  { %v1700_v61 = vmul.f32 0.2, %v1668_v41  ;;  %vm1684_vm5 = vcmp.gt.f32.partialorder %v1668_v41, 0.0  ;;  %v1669_v7 = vadd.f32 %v1643_v44, %v1309_v11  ;;  %v1715_v22 = vsel %vm1683_vm13, %v1667_v40, %v1699_v33  ;;  %v9333_v11 = vld [vmem:[%s13069_s6 + $0x34] ss:$8 sps:$4 sm:$0xff]  }
 0x342   :  { %v1645_v50 = vpop.f32.mrf.mxu1  ;;  %v1693_v44 = vmul.f32 0.2, %v1661_v36  ;;  %vm1677_vm1 = vcmp.gt.f32.partialorder %v1661_v36, 0.0  ;;  %v9355_v40 = vld [vmem:[%s13069_s6 + $0xb0] ss:$8 sps:$4 sm:$0xff]  }
 0x343   :  { %v1670_v55 = vadd.f32 %v1645_v50, %v1310_v45  ;;  %v1716_v24 = vsel %vm1684_vm5, %v1668_v41, %v1700_v61  ;;  %v1701_v59 = vmul.f32 0.2, %v1669_v7  ;;  %vm1685_vm12 = vcmp.gt.f32.partialorder %v1669_v7, 0.0  ;;  %v9371_v33 = vld [vmem:[%s13069_s6 + $0x270] ss:$8 sps:$4 sm:$0xff]  }
 0x344   :  { %v1647_v14 = vpop.f32.mrf.mxu1  ;;  %v1713_v45 = vsel %vm1681_vm14, %v1665_v58, %v1697_v37  ;;  %v1711_v50 = vsel %vm1679_vm15, %v1663_v54, %v1695_v43  ;;  %v1709_v61 = vsel %vm1677_vm1, %v1661_v36, %v1693_v44  ;;  %v9364_v58 = vld [vmem:[%s13069_s6 + $0x80] ss:$8 sps:$4 sm:$0xff]   ;;  %v9379_v43 = vld [vmem:[%s13069_s6 + $0x254] ss:$8 sps:$4 sm:$0xff]  }
 0x345   :  { %vm1686_vm6 = vcmp.gt.f32.partialorder %v1670_v55, 0.0  ;;  %v1702_v60 = vmul.f32 0.2, %v1670_v55  ;;  %v1671_v26 = vadd.f32 %v1647_v14, %v1311_v17  ;;  %v1717_v38 = vsel %vm1685_vm12, %v1669_v7, %v1701_v59  ;;  %v9316_v14 = vld [vmem:[#allocation6 + $0x8] sm:$0xff]   ;;  %v9373_v59 = vld [vmem:[%s13069_s6 + $0x274] ss:$8 sps:$4 sm:$0xff]  }
 0x346   :  { %v1651_v21 = vpop.f32.mrf.mxu1  ;;  %v10612_v51 = vpack.c.bf16 %v1715_v22, %v1713_v45  ;;  %v9324_v17 = vld [vmem:[%s13069_s6 + $0x64] ss:$8 sps:$4 sm:$0xff]   ;;  %v9374_v37 = vld [vmem:[%s13069_s6 + $0x260] ss:$8 sps:$4 sm:$0xff]   ;;  %v9377_v45 = vld [vmem:[%s13069_s6 + $0x250] ss:$8 sps:$4 sm:$0xff]  }
 0x347   :  { %v1718_v10 = vsel %vm1686_vm6, %v1670_v55, %v1702_v60  ;;  %v1672_v3 = vadd.f32 %v1651_v21, %v1312_v4  ;;  %v1703_v46 = vmul.f32 0.2, %v1671_v26  ;;  %vm1687_vm9 = vcmp.gt.f32.partialorder %v1671_v26, 0.0  ;;  %v9321_v4 = vld [vmem:[%s13069_s6 + $0x74] ss:$8 sps:$4 sm:$0xff]  }
 0x348   :  { %v10585_v12 = vpack.c.bf16 %v1718_v10, %v1716_v24  ;;  %v1653_v15 = vpop.f32.mrf.mxu1  ;;  %v10616_v55 = vpack.c.bf16 %v1711_v50, %v1709_v61  ;;  %v9317_v60 = vld [vmem:[#allocation6 + $0x10] sm:$0xff]   ;;  %v9322_v21 = vld [vmem:[%s13069_s6 + $0x60] ss:$8 sps:$4 sm:$0xff]   ;;  %v9318_v24 = vld [vmem:[#allocation6 + $0x18] sm:$0xff]  }
 0x349   :  { %v1673_v18 = vadd.f32 %v1653_v15, %v1313_v23  ;;  %v1704_v52 = vmul.f32 0.2, %v1672_v3  ;;  %vm1688_vm7 = vcmp.gt.f32.partialorder %v1672_v3, 0.0  ;;  %v1719_v34 = vsel %vm1687_vm9, %v1671_v26, %v1703_v46  ;;  %v9327_v23 = vld [vmem:[%s13069_s6 + $0x54] ss:$8 sps:$4 sm:$0xff]  }
 0x34a   :  { %v1655_v2 = vpop.f32.mrf.mxu1  ;;  %v10606_v41 = vpack.c.bf16 %v1719_v34, %v1717_v38  ;;  %v9325_v10 = vld [vmem:[%s13069_s6 + $0x50] ss:$8 sps:$4 sm:$0xff]   ;;  %v9336_v15 = vld [vmem:[%s13069_s6 + $0x24] ss:$8 sps:$4 sm:$0xff]  }
 0x34b   :  { %v1674_v53 = vadd.f32 %v1655_v2, %v1314_v39  ;;  %v1705_v47 = vmul.f32 0.2, %v1673_v18  ;;  %vm1689_vm10 = vcmp.gt.f32.partialorder %v1673_v18, 0.0  ;;  %v1720_v30 = vsel %vm1688_vm7, %v1672_v3, %v1704_v52  ;;  %v9330_v3 = vld [vmem:[%s13069_s6 + $0x44] ss:$8 sps:$4 sm:$0xff]  }
 0x34c   :  { %v1657_v1 = vpop.f32.mrf.mxu1  ;;  %v9331_v26 = vld [vmem:[%s13069_s6 + $0x30] ss:$8 sps:$4 sm:$0xff]   ;;  %v9348_v7 = vld [vmem:[%s13069_s6 + $0xe4] ss:$8 sps:$4 sm:$0xff]   ;;  %v9346_v2 = vld [vmem:[%s13069_s6 + $0xe0] ss:$8 sps:$4 sm:$0xff]  }
 0x34d   :  { %vm1690_vm8 = vcmp.gt.f32.partialorder %v1674_v53, 0.0  ;;  %v1706_v48 = vmul.f32 0.2, %v1674_v53  ;;  %v1675_v57 = vadd.f32 %v1657_v1, %v1315_v27  ;;  %v1721_v35 = vsel %vm1689_vm10, %v1673_v18, %v1705_v47  ;;  %v9337_v39 = vld [vmem:[%s13069_s6 + $0x10] ss:$8 sps:$4 sm:$0xff]  }
 0x34e   :  { %v9342_v18 = vld [vmem:[%s13069_s6 + $0x4] ss:$8 sps:$4 sm:$0xff]   ;;  %v9349_v27 = vld [vmem:[%s13069_s6 + $0xd0] ss:$8 sps:$4 sm:$0xff]   ;;  %v9358_v1 = vld [vmem:[%s13069_s6 + $0xa0] ss:$8 sps:$4 sm:$0xff]  }
 0x34f   :  { %v1722_v49 = vsel %vm1690_vm8, %v1674_v53, %v1706_v48  ;;  %vm1691_vm11 = vcmp.gt.f32.partialorder %v1675_v57, 0.0  ;;  %v1707_v9 = vmul.f32 0.2, %v1675_v57  ;;  %v9354_v52 = vld [vmem:[%s13069_s6 + $0xc4] ss:$8 sps:$4 sm:$0xff]  }
 0x350   :  { %v10601_v32 = vpack.c.bf16 %v1722_v49, %v1720_v30  ;;  %v9352_v53 = vld [vmem:[%s13069_s6 + $0xc0] ss:$8 sps:$4 sm:$0xff]   ;;  %v9360_v46 = vld [vmem:[%s13069_s6 + $0xa4] ss:$8 sps:$4 sm:$0xff]   ;;  %v9363_v47 = vld [vmem:[%s13069_s6 + $0x94] ss:$8 sps:$4 sm:$0xff]  }
 0x351   :  { %v1723_v56 = vsel %vm1691_vm11, %v1675_v57, %v1707_v9  ;;  %v9361_v48 = vld [vmem:[%s13069_s6 + $0x90] ss:$8 sps:$4 sm:$0xff]   ;;  %v9366_v57 = vld [vmem:[%s13069_s6 + $0x84] ss:$8 sps:$4 sm:$0xff]   ;;  %vm3575_vm11 = vcmask 261120  }
 0x352   :  { %v10603_v29 = vpack.c.bf16 %v1723_v56, %v1721_v35  ;;  %v9376_v56 = vld [vmem:[%s13069_s6 + $0x264] ss:$8 sps:$4 sm:$0xff]  }
 0x354   :  { %1760 = vmatprep.subr.bf16.mxu0 %v10603_v29  ;;  %2407 = vmatprep.subr.bf16.mxu1 %v10603_v29 }
 0x355   :  { %1761 = vmatpush1.bf16.msra.mxu0 %v10601_v32 }
 0x356   :  { %1762 = vmatprep.subr.bf16.mxu0 %v10606_v41 }
 0x359   :  { %1763 = vmatpush1.bf16.msra.mxu0 %v10585_v12 }
 0x35a   :  { %1764 = vmatprep.subr.bf16.mxu0 %v10612_v51 }
 0x35d   :  { %1765 = vmatpush1.bf16.msra.mxu0 %v10574_v42 }
 0x35e   :  { %1766 = vmatprep.subr.bf16.mxu0 %v10616_v55 }
 0x361   :  { %1767 = vmatpush1.bf16.msra.mxu0 %v10570_v28 }
 0x362   :  { %1870 = vmatprep.subr.bf16.mxu0 %v10603_v29 }
 0x364   :  { %7889 = vmatmul.mubr.msk.bf16.vlgmr.msra.gmra.mxu0 %vm665_vm0, %v9315_v13  ;;  %v9382_v13 = vld [vmem:[%s13069_s6 + $0x244] ss:$8 sps:$4 sm:$0xff]  }
 0x365   :  { %1871 = vmatpush1.bf16.msra.mxu0 %v10601_v32  ;;  %1794 = vmatprep.mubr.bf16.mxu0 %v13047_v0 }
 0x366   :  { %1872 = vmatprep.subr.bf16.mxu0 %v10606_v41 }
 0x369   :  { %1873 = vmatpush1.bf16.msra.mxu0 %v10585_v12 }
 0x36a   :  { %1874 = vmatprep.subr.bf16.mxu0 %v10612_v51 }
 0x36c   :  { %7890 = vmatmul.mubr.msk.bf16.gmra.mxu0 %vm665_vm0, %v9316_v14 }
 0x36d   :  { %1875 = vmatpush1.bf16.msra.mxu0 %v10574_v42  ;;  %1894 = vmatprep.mubr.bf16.mxu0 %v13047_v0 }
 0x36e   :  { %1876 = vmatprep.subr.bf16.mxu0 %v10616_v55 }
 0x371   :  { %1877 = vmatpush1.bf16.msra.mxu0 %v10570_v28 }
 0x372   :  { %2325 = vmatprep.subr.bf16.mxu0 %v9321_v4  ;;  %v9380_v4 = vld [vmem:[%s13069_s6 + $0x240] ss:$8 sps:$4 sm:$0xff]  }
 0x374   :  { %7893 = vmatmul.mubr.msk.bf16.vlgmr.msra.gmra.mxu0 %vm665_vm0, %v9317_v60 }
 0x375   :  { %1904 = vmatprep.mubr.bf16.mxu0 %v13047_v0  ;;  %2326 = vmatpush1.bf16.msra.mxu0 %v9319_v16  ;;  %v9385_v16 = vld [vmem:[%s13069_s6 + $0x234] ss:$8 sps:$4 sm:$0xff]  }
 0x376   :  { %2327 = vmatprep.subr.bf16.mxu0 %v9324_v17 }
 0x379   :  { %2328 = vmatpush1.bf16.msra.mxu0 %v9322_v21 }
 0x37a   :  { %2329 = vmatprep.subr.bf16.mxu0 %v9327_v23  ;;  %v9383_v23 = vld [vmem:[%s13069_s6 + $0x230] ss:$8 sps:$4 sm:$0xff]  }
 0x37c   :  { %7894 = vmatmul.mubr.msk.bf16.gmra.mxu0 %vm665_vm0, %v9318_v24 }
 0x37d   :  { %2330 = vmatpush1.bf16.msra.mxu0 %v9325_v10 }
 0x37e   :  { %2331 = vmatprep.subr.bf16.mxu0 %v9330_v3  ;;  %v9391_v3 = vld [vmem:[%s13069_s6 + $0x224] ss:$8 sps:$4 sm:$0xff]  }
 0x381   :  { %2332 = vmatpush1.bf16.msra.mxu0 %v9328_v25 }
 0x382   :  { %2333 = vmatprep.subr.bf16.mxu0 %v9333_v11  ;;  %v9389_v11 = vld [vmem:[%s13069_s6 + $0x220] ss:$8 sps:$4 sm:$0xff]  }
 0x385   :  { %2334 = vmatpush1.bf16.msra.mxu0 %v9331_v26 }
 0x386   :  { %2335 = vmatprep.subr.bf16.mxu0 %v9336_v15  ;;  %v9397_v15 = vld [vmem:[%s13069_s6 + $0x214] ss:$8 sps:$4 sm:$0xff]  }
 0x389   :  { %2336 = vmatpush1.bf16.msra.mxu0 %v9334_v6 }
 0x38a   :  { %2337 = vmatprep.subr.bf16.mxu0 %v9339_v19 }
 0x38d   :  { %2338 = vmatpush1.bf16.msra.mxu0 %v9337_v39 }
 0x38e   :  { %2339 = vmatprep.subr.bf16.mxu0 %v9342_v18  ;;  %v9395_v18 = vld [vmem:[%s13069_s6 + $0x210] ss:$8 sps:$4 sm:$0xff]  }
 0x391   :  { %2340 = vmatpush1.bf16.msra.mxu0 %v9340_v5  ;;  %v9367_v5 = vld [vmem:[#allocation6 + $0x20] sm:$0xff]  }
 0x392   :  { %2341 = vmatprep.subr.bf16.mxu0 %v9345_v62  ;;  %v9368_v62 = vld [vmem:[#allocation6 + $0x28] sm:$0xff]  }
 0x395   :  { %2342 = vmatpush2.bf16.msra.mxu0 %v9343_v63  ;;  %v9401_v63 = vld [vmem:[%s13069_s6 + $0x200] ss:$8 sps:$4 sm:$0xff]  }
 0x396   :  { %2343 = vmatprep.subr.bf16.mxu0 %v9348_v7  ;;  %v9403_v7 = vld [vmem:[%s13069_s6 + $0x204] ss:$8 sps:$4 sm:$0xff]  }
 0x399   :  { %2344 = vmatpush2.bf16.msra.mxu0 %v9346_v2  ;;  %v9404_v2 = vld [vmem:[%s13069_s6 + $0x340] ss:$8 sps:$4 sm:$0xff]  }
 0x39a   :  { %2345 = vmatprep.subr.bf16.mxu0 %v9351_v8  ;;  %v9406_v8 = vld [vmem:[%s13069_s6 + $0x344] ss:$8 sps:$4 sm:$0xff]  }
 0x39d   :  { %2346 = vmatpush2.bf16.msra.mxu0 %v9349_v27  ;;  %v9407_v27 = vld [vmem:[%s13069_s6 + $0x2f0] ss:$8 sps:$4 sm:$0xff]  }
 0x39e   :  { %2347 = vmatprep.subr.bf16.mxu0 %v9354_v52  ;;  %v9409_v52 = vld [vmem:[%s13069_s6 + $0x2f4] ss:$8 sps:$4 sm:$0xff]  }
 0x3a1   :  { %2348 = vmatpush2.bf16.msra.mxu0 %v9352_v53  ;;  %v9410_v53 = vld [vmem:[%s13069_s6 + $0x330] ss:$8 sps:$4 sm:$0xff]  }
 0x3a2   :  { %2349 = vmatprep.subr.bf16.mxu0 %v9357_v20  ;;  %v9412_v20 = vld [vmem:[%s13069_s6 + $0x334] ss:$8 sps:$4 sm:$0xff]  }
 0x3a5   :  { %2350 = vmatpush2.bf16.msra.mxu0 %v9355_v40  ;;  %v9413_v40 = vld [vmem:[%s13069_s6 + $0x2e0] ss:$8 sps:$4 sm:$0xff]  }
 0x3a6   :  { %2351 = vmatprep.subr.bf16.mxu0 %v9360_v46  ;;  %v9415_v46 = vld [vmem:[%s13069_s6 + $0x2e4] ss:$8 sps:$4 sm:$0xff]  }
 0x3a9   :  { %2352 = vmatpush2.bf16.msra.mxu0 %v9358_v1  ;;  %v9416_v1 = vld [vmem:[%s13069_s6 + $0x320] ss:$8 sps:$4 sm:$0xff]  }
 0x3aa   :  { %2353 = vmatprep.subr.bf16.mxu0 %v9363_v47  ;;  %v9418_v47 = vld [vmem:[%s13069_s6 + $0x324] ss:$8 sps:$4 sm:$0xff]  }
 0x3ad   :  { %2354 = vmatpush2.bf16.msra.mxu0 %v9361_v48  ;;  %v9421_v48 = vld [vmem:[%s13069_s6 + $0x2d4] ss:$8 sps:$4 sm:$0xff]  }
 0x3ae   :  { %2355 = vmatprep.subr.bf16.mxu0 %v9366_v57  ;;  %v9424_v57 = vld [vmem:[%s13069_s6 + $0x314] ss:$8 sps:$4 sm:$0xff]  }
 0x3b1   :  { %2356 = vmatpush2.bf16.msra.mxu0 %v9364_v58  ;;  %v9419_v58 = vld [vmem:[%s13069_s6 + $0x2d0] ss:$8 sps:$4 sm:$0xff]  }
 0x3b2   :  { %2649 = vmatprep.subr.bf16.mxu0 %v9373_v59  ;;  %v9422_v59 = vld [vmem:[%s13069_s6 + $0x310] ss:$8 sps:$4 sm:$0xff]  }
 0x424   :  { %v1786_v30 = vpop.f32.mrf.mxu0 }
 0x426   :  { %v1788_v49 = vpop.f32.mrf.mxu0 }
 0x428   :  { %v1790_v9 = vpop.f32.mrf.mxu0 }
 0x429   :  { %v1805_v34 = vpack.c.bf16 %v1790_v9, %v1786_v30  ;;  %v9427_v30 = vld [vmem:[%s13069_s6 + $0x2c4] ss:$8 sps:$4 sm:$0xff]   ;;  %v9425_v9 = vld [vmem:[%s13069_s6 + $0x2c0] ss:$8 sps:$4 sm:$0xff]  }
 0x42a   :  { %v1792_v31 = vpop.f32.mrf.mxu0 }
 0x42b   :  { %v1806_v54 = vpack.c.bf16 %v1792_v31, %v1788_v49  ;;  %v9430_v49 = vld [vmem:[%s13069_s6 + $0x304] ss:$8 sps:$4 sm:$0xff]   ;;  %v9428_v31 = vld [vmem:[%s13069_s6 + $0x300] ss:$8 sps:$4 sm:$0xff]  }
 0x42c   :  { %v1796_v35 = vpop.f32.mrf.mxu0 }
 0x42d   :  { %2357 = vmatprep.mubr.bf16.mxu0 %v1806_v54  ;;  %v9433_v54 = vld [vmem:[%s13069_s6 + $0x2b4] ss:$8 sps:$4 sm:$0xff]  }
 0x42e   :  { %v1798_v36 = vpop.f32.mrf.mxu0  ;;  %2358 = vmatmul.mubr.bf16.vlgmr.msra.gmra.mxu0 %v1805_v34  ;;  %v9431_v34 = vld [vmem:[%s13069_s6 + $0x2b0] ss:$8 sps:$4 sm:$0xff]  }
 0x42f   :  { %2650 = vmatpush1.bf16.msra.mxu0 %v9371_v33  ;;  %v9436_v33 = vld [vmem:[%s13069_s6 + $0x3f4] ss:$8 sps:$4 sm:$0xff]  }
 0x430   :  { %v1800_v38 = vpop.f32.mrf.mxu0  ;;  %2651 = vmatprep.subr.bf16.mxu0 %v9376_v56  ;;  %v9439_v56 = vld [vmem:[%s13069_s6 + $0x2a4] ss:$8 sps:$4 sm:$0xff]  }
 0x431   :  { %v1807_v50 = vpack.c.bf16 %v1800_v38, %v1796_v35  ;;  %v9434_v35 = vld [vmem:[%s13069_s6 + $0x3f0] ss:$8 sps:$4 sm:$0xff]   ;;  %v9440_v38 = vld [vmem:[%s13069_s6 + $0x3e0] ss:$8 sps:$4 sm:$0xff]  }
 0x432   :  { %v1802_v22 = vpop.f32.mrf.mxu0 }
 0x433   :  { %v1808_v44 = vpack.c.bf16 %v1802_v22, %v1798_v36  ;;  %2652 = vmatpush1.bf16.msra.mxu0 %v9374_v37  ;;  %v9442_v36 = vld [vmem:[%s13069_s6 + $0x3e4] ss:$8 sps:$4 sm:$0xff]   ;;  %v9437_v37 = vld [vmem:[%s13069_s6 + $0x2a0] ss:$8 sps:$4 sm:$0xff]   ;;  %v9448_v22 = vld [vmem:[%s13069_s6 + $0x3d4] ss:$8 sps:$4 sm:$0xff]  }
 0x434   :  { %v1896_v61 = vpop.f32.mrf.mxu0  ;;  %2653 = vmatprep.subr.bf16.mxu0 %v9379_v43  ;;  %v9445_v43 = vld [vmem:[%s13069_s6 + $0x294] ss:$8 sps:$4 sm:$0xff]  }
 0x435   :  { %2367 = vmatprep.mubr.bf16.mxu0 %v1808_v44  ;;  %v9443_v44 = vld [vmem:[%s13069_s6 + $0x290] ss:$8 sps:$4 sm:$0xff]  }
 0x436   :  { %v1898_v14 = vpop.f32.mrf.mxu0  ;;  %2368 = vmatmul.mubr.bf16.gmra.mxu0 %v1807_v50  ;;  %v9451_v50 = vld [vmem:[%s13069_s6 + $0x284] ss:$8 sps:$4 sm:$0xff]  }
 0x437   :  { %2654 = vmatpush1.bf16.msra.mxu0 %v9377_v45  ;;  %v9446_v45 = vld [vmem:[%s13069_s6 + $0x3d0] ss:$8 sps:$4 sm:$0xff]  }
 0x438   :  { %v1900_v60 = vpop.f32.mrf.mxu0  ;;  %2655 = vmatprep.subr.bf16.mxu0 %v9382_v13  ;;  %v9449_v13 = vld [vmem:[%s13069_s6 + $0x280] ss:$8 sps:$4 sm:$0xff]  }
 0x439   :  { %v1915_v24 = vpack.c.bf16 %v1900_v60, %v1896_v61  ;;  %v9454_v61 = vld [vmem:[%s13069_s6 + $0x3c4] ss:$8 sps:$4 sm:$0xff]   ;;  %v9455_v60 = vld [vmem:[%s13069_s6 + $0x3b0] ss:$8 sps:$4 sm:$0xff]  }
 0x43a   :  { %v1902_v17 = vpop.f32.mrf.mxu0 }
 0x43b   :  { %v1916_v21 = vpack.c.bf16 %v1902_v17, %v1898_v14  ;;  %2656 = vmatpush1.bf16.msra.mxu0 %v9380_v4  ;;  %v9452_v14 = vld [vmem:[%s13069_s6 + $0x3c0] ss:$8 sps:$4 sm:$0xff]   ;;  %v9457_v4 = vld [vmem:[%s13069_s6 + $0x3b4] ss:$8 sps:$4 sm:$0xff]  }
 0x43c   :  { %v1906_v10 = vpop.f32.mrf.mxu0  ;;  %2657 = vmatprep.subr.bf16.mxu0 %v9385_v16  ;;  %v9460_v16 = vld [vmem:[%s13069_s6 + $0x3a4] ss:$8 sps:$4 sm:$0xff]   ;;  %v9458_v17 = vld [vmem:[%s13069_s6 + $0x3a0] ss:$8 sps:$4 sm:$0xff]  }
 0x43d   :  { %2144 = vmatprep.mubr.bf16.mxu1 %v1916_v21  ;;  %v9463_v21 = vld [vmem:[%s13069_s6 + $0x394] ss:$8 sps:$4 sm:$0xff]  }
 0x43e   :  { %v1908_v25 = vpop.f32.mrf.mxu0  ;;  %2145 = vmatmul.mubr.bf16.vlgmr.msra.gmra.mxu1 %v1915_v24  ;;  %v9466_v24 = vld [vmem:[%s13069_s6 + $0x384] ss:$8 sps:$4 sm:$0xff]  }
 0x43f   :  { %2408 = vmatpush1.bf16.msra.mxu1 %v10601_v32  ;;  %2658 = vmatpush1.bf16.msra.mxu0 %v9383_v23  ;;  %v9461_v23 = vld [vmem:[%s13069_s6 + $0x390] ss:$8 sps:$4 sm:$0xff]  }
 0x440   :  { %2409 = vmatprep.subr.bf16.mxu1 %v10606_v41  ;;  %v1910_v26 = vpop.f32.mrf.mxu0  ;;  %2659 = vmatprep.subr.bf16.mxu0 %v9391_v3 }
 0x441   :  { %v1917_v39 = vpack.c.bf16 %v1910_v26, %v1906_v10  ;;  %v9464_v10 = vld [vmem:[%s13069_s6 + $0x380] ss:$8 sps:$4 sm:$0xff]  }
 0x442   :  { %v1912_v6 = vpop.f32.mrf.mxu0 }
 0x443   :  { %v1918_v19 = vpack.c.bf16 %v1912_v6, %v1908_v25  ;;  %2410 = vmatpush1.bf16.msra.mxu1 %v10585_v12  ;;  %2660 = vmatpush1.bf16.msra.mxu0 %v9389_v11 }
 0x444   :  { %2411 = vmatprep.subr.bf16.mxu1 %v10612_v51  ;;  %2661 = vmatprep.subr.bf16.mxu0 %v9397_v15 }
 0x445   :  { %2154 = vmatprep.mubr.bf16.mxu1 %v1918_v19 }
 0x446   :  { %2155 = vmatmul.mubr.bf16.gmra.mxu1 %v1917_v39 }
 0x447   :  { %2412 = vmatpush1.bf16.msra.mxu1 %v10574_v42  ;;  %2431 = vmatprep.mubr.bf16.mxu1 %v13047_v0 }
 0x448   :  { %2413 = vmatprep.subr.bf16.mxu1 %v10616_v55  ;;  %2662 = vmatpush1.bf16.msra.mxu0 %v9395_v18 }
 0x449   :  { %2663 = vmatprep.subr.bf16.mxu0 %v9403_v7 }
 0x44b   :  { %2414 = vmatpush1.bf16.msra.mxu1 %v10570_v28 }
 0x44c   :  { %2739 = vmatprep.subr.bf16.mxu1 %v10603_v29  ;;  %v9369_v29 = vld [vmem:[#allocation6 + $0x30] sm:$0xff]   ;;  %2664 = vmatpush1.bf16.msra.mxu0 %v9401_v63 }
 0x44d   :  { %2665 = vmatprep.subr.bf16.mxu0 %v9409_v52 }
 0x44e   :  { %7993 = vmatmul.mubr.msk.bf16.vlgmr.msra.gmra.mxu1 %vm665_vm0, %v9367_v5 }
 0x44f   :  { %2740 = vmatpush1.bf16.msra.mxu1 %v10601_v32  ;;  %2441 = vmatprep.mubr.bf16.mxu1 %v13047_v0  ;;  %v9388_v32 = vld [vmem:[%s13069_s6 + $0x374] ss:$8 sps:$4 sm:$0xff]  }
 0x450   :  { %2741 = vmatprep.subr.bf16.mxu1 %v10606_v41  ;;  %v9392_v41 = vld [vmem:[%s13069_s6 + $0x360] ss:$8 sps:$4 sm:$0xff]   ;;  %2666 = vmatpush2.bf16.msra.mxu0 %v9407_v27 }
 0x451   :  { %2667 = vmatprep.subr.bf16.mxu0 %v9415_v46 }
 0x453   :  { %2742 = vmatpush1.bf16.msra.mxu1 %v10585_v12  ;;  %v9386_v12 = vld [vmem:[%s13069_s6 + $0x370] ss:$8 sps:$4 sm:$0xff]  }
 0x454   :  { %2743 = vmatprep.subr.bf16.mxu1 %v10612_v51  ;;  %v9370_v51 = vld [vmem:[#allocation6 + $0x38] sm:$0xff]   ;;  %2668 = vmatpush2.bf16.msra.mxu0 %v9413_v40 }
 0x455   :  { %2669 = vmatprep.subr.bf16.mxu0 %v9421_v48 }
 0x456   :  { %7994 = vmatmul.mubr.msk.bf16.gmra.mxu1 %vm665_vm0, %v9368_v62 }
 0x457   :  { %2744 = vmatpush1.bf16.msra.mxu1 %v10574_v42  ;;  %2763 = vmatprep.mubr.bf16.mxu1 %v13047_v0  ;;  %v9394_v42 = vld [vmem:[%s13069_s6 + $0x364] ss:$8 sps:$4 sm:$0xff]  }
 0x458   :  { %2745 = vmatprep.subr.bf16.mxu1 %v10616_v55  ;;  %v9398_v55 = vld [vmem:[%s13069_s6 + $0x350] ss:$8 sps:$4 sm:$0xff]   ;;  %2670 = vmatpush2.bf16.msra.mxu0 %v9419_v58 }
 0x459   :  { %2671 = vmatprep.subr.bf16.mxu0 %v9427_v30  ;;  %v10972_v58 = vld [vmem:[%s13070_s26 + $0x78] sm:$0xff]  ;;  %v10984_v30 = vld [vmem:[%s13070_s26 + $0x70] sm:$0xff] }
 0x45b   :  { %2746 = vmatpush1.bf16.msra.mxu1 %v10570_v28  ;;  %v9400_v28 = vld [vmem:[%s13069_s6 + $0x354] ss:$8 sps:$4 sm:$0xff]  }
 0x45c   :  { %2981 = vmatprep.subr.bf16.mxu1 %v9388_v32  ;;  %2672 = vmatpush2.bf16.msra.mxu0 %v9425_v9  ;;  %v10996_v9 = vld [vmem:[%s13070_s26 + $0x68] sm:$0xff] }
 0x45d   :  { %2673 = vmatprep.subr.bf16.mxu0 %v9433_v54  ;;  %v11008_v54 = vld [vmem:[%s13070_s26 + $0x60] sm:$0xff] }
 0x45e   :  { %8061 = vmatmul.mubr.msk.bf16.vlgmr.msra.gmra.mxu1 %vm665_vm0, %v9369_v29 }
 0x45f   :  { %2773 = vmatprep.mubr.bf16.mxu1 %v13047_v0  ;;  %2982 = vmatpush1.bf16.msra.mxu1 %v9386_v12 }
 0x460   :  { %2983 = vmatprep.subr.bf16.mxu1 %v9394_v42  ;;  %2674 = vmatpush2.bf16.msra.mxu0 %v9431_v34  ;;  %v11020_v34 = vld [vmem:[%s13070_s26 + $0x58] sm:$0xff] }
 0x461   :  { %2675 = vmatprep.subr.bf16.mxu0 %v9439_v56  ;;  %v11032_v56 = vld [vmem:[%s13070_s26 + $0x50] sm:$0xff] }
 0x463   :  { %2984 = vmatpush1.bf16.msra.mxu1 %v9392_v41 }
 0x464   :  { %2985 = vmatprep.subr.bf16.mxu1 %v9400_v28  ;;  %2676 = vmatpush2.bf16.msra.mxu0 %v9437_v37  ;;  %v11044_v37 = vld [vmem:[%s13070_s26 + $0x48] sm:$0xff] }
 0x465   :  { %2677 = vmatprep.subr.bf16.mxu0 %v9445_v43  ;;  %v11056_v43 = vld [vmem:[%s13070_s26 + $0x40] sm:$0xff] }
 0x466   :  { %8062 = vmatmul.mubr.msk.bf16.gmra.mxu1 %vm665_vm0, %v9370_v51 }
 0x467   :  { %2986 = vmatpush1.bf16.msra.mxu1 %v9398_v55 }
 0x468   :  { %2987 = vmatprep.subr.bf16.mxu1 %v9406_v8  ;;  %2678 = vmatpush2.bf16.msra.mxu0 %v9443_v44  ;;  %v11068_v44 = vld [vmem:[%s13070_s26 + $0x38] sm:$0xff] }
 0x469   :  { %2679 = vmatprep.subr.bf16.mxu0 %v9451_v50  ;;  %v11080_v50 = vld [vmem:[%s13070_s26 + $0x30] sm:$0xff] }
 0x46b   :  { %2988 = vmatpush1.bf16.msra.mxu1 %v9404_v2 }
 0x46c   :  { %2989 = vmatprep.subr.bf16.mxu1 %v9412_v20  ;;  %2680 = vmatpush2.bf16.msra.mxu0 %v9449_v13  ;;  %v11092_v13 = vld [vmem:[%s13070_s26 + $0x28] sm:$0xff] }
 0x46f   :  { %2990 = vmatpush1.bf16.msra.mxu1 %v9410_v53 }
 0x470   :  { %2991 = vmatprep.subr.bf16.mxu1 %v9418_v47 }
 0x473   :  { %2992 = vmatpush1.bf16.msra.mxu1 %v9416_v1 }
 0x474   :  { %2993 = vmatprep.subr.bf16.mxu1 %v9424_v57  ;;  %v10966_v57 = vld [vmem:[%s13070_s26 + $0xf8] sm:$0xff] }
 0x475   :  { %8770 = vmatprep.subr.mxu0 %v10966_v57 }
 0x477   :  { %2994 = vmatpush1.bf16.msra.mxu1 %v9422_v59  ;;  %v10978_v59 = vld [vmem:[%s13070_s26 + $0xf0] sm:$0xff] }
 0x478   :  { %2995 = vmatprep.subr.bf16.mxu1 %v9430_v49  ;;  %v10990_v49 = vld [vmem:[%s13070_s26 + $0xe8] sm:$0xff] }
 0x47b   :  { %2996 = vmatpush1.bf16.msra.mxu1 %v9428_v31  ;;  %v11002_v31 = vld [vmem:[%s13070_s26 + $0xe0] sm:$0xff] }
 0x47c   :  { %2997 = vmatprep.subr.bf16.mxu1 %v9436_v33  ;;  %v11014_v33 = vld [vmem:[%s13070_s26 + $0xd8] sm:$0xff] }
 0x47f   :  { %2998 = vmatpush2.bf16.msra.mxu1 %v9434_v35  ;;  %v11026_v35 = vld [vmem:[%s13070_s26 + $0xd0] sm:$0xff] }
 0x480   :  { %2999 = vmatprep.subr.bf16.mxu1 %v9442_v36  ;;  %v11038_v36 = vld [vmem:[%s13070_s26 + $0xc8] sm:$0xff] }
 0x483   :  { %3000 = vmatpush2.bf16.msra.mxu1 %v9440_v38  ;;  %v11050_v38 = vld [vmem:[%s13070_s26 + $0xc0] sm:$0xff] }
 0x484   :  { %3001 = vmatprep.subr.bf16.mxu1 %v9448_v22  ;;  %v11062_v22 = vld [vmem:[%s13070_s26 + $0xb8] sm:$0xff] }
 0x487   :  { %3002 = vmatpush2.bf16.msra.mxu1 %v9446_v45  ;;  %v11074_v45 = vld [vmem:[%s13070_s26 + $0xb0] sm:$0xff] }
 0x488   :  { %3003 = vmatprep.subr.bf16.mxu1 %v9454_v61  ;;  %v11086_v61 = vld [vmem:[%s13070_s26 + $0xa8] sm:$0xff] }
 0x48b   :  { %3004 = vmatpush2.bf16.msra.mxu1 %v9452_v14  ;;  %v11098_v14 = vld [vmem:[%s13070_s26 + $0xa0] sm:$0xff] }
 0x48c   :  { %3005 = vmatprep.subr.bf16.mxu1 %v9457_v4  ;;  %v11104_v4 = vld [vmem:[%s13070_s26 + $0x20] sm:$0xff] }
 0x48f   :  { %3006 = vmatpush2.bf16.msra.mxu1 %v9455_v60  ;;  %v11110_v60 = vld [vmem:[%s13070_s26 + $0x98] sm:$0xff] }
 0x490   :  { %3007 = vmatprep.subr.bf16.mxu1 %v9460_v16  ;;  %v11116_v16 = vld [vmem:[%s13070_s26 + $0x18] sm:$0xff] }
 0x493   :  { %3008 = vmatpush2.bf16.msra.mxu1 %v9458_v17  ;;  %v11122_v17 = vld [vmem:[%s13070_s26 + $0x90] sm:$0xff] }
 0x494   :  { %3009 = vmatprep.subr.bf16.mxu1 %v9463_v21  ;;  %v11128_v21 = vld [vmem:[%s13070_s26 + $0x10] sm:$0xff] }
 0x495   :  { %13071 = vst [vmem:[#allocation17_spill] sm:$0xff] %v11128_v21 }
 0x497   :  { %3010 = vmatpush2.bf16.msra.mxu1 %v9461_v23  ;;  %v11133_v23 = vld [vmem:[%s13070_s26 + $0x88] sm:$0xff] }
 0x498   :  { %3011 = vmatprep.subr.bf16.mxu1 %v9466_v24  ;;  %13072 = vst [vmem:[#allocation18_spill] sm:$0xff] %v11133_v23  ;;  %v11138_v24 = vld [vmem:[%s13070_s26 + $0x8] sm:$0xff] }
 0x499   :  { %13073 = vst [vmem:[#allocation19_spill] sm:$0xff] %v11138_v24 }
 0x49b   :  { %3012 = vmatpush2.bf16.msra.mxu1 %v9464_v10  ;;  %v11144_v10 = vld [vmem:[%s13070_s26 + $0x80] sm:$0xff] }
 0x49c   :  { %13074 = vst [vmem:[#allocation20_spill] sm:$0xff] %v11144_v10 }
 0x4fe   :  { %v10947_v3 = vpop.f32.mrf.mxu1 }
 0x500   :  { %v10949_v25 = vpop.f32.mrf.mxu1 }
 0x502   :  { %v10951_v11 = vpop.f32.mrf.mxu1 }
 0x504   :  { %v10953_v26 = vpop.f32.mrf.mxu1 }
 0x506   :  { %v10955_v15 = vpop.f32.mrf.mxu1 }
 0x508   :  { %v10957_v6 = vpop.f32.mrf.mxu1 }
 0x50a   :  { %v10959_v19 = vpop.f32.mrf.mxu1 }
 0x50c   :  { %v10961_v39 = vpop.f32.mrf.mxu1 }
 0x50e   :  { %v2433_v18 = vpop.f32.mrf.mxu1 }
 0x510   :  { %v2435_v5 = vpop.f32.mrf.mxu1 }
 0x512   :  { %v2437_v62 = vpop.f32.mrf.mxu1 }
 0x513   :  { %v2452_v12 = vpack.c.bf16 %v2437_v62, %v2433_v18  ;;  %v11150_v18 = vld [vmem:[%s13070_s26] sm:$0xff] }
 0x514   :  { %v2439_v32 = vpop.f32.mrf.mxu1  ;;  %13075 = vst [vmem:[#allocation21_spill] sm:$0xff] %v11150_v18 }
 0x515   :  { %v2453_v29 = vpack.c.bf16 %v2439_v32, %v2435_v5  ;;  %v2359_v5 = vpop.f32.mrf.mxu0 }
 0x516   :  { %v2443_v42 = vpop.f32.mrf.mxu1 }
 0x517   :  { %2681 = vmatprep.mubr.bf16.mxu0 %v2453_v29  ;;  %v2361_v62 = vpop.f32.mrf.mxu0 }
 0x518   :  { %v2445_v41 = vpop.f32.mrf.mxu1  ;;  %2682 = vmatmul.mubr.bf16.vlgmr.msra.gmra.mxu0 %v2452_v12 }
 0x519   :  { %8771 = vmatpush3.msra.mxu0 %v10972_v58  ;;  %v2363_v32 = vpop.f32.mrf.mxu0 }
 0x51a   :  { %v2447_v28 = vpop.f32.mrf.mxu1  ;;  %8772 = vmatprep.subr.mxu0 %v10978_v59 }
 0x51b   :  { %v2454_v63 = vpack.c.bf16 %v2447_v28, %v2443_v42  ;;  %8773 = vmatpush3.msra.mxu0 %v10984_v30  ;;  %v2365_v29 = vpop.f32.mrf.mxu0 }
 0x51c   :  { %v2449_v51 = vpop.f32.mrf.mxu1  ;;  %8774 = vmatprep.subr.mxu0 %v10990_v49 }
 0x51d   :  { %v2455_v55 = vpack.c.bf16 %v2449_v51, %v2445_v41  ;;  %8775 = vmatpush3.msra.mxu0 %v10996_v9  ;;  %v2369_v12 = vpop.f32.mrf.mxu0 }
 0x51e   :  { %v2765_v7 = vpop.f32.mrf.mxu1  ;;  %8776 = vmatprep.subr.mxu0 %v11002_v31 }
 0x51f   :  { %2691 = vmatprep.mubr.bf16.mxu0 %v2455_v55  ;;  %8777 = vmatpush3.msra.mxu0 %v11008_v54  ;;  %v2371_v42 = vpop.f32.mrf.mxu0 }
 0x520   :  { %2692 = vmatmul.mubr.bf16.gmra.mxu0 %v2454_v63  ;;  %v2767_v2 = vpop.f32.mrf.mxu1  ;;  %8778 = vmatprep.subr.mxu0 %v11014_v33 }
 0x521   :  { %8779 = vmatpush3.msra.mxu0 %v11020_v34  ;;  %v2373_v41 = vpop.f32.mrf.mxu0 }
 0x522   :  { %v2769_v8 = vpop.f32.mrf.mxu1  ;;  %8780 = vmatprep.subr.mxu0 %v11026_v35 }
 0x523   :  { %v2784_v53 = vpack.c.bf16 %v2769_v8, %v2765_v7  ;;  %8781 = vmatpush3.msra.mxu0 %v11032_v56  ;;  %v2375_v28 = vpop.f32.mrf.mxu0 }
 0x524   :  { %v2771_v27 = vpop.f32.mrf.mxu1  ;;  %8782 = vmatprep.subr.mxu0 %v11038_v36 }
 0x525   :  { %v2785_v52 = vpack.c.bf16 %v2771_v27, %v2767_v2  ;;  %8783 = vmatpush3.msra.mxu0 %v11044_v37 }
 0x526   :  { %v2775_v20 = vpop.f32.mrf.mxu1  ;;  %8784 = vmatprep.subr.mxu0 %v11050_v38 }
 0x527   :  { %3013 = vmatprep.mubr.bf16.mxu1 %v2785_v52  ;;  %8785 = vmatpush3.msra.mxu0 %v11056_v43 }
 0x528   :  { %v2777_v40 = vpop.f32.mrf.mxu1  ;;  %3014 = vmatmul.mubr.bf16.vlgmr.msra.gmra.mxu1 %v2784_v53  ;;  %8786 = vmatprep.subr.mxu0 %v11062_v22  ;;  %v2364_v53 = vadd.f32 %v2363_v32, %v10951_v11  ;;  %v2374_v11 = vadd.f32 %v2373_v41, %v10959_v19 }
 0x529   :  { %8787 = vmatpush3.msra.mxu0 %v11068_v44 }
 0x52a   :  { %v2779_v46 = vpop.f32.mrf.mxu1  ;;  %8788 = vmatprep.subr.mxu0 %v11074_v45 }
 0x52b   :  { %v2786_v48 = vpack.c.bf16 %v2779_v46, %v2775_v20  ;;  %8789 = vmatpush3.msra.mxu0 %v11080_v50  ;;  %v2366_v46 = vadd.f32 %v2365_v29, %v10953_v26 }
 0x52c   :  { %v2781_v1 = vpop.f32.mrf.mxu1  ;;  %8790 = vmatprep.subr.mxu0 %v11086_v61 }
 0x52d   :  { %v2787_v47 = vpack.c.bf16 %v2781_v1, %v2777_v40  ;;  %8791 = vmatpush3.msra.mxu0 %v11092_v13  ;;  %v2360_v40 = vadd.f32 %v2359_v5, %v10947_v3  ;;  %v2370_v1 = vadd.f32 %v2369_v12, %v10955_v15 }
 0x52e   :  { %8792 = vmatprep.subr.mxu0 %v11098_v14 }
 0x52f   :  { %3023 = vmatprep.mubr.bf16.mxu1 %v2787_v47  ;;  %8793 = vmatpush3.msra.mxu0 %v11104_v4 }
 0x530   :  { %3024 = vmatmul.mubr.bf16.gmra.mxu1 %v2786_v48  ;;  %8794 = vmatprep.subr.mxu0 %v11110_v60  ;;  %v2362_v48 = vadd.f32 %v2361_v62, %v10949_v25  ;;  %v2376_v25 = vadd.f32 %v2375_v28, %v10961_v39 }
 0x531   :  { %8795 = vmatpush3.msra.mxu0 %v11116_v16 }
 0x532   :  { %8796 = vmatprep.subr.mxu0 %v11122_v17 }
 0x533   :  { %8797 = vmatpush3.msra.mxu0 %v11128_v21 }
 0x534   :  { %8798 = vmatprep.subr.mxu0 %v11133_v23 }
 0x535   :  { %8799 = vmatpush3.msra.mxu0 %v11138_v24 }
 0x536   :  { %8800 = vmatprep.subr.mxu0 %v11144_v10 }
 0x537   :  { %8801 = vmatpush3.msra.mxu0 %v11150_v18 }
 0x538   :  { %8805 = vmatprep.subr.mxu0 %v10966_v57  ;;  %v2372_v57 = vadd.f32 %v2371_v42, %v10957_v6 }
 0x5d8   :  { %v2683_v51 = vpop.f32.mrf.mxu0 }
 0x5d9   :  { %v2702_v10 = vadd.f32 %v2683_v51, %v2360_v40 }
 0x5da   :  { %v2685_v55 = vpop.f32.mrf.mxu0 }
 0x5db   :  { %v2703_v32 = vadd.f32 %v2685_v55, %v2362_v48 }
 0x5dc   :  { %v2687_v63 = vpop.f32.mrf.mxu0 }
 0x5dd   :  { %v2704_v47 = vadd.f32 %v2687_v63, %v2364_v53 }
 0x5de   :  { %v2689_v7 = vpop.f32.mrf.mxu0 }
 0x5df   :  { %v2705_v24 = vadd.f32 %v2689_v7, %v2366_v46 }
 0x5e0   :  { %v2693_v2 = vpop.f32.mrf.mxu0 }
 0x5e1   :  { %v2706_v23 = vadd.f32 %v2693_v2, %v2370_v1 }
 0x5e2   :  { %v2695_v27 = vpop.f32.mrf.mxu0 }
 0x5e3   :  { %v2707_v5 = vadd.f32 %v2695_v27, %v2372_v57 }
 0x5e4   :  { %v2697_v0 = vpop.f32.mrf.mxu0 }
 0x5e5   :  { %v2708_v12 = vadd.f32 %v2697_v0, %v2374_v11 }
 0x5e6   :  { %v2699_v6 = vpop.f32.mrf.mxu0 }
 0x5e7   :  { %v2709_v55 = vadd.f32 %v2699_v6, %v2376_v25 }
 0x5e8   :  { %v3015_v8 = vpop.f32.mrf.mxu1 }
 0x5e9   :  { %v11165_v26 = vadd.f32 %v3015_v8, %v2702_v10 }
 0x5ea   :  { %v3017_v52 = vpop.f32.mrf.mxu1 }
 0x5eb   :  { %v11172_v42 = vadd.f32 %v3017_v52, %v2703_v32 }
 0x5ec   :  { %v3019_v20 = vpop.f32.mrf.mxu1 }
 0x5ed   :  { %v11162_v21 = vadd.f32 %v3019_v20, %v2704_v47 }
 0x5ee   :  { %v3021_v18 = vpop.f32.mrf.mxu1 }
 0x5ef   :  { %v11167_v15 = vadd.f32 %v3021_v18, %v2705_v24  ;;  %v3078_v51 = vadd.f32 %v11162_v21, %v11165_v26 }
 0x5f0   :  { %v3025_v3 = vpop.f32.mrf.mxu1 }
 0x5f1   :  { %v11169_v29 = vadd.f32 %v3025_v3, %v2706_v23  ;;  %v3087_v24 = vadd.f32 %v11167_v15, %v11172_v42 }
 0x5f2   :  { %v3027_v62 = vpop.f32.mrf.mxu1 }
 0x5f3   :  { %v11176_v19 = vadd.f32 %v3027_v62, %v2707_v5  ;;  %v3079_v23 = vadd.f32 %v3078_v51, %v11169_v29 }
 0x5f4   :  { %v3029_v41 = vpop.f32.mrf.mxu1 }
 0x5f5   :  { %v11181_v10 = vadd.f32 %v3029_v41, %v2708_v12  ;;  %v3088_v18 = vadd.f32 %v3087_v24, %v11176_v19 }
 0x5f6   :  { %v3031_v39 = vpop.f32.mrf.mxu1 }
 0x5f7   :  { %v3080_v0 = vadd.f32 %v3079_v23, %v11181_v10  ;;  %v11185_v28 = vadd.f32 %v3031_v39, %v2709_v55 }
 0x5f9   :  { %v3081_v63 = vrot.slane %v3080_v0, 4  ;;  %v3089_v7 = vadd.f32 %v3088_v18, %v11185_v28 }
 0x5fb   :  { %v3082_v2 = vadd.f32 %v3081_v63, %v3080_v0  ;;  %v3090_v8 = vrot.slane %v3089_v7, 4 }
 0x5fd   :  { %v3083_v27 = vrot.slane %v3082_v2, 2  ;;  %v3091_v52 = vadd.f32 %v3090_v8, %v3089_v7 }
 0x5ff   :  { %v3084_v53 = vadd.f32 %v3083_v27, %v3082_v2  ;;  %v3092_v20 = vrot.slane %v3091_v52, 2 }
 0x601   :  { %v3093_v40 = vadd.f32 %v3092_v20, %v3091_v52  ;;  %v3085_v46 = vrot.slane %v3084_v53, 1 }
 0x603   :  { %v3094_v1 = vrot.slane %v3093_v40, 1  ;;  %v3086_v48 = vadd.f32 %v3085_v46, %v3084_v53  ;;  %v3355_v46 = vld [vmem:[%s13081_s27] sm:$0x1] }
 0x605   :  { %v3095_v47 = vadd.f32 %v3094_v1, %v3093_v40 }
 0x607   :  { %3160 = vmatprep.mubr.f32.mxu0 %v3095_v47 }
 0x608   :  { %3161 = vmatmul.mubr.f32.vlgmr.msra.gmra.mxu0 %v3086_v48  ;;  %v3433_v48 = vld [vmem:[%s13028_s9] sm:$0x1] }
 0x609   :  { %8806 = vmatpush3.msra.mxu0 %v10972_v58  ;;  %v13076_v58 = vld [vmem:[#allocation17_spill] sm:$0xff] }
 0x60a   :  { %8807 = vmatprep.subr.mxu0 %v10978_v59  ;;  %v13077_v59 = vld [vmem:[#allocation18_spill] sm:$0xff] }
 0x60b   :  { %8808 = vmatpush3.msra.mxu0 %v10984_v30  ;;  %v13078_v30 = vld [vmem:[#allocation19_spill] sm:$0xff] }
 0x60c   :  { %8809 = vmatprep.subr.mxu0 %v10990_v49  ;;  %v13079_v49 = vld [vmem:[#allocation20_spill] sm:$0xff] }
 0x60d   :  { %8810 = vmatpush3.msra.mxu0 %v10996_v9  ;;  %v13080_v9 = vld [vmem:[#allocation21_spill] sm:$0xff] }
 0x60e   :  { %8811 = vmatprep.subr.mxu0 %v11002_v31  ;;  %v3045_v31 = vld [vmem:[#allocation7 + $0x18] sm:$0xff] }
 0x60f   :  { %8812 = vmatpush3.msra.mxu0 %v11008_v54  ;;  %3199 = vmatprep.subr.mxu1 %v3045_v31  ;;  %v11219_v54 = vld [vmem:[#allocation7 + $0x10] sm:$0xff] }
 0x610   :  { %8813 = vmatprep.subr.mxu0 %v11014_v33  ;;  %3200 = vmatpush1.msra.mxu1 %v11219_v54  ;;  %v11222_v33 = vld [vmem:[#allocation7 + $0x8] sm:$0xff] }
 0x611   :  { %8814 = vmatpush3.msra.mxu0 %v11020_v34  ;;  %v11224_v34 = vld [vmem:[#allocation7] sm:$0xff]  ;;  %3201 = vmatprep.subr.mxu1 %v11222_v33 }
 0x612   :  { %8815 = vmatprep.subr.mxu0 %v11026_v35  ;;  %v10107_v35 = vmov 0.0   ;;  %3202 = vmatpush1.msra.mxu1 %v11224_v34 }
 0x613   :  { %8816 = vmatpush3.msra.mxu0 %v11032_v56  ;;  %3235 = vmatprep.mubr.f32.mxu1 %v10107_v35 }
 0x614   :  { %8817 = vmatprep.subr.mxu0 %v11038_v36  ;;  %3390 = vmatprep.subr.mxu1 %v3045_v31 }
 0x615   :  { %8818 = vmatpush3.msra.mxu0 %v11044_v37 }
 0x616   :  { %8819 = vmatprep.subr.mxu0 %v11050_v38 }
 0x617   :  { %8820 = vmatpush3.msra.mxu0 %v11056_v43  ;;  %v3242_v43 = vlaneseq }
 0x618   :  { %8821 = vmatprep.subr.mxu0 %v11062_v22 }
 0x619   :  { %8822 = vmatpush3.msra.mxu0 %v11068_v44  ;;  %v3243_v22 = vshrl.u32 %v3242_v43, 7  ;;  %v9537_v43 = vld [vmem:[%s13030_s11 + $0x14] ss:$8 sps:$4 sm:$0xff]  }
 0x61a   :  { %8823 = vmatprep.subr.mxu0 %v11074_v45 }
 0x61b   :  { %8824 = vmatpush3.msra.mxu0 %v11080_v50  ;;  %v11234_v44 = vsub.s32 0, %v3243_v22  ;;  %v9535_v22 = vld [vmem:[%s13030_s11 + $0x10] ss:$8 sps:$4 sm:$0xff]  }
 0x61c   :  { %8825 = vmatprep.subr.mxu0 %v11086_v61 }
 0x61d   :  { %8826 = vmatpush3.msra.mxu0 %v11092_v13 }
 0x61e   :  { %8827 = vmatprep.subr.mxu0 %v11098_v14 }
 0x61f   :  { %8828 = vmatpush3.msra.mxu0 %v11104_v4 }
 0x620   :  { %8829 = vmatprep.subr.mxu0 %v11110_v60 }
 0x621   :  { %8830 = vmatpush3.msra.mxu0 %v11116_v16 }
 0x622   :  { %8831 = vmatprep.subr.mxu0 %v11122_v17 }
 0x623   :  { %8832 = vmatpush3.msra.mxu0 %v13076_v58  ;;  %v13082_v58 = vmov 0  }
 0x624   :  { %8833 = vmatprep.subr.mxu0 %v13077_v59  ;;  %v9517_v59 = vld [vmem:[%s13030_s11 + $0x70] ss:$8 sps:$4 sm:$0xff]  }
 0x625   :  { %8834 = vmatpush3.msra.mxu0 %v13078_v30  ;;  %v9519_v30 = vld [vmem:[%s13030_s11 + $0x74] ss:$8 sps:$4 sm:$0xff]  }
 0x626   :  { %8835 = vmatprep.subr.mxu0 %v13079_v49  ;;  %v9522_v49 = vld [vmem:[%s13030_s11 + $0x64] ss:$8 sps:$4 sm:$0xff]  }
 0x627   :  { %8836 = vmatpush3.msra.mxu0 %v13080_v9  ;;  %v9520_v9 = vld [vmem:[%s13030_s11 + $0x60] ss:$8 sps:$4 sm:$0xff]  }
 0x628   :  { %4108 = vmatprep.subr.bf16.mxu0 %v9519_v30 }
 0x6c8   :  { %v8802_v56 = vpop.f32.mrf.mxu0 }
 0x6ca   :  { %v8803_v36 = vpop.f32.mrf.mxu0 }
 0x6cb   :  { %v8804_v37 = vadd.f32 %v8803_v36, %v8802_v56  ;;  %v9531_v56 = vld [vmem:[%s13030_s11 + $0x34] ss:$8 sps:$4 sm:$0xff]   ;;  %v9529_v36 = vld [vmem:[%s13030_s11 + $0x30] ss:$8 sps:$4 sm:$0xff]  }
 0x6cd   :  { %v3166_v38 = vmul.f32 0.001953125, %v8804_v37  ;;  %v9534_v37 = vld [vmem:[%s13030_s11 + $0x24] ss:$8 sps:$4 sm:$0xff]  }
 0x6cf   :  { %8127 = vmatmul.mubr.msk.f32.vlgmr.msra.gmra.mxu1 %vm3167_vm2, %v3166_v38  ;;  %v9532_v38 = vld [vmem:[%s13030_s11 + $0x20] ss:$8 sps:$4 sm:$0xff]  }
 0x6d0   :  { %3391 = vmatpush1.msra.mxu1 %v11219_v54  ;;  %3426 = vmatprep.mubr.f32.mxu1 %v10107_v35 }
 0x6d1   :  { %3392 = vmatprep.subr.mxu1 %v11222_v33 }
 0x6d2   :  { %3393 = vmatpush1.msra.mxu1 %v11224_v34 }
 0x6d3   :  { %3465 = vmatprep.subr.mxu1 %v3045_v31  ;;  %v9525_v31 = vld [vmem:[%s13030_s11 + $0x54] ss:$8 sps:$4 sm:$0xff]  }
 0x78f   :  { %v3237_v45 = vpop.f32.mrf.mxu1 }
 0x790   :  { %v3245_v50 = vrot.slane %v3237_v45, %v11234_v44  ;;  %v9540_v45 = vld [vmem:[%s13030_s11 + $0x4] ss:$8 sps:$4 sm:$0xff]  }
 0x791   :  { %v3239_v61 = vpop.f32.mrf.mxu1 }
 0x792   :  { %v11238_v13 = vsub.f32 %v11165_v26, %v3245_v50  ;;  %v11241_v14 = vsub.f32 %v11162_v21, %v3245_v50  ;;  %v11244_v4 = vsub.f32 %v11169_v29, %v3245_v50  ;;  %v3249_v60 = vrot.slane %v3239_v61, %v11234_v44  ;;  %v9543_v61 = vld [vmem:[%s13030_s11 + $0xf4] ss:$8 sps:$4 sm:$0xff]  }
 0x793   :  { %v11248_v16 = vsub.f32 %v11181_v10, %v3245_v50  ;;  %v9538_v50 = vld [vmem:[%s13030_s11] ss:$8 sps:$4 sm:$0xff]  }
 0x794   :  { %v3258_v17 = vmul.f32 %v11238_v13, %v11238_v13  ;;  %v3260_v57 = vmul.f32 %v11241_v14, %v11241_v14  ;;  %v11255_v11 = vsub.f32 %v11172_v42, %v3249_v60  ;;  %v11258_v21 = vsub.f32 %v11167_v15, %v3249_v60 }
 0x795   :  { %v11261_v32 = vsub.f32 %v11176_v19, %v3249_v60  ;;  %v3262_v3 = vmul.f32 %v11244_v4, %v11244_v4  ;;  %v11266_v26 = vsub.f32 %v11185_v28, %v3249_v60  ;;  %v3264_v15 = vmul.f32 %v11248_v16, %v11248_v16  ;;  %v9541_v60 = vld [vmem:[%s13030_s11 + $0xf0] ss:$8 sps:$4 sm:$0xff]  }
 0x796   :  { %v3266_v5 = vadd.f32 %v3260_v57, %v3258_v17  ;;  %v3259_v29 = vmul.f32 %v11255_v11, %v11255_v11  ;;  %v3261_v25 = vmul.f32 %v11258_v21, %v11258_v21  ;;  %v9546_v17 = vld [vmem:[%s13030_s11 + $0xe4] ss:$8 sps:$4 sm:$0xff]  }
 0x797   :  { %v3263_v62 = vmul.f32 %v11261_v32, %v11261_v32  ;;  %v3265_v51 = vmul.f32 %v11266_v26, %v11266_v26 }
 0x798   :  { %v3267_v6 = vadd.f32 %v3266_v5, %v3262_v3  ;;  %v3275_v12 = vadd.f32 %v3261_v25, %v3259_v29  ;;  %v9544_v29 = vld [vmem:[%s13030_s11 + $0xe0] ss:$8 sps:$4 sm:$0xff]   ;;  %v9549_v25 = vld [vmem:[%s13030_s11 + $0xd4] ss:$8 sps:$4 sm:$0xff]  }
 0x79a   :  { %v3268_v42 = vadd.f32 %v3267_v6, %v3264_v15  ;;  %v3276_v19 = vadd.f32 %v3275_v12, %v3263_v62 }
 0x79c   :  { %v3269_v41 = vrot.slane %v3268_v42, 4  ;;  %v3277_v55 = vadd.f32 %v3276_v19, %v3265_v51 }
 0x79e   :  { %v3270_v24 = vadd.f32 %v3269_v41, %v3268_v42  ;;  %v3278_v23 = vrot.slane %v3277_v55, 4 }
 0x7a0   :  { %v3271_v10 = vrot.slane %v3270_v24, 2  ;;  %v3279_v39 = vadd.f32 %v3278_v23, %v3277_v55 }
 0x7a2   :  { %v3272_v18 = vadd.f32 %v3271_v10, %v3270_v24  ;;  %v3280_v0 = vrot.slane %v3279_v39, 2  ;;  %v9547_v24 = vld [vmem:[%s13030_s11 + $0xd0] ss:$8 sps:$4 sm:$0xff]  }
 0x7a4   :  { %v3281_v28 = vadd.f32 %v3280_v0, %v3279_v39  ;;  %v3273_v63 = vrot.slane %v3272_v18, 1 }
 0x7a6   :  { %v3282_v7 = vrot.slane %v3281_v28, 1  ;;  %v3274_v8 = vadd.f32 %v3273_v63, %v3272_v18 }
 0x7a8   :  { %v3283_v2 = vadd.f32 %v3282_v7, %v3281_v28 }
 0x7aa   :  { %3348 = vmatprep.mubr.f32.mxu0 %v3283_v2 }
 0x7ab   :  { %3349 = vmatmul.mubr.f32.vlgmr.msra.gmra.mxu0 %v3274_v8  ;;  %v9550_v8 = vld [vmem:[%s13030_s11 + $0xc0] ss:$8 sps:$4 sm:$0xff]  }
 0x7ac   :  { %4109 = vmatpush1.bf16.msra.mxu0 %v9517_v59 }
 0x7ad   :  { %4110 = vmatprep.subr.bf16.mxu0 %v9522_v49 }
 0x7b0   :  { %4111 = vmatpush1.bf16.msra.mxu0 %v9520_v9 }
 0x7b1   :  { %4112 = vmatprep.subr.bf16.mxu0 %v9525_v31 }
 0x86b   :  { %v8837_v27 = vpop.f32.mrf.mxu0 }
 0x86d   :  { %v8838_v52 = vpop.f32.mrf.mxu0 }
 0x86e   :  { %v8839_v53 = vadd.f32 %v8838_v52, %v8837_v27 }
 0x870   :  { %v3354_v20 = vmul.f32 0.001953125, %v8839_v53 }
 0x872   :  { %v3356_v40 = vadd.f32 1e-05, %v3354_v20 }
 0x874   :  { %9919 = vrsqrt.f32 %v3356_v40 }
 0x881   :  { %v9920_v1 = vpop.eup %9919 }
 0x882   :  { %v3358_v47 = vmul.f32 %v9920_v1, %v3355_v46 }
 0x884   :  { %8128 = vmatmul.mubr.msk.f32.vlgmr.msra.gmra.mxu1 %vm3167_vm2, %v3358_v47 }
 0x885   :  { %3466 = vmatpush1.msra.mxu1 %v11219_v54  ;;  %3501 = vmatprep.mubr.f32.mxu1 %v10107_v35  ;;  %v9523_v54 = vld [vmem:[%s13030_s11 + $0x50] ss:$8 sps:$4 sm:$0xff]  }
 0x886   :  { %3467 = vmatprep.subr.mxu1 %v11222_v33  ;;  %v9528_v33 = vld [vmem:[%s13030_s11 + $0x44] ss:$8 sps:$4 sm:$0xff]   ;;  %4113 = vmatpush1.bf16.msra.mxu0 %v9523_v54 }
 0x887   :  { %3468 = vmatpush1.msra.mxu1 %v11224_v34  ;;  %v9526_v34 = vld [vmem:[%s13030_s11 + $0x40] ss:$8 sps:$4 sm:$0xff]   ;;  %4114 = vmatprep.subr.bf16.mxu0 %v9528_v33 }
 0x888   :  { %8129 = vmatmul.mubr.msk.f32.vlgmr.msra.gmra.mxu1 %vm3167_vm2, %v3433_v48  ;;  %v9553_v48 = vld [vmem:[%s13030_s11 + $0xb0] ss:$8 sps:$4 sm:$0xff]  }
 0x889   :  { %3611 = vmatprep.mubr.bf16.mxu1 %v13082_v58 }
 0x88a   :  { %4115 = vmatpush1.bf16.msra.mxu0 %v9526_v34 }
 0x88b   :  { %4116 = vmatprep.subr.bf16.mxu0 %v9531_v56 }
 0x88e   :  { %4117 = vmatpush1.bf16.msra.mxu0 %v9529_v36  ;;  %v9467_v36 = vld [vmem:[#allocation9] sm:$0xff]  }
 0x88f   :  { %4118 = vmatprep.subr.bf16.mxu0 %v9534_v37  ;;  %v9471_v37 = vld [vmem:[%s13030_s11 + $0x174] ss:$8 sps:$4 sm:$0xff]  }
 0x892   :  { %4119 = vmatpush1.bf16.msra.mxu0 %v9532_v38  ;;  %v9468_v38 = vld [vmem:[#allocation9 + $0x8] sm:$0xff]  }
 0x893   :  { %4120 = vmatprep.subr.bf16.mxu0 %v9537_v43  ;;  %v9469_v43 = vld [vmem:[%s13030_s11 + $0x170] ss:$8 sps:$4 sm:$0xff]  }
 0x896   :  { %4121 = vmatpush1.bf16.msra.mxu0 %v9535_v22  ;;  %v9474_v22 = vld [vmem:[%s13030_s11 + $0x164] ss:$8 sps:$4 sm:$0xff]  }
 0x897   :  { %4122 = vmatprep.subr.bf16.mxu0 %v9540_v45  ;;  %v9472_v45 = vld [vmem:[%s13030_s11 + $0x160] ss:$8 sps:$4 sm:$0xff]  }
 0x89a   :  { %4123 = vmatpush1.bf16.msra.mxu0 %v9538_v50  ;;  %v9477_v50 = vld [vmem:[%s13030_s11 + $0x154] ss:$8 sps:$4 sm:$0xff]  }
 0x89b   :  { %4124 = vmatprep.subr.bf16.mxu0 %v9543_v61  ;;  %v9475_v61 = vld [vmem:[%s13030_s11 + $0x150] ss:$8 sps:$4 sm:$0xff]  }
 0x89e   :  { %4125 = vmatpush2.bf16.msra.mxu0 %v9541_v60  ;;  %v9480_v60 = vld [vmem:[%s13030_s11 + $0x144] ss:$8 sps:$4 sm:$0xff]  }
 0x89f   :  { %4126 = vmatprep.subr.bf16.mxu0 %v9546_v17  ;;  %v9478_v17 = vld [vmem:[%s13030_s11 + $0x140] ss:$8 sps:$4 sm:$0xff]  }
 0x8a2   :  { %4127 = vmatpush2.bf16.msra.mxu0 %v9544_v29  ;;  %v9484_v29 = vld [vmem:[%s13030_s11 + $0x120] ss:$8 sps:$4 sm:$0xff]  }
 0x8a3   :  { %4128 = vmatprep.subr.bf16.mxu0 %v9549_v25  ;;  %v9489_v25 = vld [vmem:[%s13030_s11 + $0x114] ss:$8 sps:$4 sm:$0xff]  }
 0x8a6   :  { %4129 = vmatpush2.bf16.msra.mxu0 %v9547_v24  ;;  %v9504_v24 = vld [vmem:[%s13030_s11 + $0x1c4] ss:$8 sps:$4 sm:$0xff]  }
 0x944   :  { %v3428_v57 = vpop.f32.mrf.mxu1 }
 0x945   :  { %v3511_v3 = vrot.slane %v3428_v57, %v11234_v44  ;;  %v9483_v57 = vld [vmem:[%s13030_s11 + $0x134] ss:$8 sps:$4 sm:$0xff]  }
 0x946   :  { %v3430_v5 = vpop.f32.mrf.mxu1 }
 0x947   :  { %v3515_v15 = vrot.slane %v3430_v5, %v11234_v44  ;;  %v3516_v62 = vmul.f32 %v3511_v3, %v11238_v13  ;;  %v3520_v12 = vmul.f32 %v3511_v3, %v11244_v4  ;;  %v3522_v42 = vmul.f32 %v3511_v3, %v11248_v16  ;;  %v9552_v4 = vld [vmem:[%s13030_s11 + $0xc4] ss:$8 sps:$4 sm:$0xff]  }
 0x948   :  { %v3503_v6 = vpop.f32.mrf.mxu1  ;;  %v3518_v19 = vmul.f32 %v3511_v3, %v11241_v14  ;;  %4130 = vmatprep.subr.bf16.mxu0 %v9552_v4  ;;  %v9481_v3 = vld [vmem:[%s13030_s11 + $0x130] ss:$8 sps:$4 sm:$0xff]   ;;  %v9486_v5 = vld [vmem:[%s13030_s11 + $0x124] ss:$8 sps:$4 sm:$0xff]   ;;  %v9508_v4 = vld [vmem:[%s13030_s11 + $0x1a0] ss:$8 sps:$4 sm:$0xff]  }
 0x949   :  { %v3527_v51 = vrot.slane %v3503_v6, %v11234_v44  ;;  %v3517_v41 = vmul.f32 %v3515_v15, %v11255_v11  ;;  %v3519_v23 = vmul.f32 %v3515_v15, %v11258_v21  ;;  %v3521_v14 = vmul.f32 %v3515_v15, %v11261_v32  ;;  %4131 = vmatpush2.bf16.msra.mxu0 %v9550_v8  ;;  %v9492_v6 = vld [vmem:[%s13030_s11 + $0x104] ss:$8 sps:$4 sm:$0xff]   ;;  %v9569_v8 = vld [vmem:[%s13030_s11 + $0x274] ss:$8 sps:$4 sm:$0xff]  }
 0x94a   :  { %v3505_v55 = vpop.f32.mrf.mxu1  ;;  %v3523_v16 = vmul.f32 %v3515_v15, %v11266_v26  ;;  %v9555_v26 = vld [vmem:[%s13030_s11 + $0xb4] ss:$8 sps:$4 sm:$0xff]   ;;  %v9487_v15 = vld [vmem:[%s13030_s11 + $0x110] ss:$8 sps:$4 sm:$0xff]  }
 0x94b   :  { %v3532_v10 = vadd.f32 %v3527_v51, %v3516_v62  ;;  %v3536_v13 = vadd.f32 %v3527_v51, %v3520_v12  ;;  %v3538_v39 = vadd.f32 %v3527_v51, %v3522_v42  ;;  %v3534_v11 = vadd.f32 %v3527_v51, %v3518_v19  ;;  %4132 = vmatprep.subr.bf16.mxu0 %v9555_v26  ;;  %v9490_v62 = vld [vmem:[%s13030_s11 + $0x100] ss:$8 sps:$4 sm:$0xff]   ;;  %v9495_v12 = vld [vmem:[%s13030_s11 + $0x1f4] ss:$8 sps:$4 sm:$0xff]   ;;  %v9493_v42 = vld [vmem:[%s13030_s11 + $0x1f0] ss:$8 sps:$4 sm:$0xff]  }
 0x94c   :  { %v3531_v18 = vrot.slane %v3505_v55, %v11234_v44  ;;  %v9498_v51 = vld [vmem:[%s13030_s11 + $0x1e4] ss:$8 sps:$4 sm:$0xff]   ;;  %v9496_v19 = vld [vmem:[%s13030_s11 + $0x1e0] ss:$8 sps:$4 sm:$0xff]   ;;  %v9499_v55 = vld [vmem:[%s13030_s11 + $0x1d0] ss:$8 sps:$4 sm:$0xff]  }
 0x94d   :  { %vm3544_vm3 = vcmp.gt.f32.partialorder %v3536_v13, 0.0  ;;  %vm3546_vm4 = vcmp.gt.f32.partialorder %v3538_v39, 0.0  ;;  %v3552_v0 = vmul.f32 0.2, %v3536_v13  ;;  %v3554_v28 = vmul.f32 0.2, %v3538_v39  ;;  %4133 = vmatpush2.bf16.msra.mxu0 %v9553_v48 }
 0x94e   :  { %v3533_v21 = vadd.f32 %v3531_v18, %v3517_v41  ;;  %v3535_v63 = vadd.f32 %v3531_v18, %v3519_v23  ;;  %v3537_v7 = vadd.f32 %v3531_v18, %v3521_v14  ;;  %v3539_v2 = vadd.f32 %v3531_v18, %v3523_v16  ;;  %v9501_v41 = vld [vmem:[%s13030_s11 + $0x1d4] ss:$8 sps:$4 sm:$0xff]   ;;  %v9502_v23 = vld [vmem:[%s13030_s11 + $0x1c0] ss:$8 sps:$4 sm:$0xff]   ;;  %v9511_v16 = vld [vmem:[%s13030_s11 + $0x190] ss:$8 sps:$4 sm:$0xff]  }
 0x94f   :  { %v3560_v27 = vsel %vm3544_vm3, %v3536_v13, %v3552_v0  ;;  %v3562_v32 = vsel %vm3546_vm4, %v3538_v39, %v3554_v28  ;;  %vm3540_vm5 = vcmp.gt.f32.partialorder %v3532_v10, 0.0  ;;  %vm3542_vm10 = vcmp.gt.f32.partialorder %v3534_v11, 0.0  ;;  %v9505_v13 = vld [vmem:[%s13030_s11 + $0x1b0] ss:$8 sps:$4 sm:$0xff]   ;;  %v9510_v39 = vld [vmem:[%s13030_s11 + $0x1a4] ss:$8 sps:$4 sm:$0xff]  }
 0x950   :  { %vm3545_vm6 = vcmp.gt.f32.partialorder %v3537_v7, 0.0  ;;  %vm3547_vm7 = vcmp.gt.f32.partialorder %v3539_v2, 0.0  ;;  %v3553_v52 = vmul.f32 0.2, %v3537_v7  ;;  %v3555_v53 = vmul.f32 0.2, %v3539_v2 }
 0x951   :  { %vm3541_vm8 = vcmp.gt.f32.partialorder %v3533_v21, 0.0  ;;  %vm3543_vm9 = vcmp.gt.f32.partialorder %v3535_v63, 0.0  ;;  %v3549_v20 = vmul.f32 0.2, %v3533_v21  ;;  %v3551_v1 = vmul.f32 0.2, %v3535_v63 }
 0x952   :  { %v3561_v40 = vsel %vm3545_vm6, %v3537_v7, %v3553_v52  ;;  %v3563_v46 = vsel %vm3547_vm7, %v3539_v2, %v3555_v53  ;;  %v3548_v47 = vmul.f32 0.2, %v3532_v10  ;;  %v3550_v49 = vmul.f32 0.2, %v3534_v11  ;;  %v9513_v14 = vld [vmem:[%s13030_s11 + $0x194] ss:$8 sps:$4 sm:$0xff]  }
 0x953   :  { %v11381_v59 = vpack.c.bf16 %v3563_v46, %v3561_v40  ;;  %v3557_v30 = vsel %vm3541_vm8, %v3533_v21, %v3549_v20  ;;  %v11383_v9 = vpack.c.bf16 %v3562_v32, %v3560_v27  ;;  %v3559_v31 = vsel %vm3543_vm9, %v3535_v63, %v3551_v1  ;;  %v9556_v18 = vld [vmem:[%s13030_s11 + $0xa0] ss:$8 sps:$4 sm:$0xff]   ;;  %v9558_v0 = vld [vmem:[%s13030_s11 + $0xa4] ss:$8 sps:$4 sm:$0xff]   ;;  %v9559_v21 = vld [vmem:[%s13030_s11 + $0x90] ss:$8 sps:$4 sm:$0xff]  }
 0x954   :  { %v11386_v54 = vpack.c.bf16 %v3559_v31, %v3557_v30  ;;  %v3556_v33 = vsel %vm3540_vm5, %v3532_v10, %v3548_v47  ;;  %v3558_v34 = vsel %vm3542_vm10, %v3534_v11, %v3550_v49  ;;  %v9507_v10 = vld [vmem:[%s13030_s11 + $0x1b4] ss:$8 sps:$4 sm:$0xff]   ;;  %v9516_v11 = vld [vmem:[%s13030_s11 + $0x184] ss:$8 sps:$4 sm:$0xff]   ;;  %v9514_v28 = vld [vmem:[%s13030_s11 + $0x180] ss:$8 sps:$4 sm:$0xff]   ;;  %4134 = vmatprep.subr.bf16.mxu0 %v9558_v0 }
 0x955   :  { %3591 = vmatprep.subr.bf16.mxu1 %v11381_v59  ;;  %v11392_v56 = vpack.c.bf16 %v3558_v34, %v3556_v33  ;;  %4135 = vmatpush2.bf16.msra.mxu0 %v9556_v18  ;;  %v9561_v63 = vld [vmem:[%s13030_s11 + $0x94] ss:$8 sps:$4 sm:$0xff]   ;;  %v9562_v7 = vld [vmem:[%s13030_s11 + $0x80] ss:$8 sps:$4 sm:$0xff]   ;;  %v9564_v2 = vld [vmem:[%s13030_s11 + $0x84] ss:$8 sps:$4 sm:$0xff]  }
 0x956   :  { %3592 = vmatpush1.bf16.msra.mxu1 %v11383_v9  ;;  %4136 = vmatprep.subr.bf16.mxu0 %v9561_v63  ;;  %v9567_v20 = vld [vmem:[%s13030_s11 + $0x270] ss:$8 sps:$4 sm:$0xff]   ;;  %v9572_v1 = vld [vmem:[%s13030_s11 + $0x264] ss:$8 sps:$4 sm:$0xff]   ;;  %v9570_v48 = vld [vmem:[%s13030_s11 + $0x260] ss:$8 sps:$4 sm:$0xff]  }
 0x957   :  { %3593 = vmatprep.subr.bf16.mxu1 %v11386_v54  ;;  %v9575_v49 = vld [vmem:[%s13030_s11 + $0x254] ss:$8 sps:$4 sm:$0xff]   ;;  %v9627_v18 = vld [vmem:[%s13030_s11 + $0x2c0] ss:$8 sps:$4 sm:$0xff]   ;;  %v9629_v0 = vld [vmem:[%s13030_s11 + $0x2c4] ss:$8 sps:$4 sm:$0xff]  }
 0x958   :  { %v9633_v63 = vld [vmem:[%s13030_s11 + $0x2b0] ss:$8 sps:$4 sm:$0xff]   ;;  %vm6846_vm3 = vcmask 64512   ;;  %vm7723_vm4 = vcmask 173056   ;;  %vm7733_vm5 = vcmask 1024  }
 0x959   :  { %4137 = vmatpush2.bf16.msra.mxu0 %v9559_v21  ;;  %v9632_v21 = vld [vmem:[%s13030_s11 + $0x3e4] ss:$8 sps:$4 sm:$0xff]  }
 0x95a   :  { %3594 = vmatpush1.bf16.msra.mxu1 %v11392_v56  ;;  %4138 = vmatprep.subr.bf16.mxu0 %v9564_v2  ;;  %v9636_v2 = vld [vmem:[%s13030_s11 + $0x3d0] ss:$8 sps:$4 sm:$0xff]  }
 0x95b   :  { %3679 = vmatprep.subr.bf16.mxu1 %v11381_v59 }
 0x95d   :  { %8131 = vmatmul.mubr.msk.bf16.vlgmr.msra.gmra.mxu1 %vm3575_vm11, %v9467_v36  ;;  %4139 = vmatpush2.bf16.msra.mxu0 %v9562_v7  ;;  %v9573_v36 = vld [vmem:[%s13030_s11 + $0x250] ss:$8 sps:$4 sm:$0xff]   ;;  %v9635_v7 = vld [vmem:[%s13030_s11 + $0x2b4] ss:$8 sps:$4 sm:$0xff]  }
 0x95e   :  { %3680 = vmatpush1.bf16.msra.mxu1 %v11383_v9  ;;  %3699 = vmatprep.mubr.bf16.mxu1 %v13082_v58 }
 0x95f   :  { %3681 = vmatprep.subr.bf16.mxu1 %v11386_v54  ;;  %4400 = vmatprep.subr.bf16.mxu0 %v9569_v8  ;;  %v9638_v8 = vld [vmem:[%s13030_s11 + $0x3d4] ss:$8 sps:$4 sm:$0xff]  }
 0x962   :  { %3682 = vmatpush1.bf16.msra.mxu1 %v11392_v56 }
 0x963   :  { %3905 = vmatprep.subr.bf16.mxu1 %v9471_v37  ;;  %v9581_v37 = vld [vmem:[%s13030_s11 + $0x244] ss:$8 sps:$4 sm:$0xff]  }
 0x965   :  { %8133 = vmatmul.mubr.msk.bf16.vlgmr.msra.gmra.mxu1 %vm3575_vm11, %v9468_v38  ;;  %v9579_v38 = vld [vmem:[%s13030_s11 + $0x240] ss:$8 sps:$4 sm:$0xff]  }
 0x966   :  { %3906 = vmatpush1.bf16.msra.mxu1 %v9469_v43  ;;  %v9587_v43 = vld [vmem:[%s13030_s11 + $0x234] ss:$8 sps:$4 sm:$0xff]  }
 0x967   :  { %3907 = vmatprep.subr.bf16.mxu1 %v9474_v22  ;;  %v9565_v22 = vld [vmem:[#allocation9 + $0x10] sm:$0xff]  }
 0x96a   :  { %3908 = vmatpush1.bf16.msra.mxu1 %v9472_v45  ;;  %v9585_v45 = vld [vmem:[%s13030_s11 + $0x230] ss:$8 sps:$4 sm:$0xff]  }
 0x96b   :  { %3909 = vmatprep.subr.bf16.mxu1 %v9477_v50  ;;  %v9593_v50 = vld [vmem:[%s13030_s11 + $0x224] ss:$8 sps:$4 sm:$0xff]  }
 0x96e   :  { %3910 = vmatpush1.bf16.msra.mxu1 %v9475_v61  ;;  %v9591_v61 = vld [vmem:[%s13030_s11 + $0x220] ss:$8 sps:$4 sm:$0xff]  }
 0x96f   :  { %3911 = vmatprep.subr.bf16.mxu1 %v9480_v60  ;;  %v9599_v60 = vld [vmem:[%s13030_s11 + $0x214] ss:$8 sps:$4 sm:$0xff]  }
 0x972   :  { %3912 = vmatpush1.bf16.msra.mxu1 %v9478_v17  ;;  %v9566_v17 = vld [vmem:[#allocation9 + $0x18] sm:$0xff]  }
 0x973   :  { %3913 = vmatprep.subr.bf16.mxu1 %v9483_v57  ;;  %v9597_v57 = vld [vmem:[%s13030_s11 + $0x210] ss:$8 sps:$4 sm:$0xff]  }
 0x976   :  { %3914 = vmatpush1.bf16.msra.mxu1 %v9481_v3  ;;  %v9605_v3 = vld [vmem:[%s13030_s11 + $0x204] ss:$8 sps:$4 sm:$0xff]  }
 0x977   :  { %3915 = vmatprep.subr.bf16.mxu1 %v9486_v5  ;;  %v9590_v5 = vld [vmem:[%s13030_s11 + $0x354] ss:$8 sps:$4 sm:$0xff]  }
 0x97a   :  { %3916 = vmatpush1.bf16.msra.mxu1 %v9484_v29  ;;  %v9603_v29 = vld [vmem:[%s13030_s11 + $0x200] ss:$8 sps:$4 sm:$0xff]  }
 0x97b   :  { %3917 = vmatprep.subr.bf16.mxu1 %v9489_v25  ;;  %v9611_v25 = vld [vmem:[%s13030_s11 + $0x2f4] ss:$8 sps:$4 sm:$0xff]  }
 0x97e   :  { %3918 = vmatpush1.bf16.msra.mxu1 %v9487_v15  ;;  %v9588_v15 = vld [vmem:[%s13030_s11 + $0x350] ss:$8 sps:$4 sm:$0xff]  }
 0x97f   :  { %3919 = vmatprep.subr.bf16.mxu1 %v9492_v6  ;;  %v9596_v6 = vld [vmem:[%s13030_s11 + $0x344] ss:$8 sps:$4 sm:$0xff]  }
 0x982   :  { %3920 = vmatpush1.bf16.msra.mxu1 %v9490_v62  ;;  %v9609_v62 = vld [vmem:[%s13030_s11 + $0x2f0] ss:$8 sps:$4 sm:$0xff]  }
 0x983   :  { %3921 = vmatprep.subr.bf16.mxu1 %v9495_v12  ;;  %v9617_v12 = vld [vmem:[%s13030_s11 + $0x2e4] ss:$8 sps:$4 sm:$0xff]  }
 0x986   :  { %3922 = vmatpush2.bf16.msra.mxu1 %v9493_v42  ;;  %v9594_v42 = vld [vmem:[%s13030_s11 + $0x340] ss:$8 sps:$4 sm:$0xff]  }
 0x987   :  { %3923 = vmatprep.subr.bf16.mxu1 %v9498_v51  ;;  %v9602_v51 = vld [vmem:[%s13030_s11 + $0x334] ss:$8 sps:$4 sm:$0xff]  }
 0x98a   :  { %3924 = vmatpush2.bf16.msra.mxu1 %v9496_v19  ;;  %v9615_v19 = vld [vmem:[%s13030_s11 + $0x2e0] ss:$8 sps:$4 sm:$0xff]  }
 0x98b   :  { %3925 = vmatprep.subr.bf16.mxu1 %v9501_v41  ;;  %v9623_v41 = vld [vmem:[%s13030_s11 + $0x2d4] ss:$8 sps:$4 sm:$0xff]  }
 0x98e   :  { %3926 = vmatpush2.bf16.msra.mxu1 %v9499_v55  ;;  %v9600_v55 = vld [vmem:[%s13030_s11 + $0x330] ss:$8 sps:$4 sm:$0xff]  }
 0x98f   :  { %3927 = vmatprep.subr.bf16.mxu1 %v9504_v24  ;;  %v9608_v24 = vld [vmem:[%s13030_s11 + $0x324] ss:$8 sps:$4 sm:$0xff]  }
 0x992   :  { %3928 = vmatpush2.bf16.msra.mxu1 %v9502_v23  ;;  %v9621_v23 = vld [vmem:[%s13030_s11 + $0x2d0] ss:$8 sps:$4 sm:$0xff]  }
 0x993   :  { %3929 = vmatprep.subr.bf16.mxu1 %v9507_v10  ;;  %v9606_v10 = vld [vmem:[%s13030_s11 + $0x320] ss:$8 sps:$4 sm:$0xff]  }
 0x996   :  { %3930 = vmatpush2.bf16.msra.mxu1 %v9505_v13  ;;  %v9614_v13 = vld [vmem:[%s13030_s11 + $0x314] ss:$8 sps:$4 sm:$0xff]  }
 0x997   :  { %3931 = vmatprep.subr.bf16.mxu1 %v9510_v39  ;;  %v9612_v39 = vld [vmem:[%s13030_s11 + $0x310] ss:$8 sps:$4 sm:$0xff]  }
 0x99a   :  { %3932 = vmatpush2.bf16.msra.mxu1 %v9508_v4  ;;  %v9620_v4 = vld [vmem:[%s13030_s11 + $0x304] ss:$8 sps:$4 sm:$0xff]  }
 0x99b   :  { %3933 = vmatprep.subr.bf16.mxu1 %v9513_v14  ;;  %v9618_v14 = vld [vmem:[%s13030_s11 + $0x300] ss:$8 sps:$4 sm:$0xff]  }
 0x99e   :  { %3934 = vmatpush2.bf16.msra.mxu1 %v9511_v16  ;;  %v9626_v16 = vld [vmem:[%s13030_s11 + $0x3f4] ss:$8 sps:$4 sm:$0xff]  }
 0x99f   :  { %3935 = vmatprep.subr.bf16.mxu1 %v9516_v11  ;;  %v9624_v11 = vld [vmem:[%s13030_s11 + $0x3f0] ss:$8 sps:$4 sm:$0xff]  }
 0x9a2   :  { %3936 = vmatpush2.bf16.msra.mxu1 %v9514_v28  ;;  %v9630_v28 = vld [vmem:[%s13030_s11 + $0x3e0] ss:$8 sps:$4 sm:$0xff]  }
 0x9a3   :  { %4174 = vmatprep.subr.bf16.mxu1 %v11381_v59 }
 0xa1d   :  { %v3613_v27 = vpop.f32.mrf.mxu1 }
 0xa1f   :  { %v3615_v32 = vpop.f32.mrf.mxu1 }
 0xa21   :  { %v3617_v26 = vpop.f32.mrf.mxu1 }
 0xa22   :  { %v3622_v40 = vpack.c.bf16 %v3617_v26, %v3613_v27  ;;  %v9639_v27 = vld [vmem:[%s13030_s11 + $0x2a0] ss:$8 sps:$4 sm:$0xff]  }
 0xa23   :  { %v3619_v52 = vpop.f32.mrf.mxu1  ;;  %v9642_v26 = vld [vmem:[%s13030_s11 + $0x3c0] ss:$8 sps:$4 sm:$0xff]  }
 0xa24   :  { %v3623_v53 = vpack.c.bf16 %v3619_v52, %v3615_v32  ;;  %v9641_v32 = vld [vmem:[%s13030_s11 + $0x2a4] ss:$8 sps:$4 sm:$0xff]  }
 0xa25   :  { %v3701_v46 = vpop.f32.mrf.mxu1  ;;  %v9644_v52 = vld [vmem:[%s13030_s11 + $0x3c4] ss:$8 sps:$4 sm:$0xff]  }
 0xa26   :  { %4140 = vmatprep.mubr.bf16.mxu0 %v3623_v53  ;;  %v9645_v53 = vld [vmem:[%s13030_s11 + $0x290] ss:$8 sps:$4 sm:$0xff]  }
 0xa27   :  { %v3703_v47 = vpop.f32.mrf.mxu1  ;;  %4141 = vmatmul.mubr.bf16.vlgmr.msra.gmra.mxu0 %v3622_v40  ;;  %v9648_v40 = vld [vmem:[%s13030_s11 + $0x3b0] ss:$8 sps:$4 sm:$0xff]  }
 0xa28   :  { %4401 = vmatpush1.bf16.msra.mxu0 %v9567_v20  ;;  %v9647_v20 = vld [vmem:[%s13030_s11 + $0x294] ss:$8 sps:$4 sm:$0xff]  }
 0xa29   :  { %v3705_v30 = vpop.f32.mrf.mxu1  ;;  %4402 = vmatprep.subr.bf16.mxu0 %v9572_v1  ;;  %v9651_v1 = vld [vmem:[%s13030_s11 + $0x280] ss:$8 sps:$4 sm:$0xff]  }
 0xa2a   :  { %v3710_v34 = vpack.c.bf16 %v3705_v30, %v3701_v46  ;;  %v9650_v46 = vld [vmem:[%s13030_s11 + $0x3b4] ss:$8 sps:$4 sm:$0xff]   ;;  %v9656_v30 = vld [vmem:[%s13030_s11 + $0x3a4] ss:$8 sps:$4 sm:$0xff]  }
 0xa2b   :  { %v3707_v31 = vpop.f32.mrf.mxu1 }
 0xa2c   :  { %v3711_v33 = vpack.c.bf16 %v3707_v31, %v3703_v47  ;;  %4403 = vmatpush1.bf16.msra.mxu0 %v9570_v48  ;;  %v9653_v47 = vld [vmem:[%s13030_s11 + $0x284] ss:$8 sps:$4 sm:$0xff]   ;;  %v9654_v48 = vld [vmem:[%s13030_s11 + $0x3a0] ss:$8 sps:$4 sm:$0xff]   ;;  %v9657_v31 = vld [vmem:[%s13030_s11 + $0x390] ss:$8 sps:$4 sm:$0xff]  }
 0xa2d   :  { %4404 = vmatprep.subr.bf16.mxu0 %v9575_v49  ;;  %v9659_v49 = vld [vmem:[%s13030_s11 + $0x394] ss:$8 sps:$4 sm:$0xff]  }
 0xa2e   :  { %3937 = vmatprep.mubr.bf16.mxu1 %v3711_v33  ;;  %v9660_v33 = vld [vmem:[%s13030_s11 + $0x380] ss:$8 sps:$4 sm:$0xff]  }
 0xa2f   :  { %3938 = vmatmul.mubr.bf16.vlgmr.msra.gmra.mxu1 %v3710_v34  ;;  %v9662_v34 = vld [vmem:[%s13030_s11 + $0x384] ss:$8 sps:$4 sm:$0xff]  }
 0xa30   :  { %4175 = vmatpush1.bf16.msra.mxu1 %v11383_v9  ;;  %4194 = vmatprep.mubr.bf16.mxu1 %v13082_v58 }
 0xa31   :  { %4176 = vmatprep.subr.bf16.mxu1 %v11386_v54  ;;  %4405 = vmatpush1.bf16.msra.mxu0 %v9573_v36 }
 0xa32   :  { %4406 = vmatprep.subr.bf16.mxu0 %v9581_v37 }
 0xa34   :  { %4177 = vmatpush1.bf16.msra.mxu1 %v11392_v56 }
 0xa35   :  { %4470 = vmatprep.subr.bf16.mxu1 %v11381_v59  ;;  %4407 = vmatpush1.bf16.msra.mxu0 %v9579_v38  ;;  %v9578_v59 = vld [vmem:[%s13030_s11 + $0x374] ss:$8 sps:$4 sm:$0xff]  }
 0xa36   :  { %4408 = vmatprep.subr.bf16.mxu0 %v9587_v43 }
 0xa37   :  { %8231 = vmatmul.mubr.msk.bf16.vlgmr.msra.gmra.mxu1 %vm3575_vm11, %v9565_v22 }
 0xa38   :  { %4471 = vmatpush1.bf16.msra.mxu1 %v11383_v9  ;;  %4490 = vmatprep.mubr.bf16.mxu1 %v13082_v58  ;;  %v9576_v9 = vld [vmem:[%s13030_s11 + $0x370] ss:$8 sps:$4 sm:$0xff]  }
 0xa39   :  { %4472 = vmatprep.subr.bf16.mxu1 %v11386_v54  ;;  %4409 = vmatpush1.bf16.msra.mxu0 %v9585_v45  ;;  %v9584_v54 = vld [vmem:[%s13030_s11 + $0x364] ss:$8 sps:$4 sm:$0xff]  }
 0xa3a   :  { %4410 = vmatprep.subr.bf16.mxu0 %v9593_v50 }
 0xa3c   :  { %4473 = vmatpush1.bf16.msra.mxu1 %v11392_v56  ;;  %v9582_v56 = vld [vmem:[%s13030_s11 + $0x360] ss:$8 sps:$4 sm:$0xff]  }
 0xa3d   :  { %4696 = vmatprep.subr.bf16.mxu1 %v9578_v59  ;;  %4411 = vmatpush1.bf16.msra.mxu0 %v9591_v61 }
 0xa3e   :  { %4412 = vmatprep.subr.bf16.mxu0 %v9599_v60 }
 0xa3f   :  { %8297 = vmatmul.mubr.msk.bf16.vlgmr.msra.gmra.mxu1 %vm3575_vm11, %v9566_v17 }
 0xa40   :  { %4697 = vmatpush1.bf16.msra.mxu1 %v9576_v9 }
 0xa41   :  { %4698 = vmatprep.subr.bf16.mxu1 %v9584_v54  ;;  %4413 = vmatpush1.bf16.msra.mxu0 %v9597_v57 }
 0xa42   :  { %4414 = vmatprep.subr.bf16.mxu0 %v9605_v3 }
 0xa44   :  { %4699 = vmatpush1.bf16.msra.mxu1 %v9582_v56 }
 0xa45   :  { %4700 = vmatprep.subr.bf16.mxu1 %v9590_v5  ;;  %4415 = vmatpush1.bf16.msra.mxu0 %v9603_v29  ;;  %v11732_v5 = vld [vmem:[%s13032_s13 + $0xf8] sm:$0xff] }
 0xa46   :  { %4416 = vmatprep.subr.bf16.mxu0 %v9611_v25  ;;  %v11737_v29 = vld [vmem:[%s13032_s13 + $0x78] sm:$0xff]  ;;  %v11744_v25 = vld [vmem:[%s13032_s13 + $0xf0] sm:$0xff] }
 0xa48   :  { %4701 = vmatpush1.bf16.msra.mxu1 %v9588_v15  ;;  %v11749_v15 = vld [vmem:[%s13032_s13 + $0x70] sm:$0xff] }
 0xa49   :  { %4702 = vmatprep.subr.bf16.mxu1 %v9596_v6  ;;  %4417 = vmatpush2.bf16.msra.mxu0 %v9609_v62  ;;  %v11756_v6 = vld [vmem:[%s13032_s13 + $0xe8] sm:$0xff] }
 0xa4a   :  { %4418 = vmatprep.subr.bf16.mxu0 %v9617_v12  ;;  %v11761_v62 = vld [vmem:[%s13032_s13 + $0x68] sm:$0xff]  ;;  %v11768_v12 = vld [vmem:[%s13032_s13 + $0xe0] sm:$0xff] }
 0xa4c   :  { %4703 = vmatpush1.bf16.msra.mxu1 %v9594_v42  ;;  %v11773_v42 = vld [vmem:[%s13032_s13 + $0x60] sm:$0xff] }
 0xa4d   :  { %4704 = vmatprep.subr.bf16.mxu1 %v9602_v51  ;;  %4419 = vmatpush2.bf16.msra.mxu0 %v9615_v19  ;;  %v11780_v51 = vld [vmem:[%s13032_s13 + $0xd8] sm:$0xff] }
 0xa4e   :  { %4420 = vmatprep.subr.bf16.mxu0 %v9623_v41  ;;  %v11785_v19 = vld [vmem:[%s13032_s13 + $0x58] sm:$0xff]  ;;  %v11792_v41 = vld [vmem:[%s13032_s13 + $0xd0] sm:$0xff] }
 0xa50   :  { %4705 = vmatpush1.bf16.msra.mxu1 %v9600_v55  ;;  %v11797_v55 = vld [vmem:[%s13032_s13 + $0x50] sm:$0xff] }
 0xa51   :  { %4706 = vmatprep.subr.bf16.mxu1 %v9608_v24  ;;  %4421 = vmatpush2.bf16.msra.mxu0 %v9621_v23  ;;  %v11804_v24 = vld [vmem:[%s13032_s13 + $0xc8] sm:$0xff] }
 0xa52   :  { %4422 = vmatprep.subr.bf16.mxu0 %v9629_v0  ;;  %v11810_v23 = vld [vmem:[%s13032_s13 + $0x48] sm:$0xff]  ;;  %v11863_v0 = vld [vmem:[%s13032_s13 + $0xa0] sm:$0xff] }
 0xa54   :  { %4707 = vmatpush1.bf16.msra.mxu1 %v9606_v10  ;;  %v11816_v10 = vld [vmem:[%s13032_s13 + $0xc0] sm:$0xff] }
 0xa55   :  { %4708 = vmatprep.subr.bf16.mxu1 %v9614_v13  ;;  %4423 = vmatpush2.bf16.msra.mxu0 %v9627_v18  ;;  %v11822_v13 = vld [vmem:[%s13032_s13 + $0x40] sm:$0xff]  ;;  %v11858_v18 = vld [vmem:[%s13032_s13 + $0x28] sm:$0xff] }
 0xa56   :  { %4424 = vmatprep.subr.bf16.mxu0 %v9635_v7  ;;  %v11886_v7 = vld [vmem:[%s13032_s13 + $0x90] sm:$0xff] }
 0xa58   :  { %4709 = vmatpush1.bf16.msra.mxu1 %v9612_v39  ;;  %v11828_v39 = vld [vmem:[%s13032_s13 + $0xb8] sm:$0xff] }
 0xa59   :  { %4710 = vmatprep.subr.bf16.mxu1 %v9620_v4  ;;  %4425 = vmatpush2.bf16.msra.mxu0 %v9633_v63  ;;  %v11834_v4 = vld [vmem:[%s13032_s13 + $0x38] sm:$0xff] }
 0xa5a   :  { %4426 = vmatprep.subr.bf16.mxu0 %v9641_v32  ;;  %v11880_v63 = vld [vmem:[%s13032_s13 + $0x18] sm:$0xff]  ;;  %v11910_v32 = vld [vmem:[%s13032_s13 + $0x80] sm:$0xff] }
 0xa5c   :  { %4711 = vmatpush1.bf16.msra.mxu1 %v9618_v14  ;;  %v11840_v14 = vld [vmem:[%s13032_s13 + $0xb0] sm:$0xff] }
 0xa5d   :  { %4712 = vmatprep.subr.bf16.mxu1 %v9626_v16  ;;  %4427 = vmatpush2.bf16.msra.mxu0 %v9639_v27  ;;  %v11846_v16 = vld [vmem:[%s13032_s13 + $0x30] sm:$0xff]  ;;  %v11904_v27 = vld [vmem:[%s13032_s13 + $0x8] sm:$0xff] }
 0xa5e   :  { %4428 = vmatprep.subr.bf16.mxu0 %v9647_v20 }
 0xa60   :  { %4713 = vmatpush2.bf16.msra.mxu1 %v9624_v11  ;;  %v11852_v11 = vld [vmem:[%s13032_s13 + $0xa8] sm:$0xff] }
 0xa61   :  { %4714 = vmatprep.subr.bf16.mxu1 %v9632_v21  ;;  %4429 = vmatpush2.bf16.msra.mxu0 %v9645_v53  ;;  %v11874_v21 = vld [vmem:[%s13032_s13 + $0x98] sm:$0xff] }
 0xa62   :  { %4430 = vmatprep.subr.bf16.mxu0 %v9653_v47 }
 0xa64   :  { %4715 = vmatpush2.bf16.msra.mxu1 %v9630_v28  ;;  %v11868_v28 = vld [vmem:[%s13032_s13 + $0x20] sm:$0xff] }
 0xa65   :  { %4716 = vmatprep.subr.bf16.mxu1 %v9638_v8  ;;  %4431 = vmatpush2.bf16.msra.mxu0 %v9651_v1  ;;  %v11898_v8 = vld [vmem:[%s13032_s13 + $0x88] sm:$0xff] }
 0xa66   :  { %8840 = vmatprep.subr.mxu0 %v11732_v5 }
 0xa68   :  { %4717 = vmatpush2.bf16.msra.mxu1 %v9636_v2  ;;  %v11892_v2 = vld [vmem:[%s13032_s13 + $0x10] sm:$0xff] }
 0xa69   :  { %4718 = vmatprep.subr.bf16.mxu1 %v9644_v52  ;;  %v11918_v52 = vld [vmem:[%s13032_s13] sm:$0xff] }
 0xa6c   :  { %4719 = vmatpush2.bf16.msra.mxu1 %v9642_v26  ;;  %v11912_v26 = vld [vmem:[#allocation10 + $0x38] sm:$0xff] }
 0xa6d   :  { %4720 = vmatprep.subr.bf16.mxu1 %v9650_v46 }
 0xa70   :  { %4721 = vmatpush2.bf16.msra.mxu1 %v9648_v40 }
 0xa71   :  { %4722 = vmatprep.subr.bf16.mxu1 %v9656_v30 }
 0xa74   :  { %4723 = vmatpush2.bf16.msra.mxu1 %v9654_v48 }
 0xa75   :  { %4724 = vmatprep.subr.bf16.mxu1 %v9659_v49 }
 0xa78   :  { %4725 = vmatpush2.bf16.msra.mxu1 %v9657_v31 }
 0xa79   :  { %4726 = vmatprep.subr.bf16.mxu1 %v9662_v34 }
 0xa7c   :  { %4727 = vmatpush2.bf16.msra.mxu1 %v9660_v33 }
 0xa7d   :  { %4895 = vmatprep.subr.mxu1 %v11912_v26 }
 0xae7   :  { %v4142_v53 = vpop.f32.mrf.mxu0 }
 0xae9   :  { %v4144_v20 = vpop.f32.mrf.mxu0 }
 0xaeb   :  { %v4146_v40 = vpop.f32.mrf.mxu0 }
 0xaed   :  { %v4148_v46 = vpop.f32.mrf.mxu0 }
 0xaef   :  { %v11720_v36 = vpop.f32.mrf.mxu1 }
 0xaf0   :  { %v4143_v49 = vadd.f32 %v4142_v53, %v11720_v36 }
 0xaf1   :  { %v11722_v37 = vpop.f32.mrf.mxu1 }
 0xaf3   :  { %v11724_v38 = vpop.f32.mrf.mxu1 }
 0xaf4   :  { %v4147_v31 = vadd.f32 %v4146_v40, %v11724_v38 }
 0xaf5   :  { %v11726_v43 = vpop.f32.mrf.mxu1 }
 0xaf7   :  { %v4196_v22 = vpop.f32.mrf.mxu1 }
 0xaf9   :  { %v4198_v45 = vpop.f32.mrf.mxu1 }
 0xafb   :  { %v4200_v50 = vpop.f32.mrf.mxu1 }
 0xafc   :  { %v4205_v60 = vpack.c.bf16 %v4200_v50, %v4196_v22  ;;  %v4145_v22 = vadd.f32 %v4144_v20, %v11722_v37 }
 0xafd   :  { %v4202_v59 = vpop.f32.mrf.mxu1 }
 0xafe   :  { %v4206_v61 = vpack.c.bf16 %v4202_v59, %v4198_v45  ;;  %v4149_v45 = vadd.f32 %v4148_v46, %v11726_v43 }
 0xaff   :  { %v4492_v17 = vpop.f32.mrf.mxu1 }
 0xb00   :  { %4432 = vmatprep.mubr.bf16.mxu0 %v4206_v61 }
 0xb01   :  { %4433 = vmatmul.mubr.bf16.vlgmr.msra.gmra.mxu0 %v4205_v60  ;;  %v4494_v9 = vpop.f32.mrf.mxu1 }
 0xb02   :  { %8841 = vmatpush3.msra.mxu0 %v11737_v29 }
 0xb03   :  { %v4496_v54 = vpop.f32.mrf.mxu1  ;;  %8842 = vmatprep.subr.mxu0 %v11744_v25 }
 0xb04   :  { %v4501_v56 = vpack.c.bf16 %v4496_v54, %v4492_v17  ;;  %8843 = vmatpush3.msra.mxu0 %v11749_v15 }
 0xb05   :  { %v4498_v57 = vpop.f32.mrf.mxu1  ;;  %8844 = vmatprep.subr.mxu0 %v11756_v6 }
 0xb06   :  { %v4502_v3 = vpack.c.bf16 %v4498_v57, %v4494_v9  ;;  %8845 = vmatpush3.msra.mxu0 %v11761_v62 }
 0xb07   :  { %8846 = vmatprep.subr.mxu0 %v11768_v12 }
 0xb08   :  { %4728 = vmatprep.mubr.bf16.mxu1 %v4502_v3  ;;  %8847 = vmatpush3.msra.mxu0 %v11773_v42 }
 0xb09   :  { %4729 = vmatmul.mubr.bf16.vlgmr.msra.gmra.mxu1 %v4501_v56  ;;  %8848 = vmatprep.subr.mxu0 %v11780_v51 }
 0xb0a   :  { %4935 = vmatprep.mubr.f32.mxu1 %v10107_v35  ;;  %8849 = vmatpush3.msra.mxu0 %v11785_v19 }
 0xb0b   :  { %8850 = vmatprep.subr.mxu0 %v11792_v41 }
 0xb0c   :  { %8851 = vmatpush3.msra.mxu0 %v11797_v55 }
 0xb0d   :  { %8852 = vmatprep.subr.mxu0 %v11804_v24 }
 0xb0e   :  { %8853 = vmatpush3.msra.mxu0 %v11810_v23 }
 0xb0f   :  { %8854 = vmatprep.subr.mxu0 %v11816_v10 }
 0xb10   :  { %8855 = vmatpush3.msra.mxu0 %v11822_v13 }
 0xb11   :  { %8856 = vmatprep.subr.mxu0 %v11828_v39 }
 0xb12   :  { %8857 = vmatpush3.msra.mxu0 %v11834_v4 }
 0xb13   :  { %8858 = vmatprep.subr.mxu0 %v11840_v14 }
 0xb14   :  { %8859 = vmatpush3.msra.mxu0 %v11846_v16 }
 0xb15   :  { %8860 = vmatprep.subr.mxu0 %v11852_v11 }
 0xb16   :  { %8861 = vmatpush3.msra.mxu0 %v11858_v18 }
 0xb17   :  { %8862 = vmatprep.subr.mxu0 %v11863_v0 }
 0xb18   :  { %8863 = vmatpush3.msra.mxu0 %v11868_v28 }
 0xb19   :  { %8864 = vmatprep.subr.mxu0 %v11874_v21 }
 0xb1a   :  { %8865 = vmatpush3.msra.mxu0 %v11880_v63 }
 0xb1b   :  { %8866 = vmatprep.subr.mxu0 %v11886_v7 }
 0xb1c   :  { %8867 = vmatpush3.msra.mxu0 %v11892_v2 }
 0xb1d   :  { %8868 = vmatprep.subr.mxu0 %v11898_v8 }
 0xb1e   :  { %8869 = vmatpush3.msra.mxu0 %v11904_v27 }
 0xb1f   :  { %8870 = vmatprep.subr.mxu0 %v11910_v32 }
 0xb20   :  { %8871 = vmatpush3.msra.mxu0 %v11918_v52 }
 0xb21   :  { %5149 = vmatprep.subr.mxu0 %v11912_v26 }
 0xbc1   :  { %v4434_v1 = vpop.f32.mrf.mxu0 }
 0xbc2   :  { %v4443_v50 = vadd.f32 %v4434_v1, %v4143_v49 }
 0xbc3   :  { %v4436_v47 = vpop.f32.mrf.mxu0 }
 0xbc4   :  { %v4444_v60 = vadd.f32 %v4436_v47, %v4145_v22  ;;  %v11950_v22 = vld [vmem:[#allocation10 + $0x20] sm:$0xff] }
 0xbc5   :  { %v4438_v48 = vpop.f32.mrf.mxu0 }
 0xbc6   :  { %v4445_v59 = vadd.f32 %v4438_v48, %v4147_v31 }
 0xbc7   :  { %v4440_v33 = vpop.f32.mrf.mxu0 }
 0xbc8   :  { %v4446_v17 = vadd.f32 %v4440_v33, %v4149_v45  ;;  %v11942_v33 = vld [vmem:[#allocation10 + $0x30] sm:$0xff]  ;;  %v11952_v45 = vld [vmem:[#allocation10 + $0x18] sm:$0xff] }
 0xbc9   :  { %v4730_v30 = vpop.f32.mrf.mxu1  ;;  %4896 = vmatpush1.msra.mxu1 %v11942_v33 }
 0xbca   :  { %v11929_v9 = vadd.f32 %v4730_v30, %v4443_v50  ;;  %v11954_v50 = vld [vmem:[#allocation10 + $0x10] sm:$0xff] }
 0xbcb   :  { %v4732_v34 = vpop.f32.mrf.mxu1 }
 0xbcc   :  { %v11933_v3 = vadd.f32 %v4732_v34, %v4444_v60  ;;  %v11944_v34 = vld [vmem:[#allocation10 + $0x28] sm:$0xff] }
 0xbcd   :  { %v4734_v61 = vpop.f32.mrf.mxu1  ;;  %4897 = vmatprep.subr.mxu1 %v11944_v34 }
 0xbce   :  { %v11931_v54 = vadd.f32 %v4734_v61, %v4445_v59  ;;  %4898 = vmatpush1.msra.mxu1 %v11950_v22  ;;  %v11957_v59 = vld [vmem:[#allocation10 + $0x8] sm:$0xff]  ;;  %v11961_v61 = vld [vmem:[#allocation10] sm:$0xff] }
 0xbcf   :  { %v4736_v57 = vpop.f32.mrf.mxu1  ;;  %4899 = vmatprep.subr.mxu1 %v11952_v45 }
 0xbd0   :  { %v4783_v36 = vadd.f32 %v11931_v54, %v11929_v9  ;;  %v11937_v38 = vadd.f32 %v4736_v57, %v4446_v17  ;;  %4900 = vmatpush1.msra.mxu1 %v11954_v50 }
 0xbd1   :  { %4901 = vmatprep.subr.mxu1 %v11957_v59 }
 0xbd2   :  { %v4784_v37 = vrot.slane %v4783_v36, 4  ;;  %v4790_v43 = vadd.f32 %v11937_v38, %v11933_v3  ;;  %4902 = vmatpush1.msra.mxu1 %v11961_v61 }
 0xbd3   :  { %8875 = vmatprep.subr.mxu1 %v11732_v5 }
 0xbd4   :  { %v4785_v56 = vadd.f32 %v4784_v37, %v4783_v36  ;;  %v4791_v53 = vrot.slane %v4790_v43, 4 }
 0xbd6   :  { %v4786_v20 = vrot.slane %v4785_v56, 2  ;;  %v4792_v40 = vadd.f32 %v4791_v53, %v4790_v43 }
 0xbd8   :  { %v4787_v46 = vadd.f32 %v4786_v20, %v4785_v56  ;;  %v4793_v1 = vrot.slane %v4792_v40, 2 }
 0xbda   :  { %v4794_v47 = vadd.f32 %v4793_v1, %v4792_v40  ;;  %v4788_v48 = vrot.slane %v4787_v46, 1 }
 0xbdc   :  { %v4795_v30 = vrot.slane %v4794_v47, 1  ;;  %v4789_v31 = vadd.f32 %v4788_v48, %v4787_v46 }
 0xbde   :  { %v4796_v49 = vadd.f32 %v4795_v30, %v4794_v47 }
 0xbe0   :  { %4861 = vmatprep.mubr.f32.mxu0 %v4796_v49 }
 0xbe1   :  { %4862 = vmatmul.mubr.f32.vlgmr.msra.gmra.mxu0 %v4789_v31 }
 0xbe2   :  { %5189 = vmatprep.mubr.f32.mxu0 %v10107_v35  ;;  %5150 = vmatpush1.msra.mxu0 %v11942_v33 }
 0xbe3   :  { %5151 = vmatprep.subr.mxu0 %v11944_v34 }
 0xbe4   :  { %5152 = vmatpush1.msra.mxu0 %v11950_v22 }
 0xbe5   :  { %5153 = vmatprep.subr.mxu0 %v11952_v45 }
 0xbe6   :  { %5154 = vmatpush1.msra.mxu0 %v11954_v50 }
 0xbe7   :  { %5155 = vmatprep.subr.mxu0 %v11957_v59 }
 0xbe8   :  { %5156 = vmatpush1.msra.mxu0 %v11961_v61 }
 0xca1   :  { %v8872_v60 = vpop.f32.mrf.mxu0 }
 0xca3   :  { %v8873_v17 = vpop.f32.mrf.mxu0 }
 0xca4   :  { %v8874_v57 = vadd.f32 %v8873_v17, %v8872_v60 }
 0xca6   :  { %v4867_v36 = vmul.f32 0.0078125, %v8874_v57 }
 0xca8   :  { %8362 = vmatmul.mubr.msk.f32.vlgmr.msra.gmra.mxu1 %vm3575_vm11, %v4867_v36  ;;  %v9665_v36 = vld [vmem:[%s13036_s17 + $0x174] ss:$8 sps:$4 sm:$0xff]  }
 0xca9   :  { %8876 = vmatpush3.msra.mxu1 %v11737_v29 }
 0xcaa   :  { %8877 = vmatprep.subr.mxu1 %v11744_v25 }
 0xcab   :  { %8878 = vmatpush3.msra.mxu1 %v11749_v15 }
 0xcac   :  { %8879 = vmatprep.subr.mxu1 %v11756_v6 }
 0xcad   :  { %8880 = vmatpush3.msra.mxu1 %v11761_v62 }
 0xcae   :  { %8881 = vmatprep.subr.mxu1 %v11768_v12 }
 0xcaf   :  { %8882 = vmatpush3.msra.mxu1 %v11773_v42 }
 0xcb0   :  { %8883 = vmatprep.subr.mxu1 %v11780_v51 }
 0xcb1   :  { %8884 = vmatpush3.msra.mxu1 %v11785_v19 }
 0xcb2   :  { %8885 = vmatprep.subr.mxu1 %v11792_v41 }
 0xcb3   :  { %8886 = vmatpush3.msra.mxu1 %v11797_v55 }
 0xcb4   :  { %8887 = vmatprep.subr.mxu1 %v11804_v24 }
 0xcb5   :  { %8888 = vmatpush3.msra.mxu1 %v11810_v23 }
 0xcb6   :  { %8889 = vmatprep.subr.mxu1 %v11816_v10 }
 0xcb7   :  { %8890 = vmatpush3.msra.mxu1 %v11822_v13 }
 0xcb8   :  { %8891 = vmatprep.subr.mxu1 %v11828_v39 }
 0xcb9   :  { %8892 = vmatpush3.msra.mxu1 %v11834_v4 }
 0xcba   :  { %8893 = vmatprep.subr.mxu1 %v11840_v14 }
 0xcbb   :  { %8894 = vmatpush3.msra.mxu1 %v11846_v16 }
 0xcbc   :  { %8895 = vmatprep.subr.mxu1 %v11852_v11 }
 0xcbd   :  { %8896 = vmatpush3.msra.mxu1 %v11858_v18 }
 0xcbe   :  { %8897 = vmatprep.subr.mxu1 %v11863_v0 }
 0xcbf   :  { %8898 = vmatpush3.msra.mxu1 %v11868_v28 }
 0xcc0   :  { %8899 = vmatprep.subr.mxu1 %v11874_v21 }
 0xcc1   :  { %8900 = vmatpush3.msra.mxu1 %v11880_v63 }
 0xcc2   :  { %8901 = vmatprep.subr.mxu1 %v11886_v7  ;;  %v5121_v7 = vld [vmem:[%s13034_s15] sm:$0x1] }
 0xcc3   :  { %8902 = vmatpush3.msra.mxu1 %v11892_v2  ;;  %8364 = vmatmul.mubr.msk.f32.vlgmr.msra.gmra.mxu0 %vm3575_vm11, %v5121_v7  ;;  %v9683_v7 = vld [vmem:[%s13036_s17 + $0x114] ss:$8 sps:$4 sm:$0xff]  }
 0xcc4   :  { %8903 = vmatprep.subr.mxu1 %v11898_v8  ;;  %5270 = vmatprep.mubr.bf16.mxu0 %v13082_v58 }
 0xcc5   :  { %8904 = vmatpush3.msra.mxu1 %v11904_v27 }
 0xcc6   :  { %8905 = vmatprep.subr.mxu1 %v11910_v32 }
 0xcc7   :  { %8906 = vmatpush3.msra.mxu1 %v11918_v52  ;;  %v5043_v52 = vld [vmem:[%s13033_s14] sm:$0x1]  ;;  %s13083_s14 = sld [smem:[#allocation23_spill]] }
 0xcc8   :  { %5074 = vmatprep.subr.mxu1 %v11912_v26 }
 0xd68   :  { %v4937_v5 = vpop.f32.mrf.mxu1 }
 0xd69   :  { %v4945_v29 = vrot.slane %v4937_v5, %v11234_v44  ;;  %v9713_v5 = vld [vmem:[%s13036_s17 + $0x74] ss:$8 sps:$4 sm:$0xff]  }
 0xd6a   :  { %v4939_v25 = vpop.f32.mrf.mxu1 }
 0xd6b   :  { %v4950_v15 = vsub.f32 %v11929_v9, %v4945_v29  ;;  %v4952_v6 = vsub.f32 %v11931_v54, %v4945_v29  ;;  %v4949_v62 = vrot.slane %v4939_v25, %v11234_v44  ;;  %v8366_v25 = vld [vmem:[%s13035_s16 + $0x4] sm:$0xf] }
 0xd6d   :  { %v4954_v12 = vmul.f32 %v4950_v15, %v4950_v15  ;;  %v4956_v42 = vmul.f32 %v4952_v6, %v4952_v6  ;;  %v4951_v51 = vsub.f32 %v11933_v3, %v4949_v62  ;;  %v4953_v19 = vsub.f32 %v11937_v38, %v4949_v62  ;;  %v9711_v62 = vld [vmem:[%s13036_s17 + $0x70] ss:$8 sps:$4 sm:$0xff]  }
 0xd6f   :  { %v4958_v41 = vadd.f32 %v4956_v42, %v4954_v12  ;;  %v4955_v55 = vmul.f32 %v4951_v51, %v4951_v51  ;;  %v4957_v24 = vmul.f32 %v4953_v19, %v4953_v19  ;;  %v9668_v12 = vld [vmem:[%s13036_s17 + $0x164] ss:$8 sps:$4 sm:$0xff]  }
 0xd70   :  { %v9716_v42 = vld [vmem:[%s13036_s17 + $0x64] ss:$8 sps:$4 sm:$0xff]  }
 0xd71   :  { %v4959_v23 = vrot.slane %v4958_v41, 4  ;;  %v4965_v10 = vadd.f32 %v4957_v24, %v4955_v55  ;;  %v9719_v55 = vld [vmem:[%s13036_s17 + $0x54] ss:$8 sps:$4 sm:$0xff]   ;;  %v9669_v24 = vld [vmem:[%s13036_s17 + $0x150] ss:$8 sps:$4 sm:$0xff]  }
 0xd73   :  { %v4960_v13 = vadd.f32 %v4959_v23, %v4958_v41  ;;  %v4966_v39 = vrot.slane %v4965_v10, 4  ;;  %v9671_v41 = vld [vmem:[%s13036_s17 + $0x154] ss:$8 sps:$4 sm:$0xff]   ;;  %v9717_v23 = vld [vmem:[%s13036_s17 + $0x50] ss:$8 sps:$4 sm:$0xff]  }
 0xd75   :  { %v4961_v4 = vrot.slane %v4960_v13, 2  ;;  %v4967_v14 = vadd.f32 %v4966_v39, %v4965_v10  ;;  %v9674_v10 = vld [vmem:[%s13036_s17 + $0x144] ss:$8 sps:$4 sm:$0xff]   ;;  %v9672_v39 = vld [vmem:[%s13036_s17 + $0x140] ss:$8 sps:$4 sm:$0xff]  }
 0xd77   :  { %v4962_v16 = vadd.f32 %v4961_v4, %v4960_v13  ;;  %v4968_v11 = vrot.slane %v4967_v14, 2  ;;  %v9722_v13 = vld [vmem:[%s13036_s17 + $0x44] ss:$8 sps:$4 sm:$0xff]   ;;  %v9720_v4 = vld [vmem:[%s13036_s17 + $0x40] ss:$8 sps:$4 sm:$0xff]  }
 0xd79   :  { %v4969_v18 = vadd.f32 %v4968_v11, %v4967_v14  ;;  %v4963_v0 = vrot.slane %v4962_v16, 1  ;;  %v9677_v14 = vld [vmem:[%s13036_s17 + $0x134] ss:$8 sps:$4 sm:$0xff]   ;;  %v9675_v11 = vld [vmem:[%s13036_s17 + $0x130] ss:$8 sps:$4 sm:$0xff]  }
 0xd7b   :  { %v4970_v28 = vrot.slane %v4969_v18, 1  ;;  %v4964_v63 = vadd.f32 %v4963_v0, %v4962_v16  ;;  %v9725_v16 = vld [vmem:[%s13036_s17 + $0x34] ss:$8 sps:$4 sm:$0xff]   ;;  %v9680_v0 = vld [vmem:[%s13036_s17 + $0x124] ss:$8 sps:$4 sm:$0xff]  }
 0xd7d   :  { %v4971_v21 = vadd.f32 %v4970_v28, %v4969_v18  ;;  %v9723_v18 = vld [vmem:[%s13036_s17 + $0x30] ss:$8 sps:$4 sm:$0xff]   ;;  %v9728_v28 = vld [vmem:[%s13036_s17 + $0x24] ss:$8 sps:$4 sm:$0xff]  }
 0xd7f   :  { %5036 = vmatprep.mubr.f32.mxu1 %v4971_v21  ;;  %v9678_v21 = vld [vmem:[%s13036_s17 + $0x120] ss:$8 sps:$4 sm:$0xff]  }
 0xd80   :  { %5037 = vmatmul.mubr.f32.vlgmr.msra.gmra.mxu1 %v4964_v63  ;;  %v9726_v63 = vld [vmem:[%s13036_s17 + $0x20] ss:$8 sps:$4 sm:$0xff]  }
 0xd81   :  { %5075 = vmatpush1.msra.mxu1 %v11942_v33  ;;  %5114 = vmatprep.mubr.f32.mxu1 %v10107_v35 }
 0xd82   :  { %5076 = vmatprep.subr.mxu1 %v11944_v34 }
 0xd83   :  { %5077 = vmatpush1.msra.mxu1 %v11950_v22  ;;  %v5191_v3 = vpop.f32.mrf.mxu0 }
 0xd84   :  { %5078 = vmatprep.subr.mxu1 %v11952_v45  ;;  %v5211_v43 = vrot.slane %v5191_v3, %v11234_v44  ;;  %v9737_v3 = vld [vmem:[%s13036_s17 + $0xf4] ss:$8 sps:$4 sm:$0xff]  }
 0xd85   :  { %5079 = vmatpush1.msra.mxu1 %v11954_v50  ;;  %v5193_v46 = vpop.f32.mrf.mxu0 }
 0xd86   :  { %5080 = vmatprep.subr.mxu1 %v11957_v59  ;;  %v5215_v49 = vrot.slane %v5193_v46, %v11234_v44  ;;  %v9743_v46 = vld [vmem:[%s13036_s17 + $0xd4] ss:$8 sps:$4 sm:$0xff]  }
 0xd87   :  { %5081 = vmatpush1.msra.mxu1 %v11961_v61 }
 0xe40   :  { %v8907_v2 = vpop.f32.mrf.mxu1 }
 0xe42   :  { %v8908_v8 = vpop.f32.mrf.mxu1 }
 0xe43   :  { %v8909_v27 = vadd.f32 %v8908_v8, %v8907_v2  ;;  %v9731_v2 = vld [vmem:[%s13036_s17 + $0x14] ss:$8 sps:$4 sm:$0xff]   ;;  %v9681_v8 = vld [vmem:[%s13036_s17 + $0x110] ss:$8 sps:$4 sm:$0xff]  }
 0xe45   :  { %v5042_v32 = vmul.f32 0.0078125, %v8909_v27  ;;  %v9729_v27 = vld [vmem:[%s13036_s17 + $0x10] ss:$8 sps:$4 sm:$0xff]  }
 0xe47   :  { %v5044_v26 = vadd.f32 1e-05, %v5042_v32  ;;  %v9686_v32 = vld [vmem:[%s13036_s17 + $0x104] ss:$8 sps:$4 sm:$0xff]  }
 0xe49   :  { %9921 = vrsqrt.f32 %v5044_v26  ;;  %v9734_v26 = vld [vmem:[%s13036_s17 + $0x4] ss:$8 sps:$4 sm:$0xff]  }
 0xe56   :  { %v9922_v9 = vpop.eup %9921 }
 0xe57   :  { %v5046_v54 = vmul.f32 %v9922_v9, %v5043_v52  ;;  %v9684_v52 = vld [vmem:[%s13036_s17 + $0x100] ss:$8 sps:$4 sm:$0xff]  }
 0xe58   :  { %v9732_v9 = vld [vmem:[%s13036_s17] ss:$8 sps:$4 sm:$0xff]  }
 0xe59   :  { %8363 = vmatmul.mubr.msk.f32.vlgmr.msra.gmra.mxu1 %vm3575_vm11, %v5046_v54  ;;  %v9689_v54 = vld [vmem:[%s13036_s17 + $0x1f4] ss:$8 sps:$4 sm:$0xff]  }
 0xe5a   :  { %5350 = vmatprep.mubr.bf16.mxu1 %v13082_v58 }
 0xf19   :  { %v5116_v38 = vpop.f32.mrf.mxu1 }
 0xf1a   :  { %v5199_v37 = vrot.slane %v5116_v38, %v11234_v44  ;;  %v9687_v38 = vld [vmem:[%s13036_s17 + $0x1f0] ss:$8 sps:$4 sm:$0xff]  }
 0xf1b   :  { %v5118_v56 = vpop.f32.mrf.mxu1 }
 0xf1c   :  { %v5204_v53 = vmul.f32 %v5199_v37, %v4950_v15  ;;  %v5206_v20 = vmul.f32 %v5199_v37, %v4952_v6  ;;  %v5203_v40 = vrot.slane %v5118_v56, %v11234_v44  ;;  %v9663_v15 = vld [vmem:[%s13036_s17 + $0x170] ss:$8 sps:$4 sm:$0xff]   ;;  %v5234_v6 = vld [vmem:[%s13035_s16] sm:$0xf]  ;;  %v9740_v56 = vld [vmem:[%s13036_s17 + $0xe4] ss:$8 sps:$4 sm:$0xff]  }
 0xf1d   :  { %v9735_v37 = vld [vmem:[%s13036_s17 + $0xf0] ss:$8 sps:$4 sm:$0xff]  }
 0xf1e   :  { %v5205_v1 = vmul.f32 %v5203_v40, %v4951_v51  ;;  %v5207_v47 = vmul.f32 %v5203_v40, %v4953_v19  ;;  %v5216_v48 = vadd.f32 %v5211_v43, %v5204_v53  ;;  %v5218_v30 = vadd.f32 %v5211_v43, %v5206_v20  ;;  %v9666_v51 = vld [vmem:[%s13036_s17 + $0x160] ss:$8 sps:$4 sm:$0xff]   ;;  %v9692_v43 = vld [vmem:[%s13036_s17 + $0x1e4] ss:$8 sps:$4 sm:$0xff]   ;;  %v9695_v40 = vld [vmem:[%s13036_s17 + $0x1d4] ss:$8 sps:$4 sm:$0xff]  }
 0xf1f   :  { %v9714_v19 = vld [vmem:[%s13036_s17 + $0x60] ss:$8 sps:$4 sm:$0xff]  }
 0xf20   :  { %v5224_v31 = vmul.f32 0.2, %v5216_v48  ;;  %v5226_v33 = vmul.f32 0.2, %v5218_v30  ;;  %vm5220_vm12 = vcmp.gt.f32.partialorder %v5216_v48, 0.0  ;;  %vm5222_vm13 = vcmp.gt.f32.partialorder %v5218_v30, 0.0 }
 0xf21   :  { %v5217_v34 = vadd.f32 %v5215_v49, %v5205_v1  ;;  %v5219_v22 = vadd.f32 %v5215_v49, %v5207_v47  ;;  %v9690_v53 = vld [vmem:[%s13036_s17 + $0x1e0] ss:$8 sps:$4 sm:$0xff]   ;;  %v9693_v1 = vld [vmem:[%s13036_s17 + $0x1d0] ss:$8 sps:$4 sm:$0xff]  }
 0xf22   :  { %v5228_v59 = vsel %vm5220_vm12, %v5216_v48, %v5224_v31  ;;  %v5230_v61 = vsel %vm5222_vm13, %v5218_v30, %v5226_v33  ;;  %v9738_v20 = vld [vmem:[%s13036_s17 + $0xe0] ss:$8 sps:$4 sm:$0xff]   ;;  %v9741_v47 = vld [vmem:[%s13036_s17 + $0xd0] ss:$8 sps:$4 sm:$0xff]   ;;  %v9698_v48 = vld [vmem:[%s13036_s17 + $0x1c4] ss:$8 sps:$4 sm:$0xff]  }
 0xf23   :  { %vm5221_vm14 = vcmp.gt.f32.partialorder %v5217_v34, 0.0  ;;  %vm5223_vm15 = vcmp.gt.f32.partialorder %v5219_v22, 0.0  ;;  %v5225_v45 = vmul.f32 0.2, %v5217_v34  ;;  %v5227_v50 = vmul.f32 0.2, %v5219_v22 }
 0xf24   :  { %v12040_v29 = vpack.c.bf16 %v5230_v61, %v5228_v59  ;;  %v9746_v30 = vld [vmem:[%s13036_s17 + $0xc4] ss:$8 sps:$4 sm:$0xff]   ;;  %v9696_v49 = vld [vmem:[%s13036_s17 + $0x1c0] ss:$8 sps:$4 sm:$0xff]   ;;  %v9701_v33 = vld [vmem:[%s13036_s17 + $0x1b4] ss:$8 sps:$4 sm:$0xff]  }
 0xf25   :  { %v5229_v60 = vsel %vm5221_vm14, %v5217_v34, %v5225_v45  ;;  %v5231_v17 = vsel %vm5223_vm15, %v5219_v22, %v5227_v50  ;;  %v9744_v31 = vld [vmem:[%s13036_s17 + $0xc0] ss:$8 sps:$4 sm:$0xff]   ;;  %v9699_v34 = vld [vmem:[%s13036_s17 + $0x1b0] ss:$8 sps:$4 sm:$0xff]   ;;  %v9704_v22 = vld [vmem:[%s13036_s17 + $0x1a4] ss:$8 sps:$4 sm:$0xff]  }
 0xf26   :  { %v12032_v57 = vpack.c.bf16 %v5231_v17, %v5229_v60  ;;  %v9702_v45 = vld [vmem:[%s13036_s17 + $0x1a0] ss:$8 sps:$4 sm:$0xff]   ;;  %v9707_v50 = vld [vmem:[%s13036_s17 + $0x194] ss:$8 sps:$4 sm:$0xff]   ;;  %v9705_v59 = vld [vmem:[%s13036_s17 + $0x190] ss:$8 sps:$4 sm:$0xff]  }
 0xf27   :  { %v9710_v61 = vld [vmem:[%s13036_s17 + $0x184] ss:$8 sps:$4 sm:$0xff]   ;;  %v9749_v60 = vld [vmem:[%s13036_s17 + $0xb4] ss:$8 sps:$4 sm:$0xff]   ;;  %v9708_v17 = vld [vmem:[%s13036_s17 + $0x180] ss:$8 sps:$4 sm:$0xff]  }
 0xf28   :  { %5252 = vmatprep.subr.bf16.mxu0 %v12032_v57  ;;  %5332 = vmatprep.subr.bf16.mxu1 %v12032_v57 }
 0xf29   :  { %5253 = vmatpush1.bf16.msra.mxu0 %v12040_v29  ;;  %5333 = vmatpush1.bf16.msra.mxu1 %v12040_v29 }
 0xf2a   :  { %5554 = vmatprep.subr.bf16.mxu0 %v9665_v36  ;;  %5755 = vmatprep.subr.bf16.mxu1 %v9713_v5  ;;  %v9747_v36 = vld [vmem:[%s13036_s17 + $0xb0] ss:$8 sps:$4 sm:$0xff]   ;;  %v9752_v5 = vld [vmem:[%s13036_s17 + $0xa4] ss:$8 sps:$4 sm:$0xff]  }
 0xf2c   :  { %8367 = vmatmul.mubr.msk.bf16.vlgmr.msra.gmra.mxu1 %vm3167_vm2, %v8366_v25  ;;  %8365 = vmatmul.mubr.msk.bf16.vlgmr.msra.gmra.mxu0 %vm3167_vm2, %v5234_v6  ;;  %v9750_v25 = vld [vmem:[%s13036_s17 + $0xa0] ss:$8 sps:$4 sm:$0xff]   ;;  %v9753_v6 = vld [vmem:[%s13036_s17 + $0x90] ss:$8 sps:$4 sm:$0xff]  }
 0xf2d   :  { %5555 = vmatpush1.bf16.msra.mxu0 %v9663_v15  ;;  %5756 = vmatpush1.bf16.msra.mxu1 %v9711_v62  ;;  %v9755_v15 = vld [vmem:[%s13036_s17 + $0x94] ss:$8 sps:$4 sm:$0xff]   ;;  %v9758_v62 = vld [vmem:[%s13036_s17 + $0x84] ss:$8 sps:$4 sm:$0xff]  }
 0xf2e   :  { %5556 = vmatprep.subr.bf16.mxu0 %v9668_v12  ;;  %5757 = vmatprep.subr.bf16.mxu1 %v9716_v42  ;;  %v9756_v12 = vld [vmem:[%s13036_s17 + $0x80] ss:$8 sps:$4 sm:$0xff]   ;;  %v9761_v42 = vld [vmem:[%s13036_s17 + $0x274] ss:$8 sps:$4 sm:$0xff]  }
 0xf31   :  { %5557 = vmatpush1.bf16.msra.mxu0 %v9666_v51  ;;  %5758 = vmatpush1.bf16.msra.mxu1 %v9714_v19 }
 0xf32   :  { %5558 = vmatprep.subr.bf16.mxu0 %v9671_v41  ;;  %5759 = vmatprep.subr.bf16.mxu1 %v9719_v55 }
 0xf35   :  { %5559 = vmatpush1.bf16.msra.mxu0 %v9669_v24  ;;  %5760 = vmatpush1.bf16.msra.mxu1 %v9717_v23 }
 0xf36   :  { %5560 = vmatprep.subr.bf16.mxu0 %v9674_v10  ;;  %5761 = vmatprep.subr.bf16.mxu1 %v9722_v13 }
 0xf39   :  { %5561 = vmatpush1.bf16.msra.mxu0 %v9672_v39  ;;  %5762 = vmatpush1.bf16.msra.mxu1 %v9720_v4  ;;  %v9759_v4 = vld [vmem:[%s13036_s17 + $0x270] ss:$8 sps:$4 sm:$0xff]  }
 0xf3a   :  { %5562 = vmatprep.subr.bf16.mxu0 %v9677_v14  ;;  %5763 = vmatprep.subr.bf16.mxu1 %v9725_v16  ;;  %v9764_v16 = vld [vmem:[%s13036_s17 + $0x264] ss:$8 sps:$4 sm:$0xff]  }
 0xf3d   :  { %5563 = vmatpush1.bf16.msra.mxu0 %v9675_v11  ;;  %5764 = vmatpush1.bf16.msra.mxu1 %v9723_v18 }
 0xf3e   :  { %5564 = vmatprep.subr.bf16.mxu0 %v9680_v0  ;;  %5765 = vmatprep.subr.bf16.mxu1 %v9728_v28  ;;  %v9762_v0 = vld [vmem:[%s13036_s17 + $0x260] ss:$8 sps:$4 sm:$0xff]   ;;  %v9767_v28 = vld [vmem:[%s13036_s17 + $0x254] ss:$8 sps:$4 sm:$0xff]  }
 0xf41   :  { %5565 = vmatpush1.bf16.msra.mxu0 %v9678_v21  ;;  %5766 = vmatpush1.bf16.msra.mxu1 %v9726_v63  ;;  %v8464_v21 = vld [vmem:[%s13035_s16 + $0x8] sm:$0xf]  ;;  %v9765_v63 = vld [vmem:[%s13036_s17 + $0x250] ss:$8 sps:$4 sm:$0xff]  }
 0xf42   :  { %5566 = vmatprep.subr.bf16.mxu0 %v9683_v7  ;;  %5767 = vmatprep.subr.bf16.mxu1 %v9731_v2  ;;  %v9773_v7 = vld [vmem:[%s13036_s17 + $0x244] ss:$8 sps:$4 sm:$0xff]   ;;  %v9771_v2 = vld [vmem:[%s13036_s17 + $0x240] ss:$8 sps:$4 sm:$0xff]  }
 0xf45   :  { %5567 = vmatpush1.bf16.msra.mxu0 %v9681_v8  ;;  %5768 = vmatpush1.bf16.msra.mxu1 %v9729_v27  ;;  %v9779_v8 = vld [vmem:[%s13036_s17 + $0x234] ss:$8 sps:$4 sm:$0xff]   ;;  %v8530_v27 = vld [vmem:[%s13035_s16 + $0xc] sm:$0xf] }
 0xf46   :  { %5568 = vmatprep.subr.bf16.mxu0 %v9686_v32  ;;  %5769 = vmatprep.subr.bf16.mxu1 %v9734_v26  ;;  %v9776_v32 = vld [vmem:[%s13036_s17 + $0x364] ss:$8 sps:$4 sm:$0xff]   ;;  %v9777_v26 = vld [vmem:[%s13036_s17 + $0x230] ss:$8 sps:$4 sm:$0xff]  }
 0xf49   :  { %5569 = vmatpush1.bf16.msra.mxu0 %v9684_v52  ;;  %5770 = vmatpush1.bf16.msra.mxu1 %v9732_v9  ;;  %v9785_v52 = vld [vmem:[%s13036_s17 + $0x224] ss:$8 sps:$4 sm:$0xff]   ;;  %v9774_v9 = vld [vmem:[%s13036_s17 + $0x360] ss:$8 sps:$4 sm:$0xff]  }
 0xf4a   :  { %5570 = vmatprep.subr.bf16.mxu0 %v9689_v54  ;;  %5771 = vmatprep.subr.bf16.mxu1 %v9737_v3  ;;  %v9782_v54 = vld [vmem:[%s13036_s17 + $0x354] ss:$8 sps:$4 sm:$0xff]   ;;  %v9783_v3 = vld [vmem:[%s13036_s17 + $0x220] ss:$8 sps:$4 sm:$0xff]  }
 0xf4d   :  { %5571 = vmatpush2.bf16.msra.mxu0 %v9687_v38  ;;  %5772 = vmatpush2.bf16.msra.mxu1 %v9735_v37  ;;  %v9791_v38 = vld [vmem:[%s13036_s17 + $0x214] ss:$8 sps:$4 sm:$0xff]   ;;  %v9780_v37 = vld [vmem:[%s13036_s17 + $0x350] ss:$8 sps:$4 sm:$0xff]  }
 0xf4e   :  { %5572 = vmatprep.subr.bf16.mxu0 %v9692_v43  ;;  %5773 = vmatprep.subr.bf16.mxu1 %v9740_v56  ;;  %v9788_v43 = vld [vmem:[%s13036_s17 + $0x344] ss:$8 sps:$4 sm:$0xff]   ;;  %v9789_v56 = vld [vmem:[%s13036_s17 + $0x210] ss:$8 sps:$4 sm:$0xff]  }
 0xf51   :  { %5573 = vmatpush2.bf16.msra.mxu0 %v9690_v53  ;;  %5774 = vmatpush2.bf16.msra.mxu1 %v9738_v20  ;;  %v9797_v53 = vld [vmem:[%s13036_s17 + $0x204] ss:$8 sps:$4 sm:$0xff]   ;;  %v9786_v20 = vld [vmem:[%s13036_s17 + $0x340] ss:$8 sps:$4 sm:$0xff]  }
 0xf52   :  { %5574 = vmatprep.subr.bf16.mxu0 %v9695_v40  ;;  %5775 = vmatprep.subr.bf16.mxu1 %v9743_v46  ;;  %v9794_v40 = vld [vmem:[%s13036_s17 + $0x334] ss:$8 sps:$4 sm:$0xff]   ;;  %v9795_v46 = vld [vmem:[%s13036_s17 + $0x200] ss:$8 sps:$4 sm:$0xff]  }
 0xf55   :  { %5575 = vmatpush2.bf16.msra.mxu0 %v9693_v1  ;;  %5776 = vmatpush2.bf16.msra.mxu1 %v9741_v47  ;;  %v9803_v1 = vld [vmem:[%s13036_s17 + $0x2f4] ss:$8 sps:$4 sm:$0xff]   ;;  %v9792_v47 = vld [vmem:[%s13036_s17 + $0x330] ss:$8 sps:$4 sm:$0xff]  }
 0xf56   :  { %5576 = vmatprep.subr.bf16.mxu0 %v9698_v48  ;;  %5777 = vmatprep.subr.bf16.mxu1 %v9746_v30  ;;  %v9800_v48 = vld [vmem:[%s13036_s17 + $0x324] ss:$8 sps:$4 sm:$0xff]   ;;  %v9801_v30 = vld [vmem:[%s13036_s17 + $0x2f0] ss:$8 sps:$4 sm:$0xff]  }
 0xf59   :  { %5577 = vmatpush2.bf16.msra.mxu0 %v9696_v49  ;;  %5778 = vmatpush2.bf16.msra.mxu1 %v9744_v31  ;;  %v9809_v49 = vld [vmem:[%s13036_s17 + $0x2e4] ss:$8 sps:$4 sm:$0xff]   ;;  %v9798_v31 = vld [vmem:[%s13036_s17 + $0x320] ss:$8 sps:$4 sm:$0xff]  }
 0xf5a   :  { %5578 = vmatprep.subr.bf16.mxu0 %v9701_v33  ;;  %5779 = vmatprep.subr.bf16.mxu1 %v9749_v60  ;;  %v9806_v33 = vld [vmem:[%s13036_s17 + $0x314] ss:$8 sps:$4 sm:$0xff]   ;;  %v9810_v60 = vld [vmem:[%s13036_s17 + $0x300] ss:$8 sps:$4 sm:$0xff]  }
 0xf5d   :  { %5579 = vmatpush2.bf16.msra.mxu0 %v9699_v34  ;;  %5780 = vmatpush2.bf16.msra.mxu1 %v9747_v36  ;;  %v9807_v34 = vld [vmem:[%s13036_s17 + $0x2e0] ss:$8 sps:$4 sm:$0xff]  }
 0xf5e   :  { %5580 = vmatprep.subr.bf16.mxu0 %v9704_v22  ;;  %5781 = vmatprep.subr.bf16.mxu1 %v9752_v5  ;;  %v9815_v22 = vld [vmem:[%s13036_s17 + $0x2d4] ss:$8 sps:$4 sm:$0xff]   ;;  %v9819_v36 = vld [vmem:[%s13036_s17 + $0x2c0] ss:$8 sps:$4 sm:$0xff]  }
 0xf5f   :  { %v9827_v5 = vld [vmem:[%s13036_s17 + $0x2b4] ss:$8 sps:$4 sm:$0xff]  }
 0xf61   :  { %5581 = vmatpush2.bf16.msra.mxu0 %v9702_v45  ;;  %5782 = vmatpush2.bf16.msra.mxu1 %v9750_v25  ;;  %v9804_v45 = vld [vmem:[%s13036_s17 + $0x310] ss:$8 sps:$4 sm:$0xff]  }
 0xf62   :  { %5582 = vmatprep.subr.bf16.mxu0 %v9707_v50  ;;  %5783 = vmatprep.subr.bf16.mxu1 %v9755_v15  ;;  %v9812_v50 = vld [vmem:[%s13036_s17 + $0x304] ss:$8 sps:$4 sm:$0xff]   ;;  %v9816_v25 = vld [vmem:[%s13036_s17 + $0x3f0] ss:$8 sps:$4 sm:$0xff]  }
 0xf63   :  { %v9824_v15 = vld [vmem:[%s13036_s17 + $0x3e4] ss:$8 sps:$4 sm:$0xff]  }
 0xf65   :  { %5583 = vmatpush2.bf16.msra.mxu0 %v9705_v59  ;;  %5784 = vmatpush2.bf16.msra.mxu1 %v9753_v6  ;;  %v9813_v59 = vld [vmem:[%s13036_s17 + $0x2d0] ss:$8 sps:$4 sm:$0xff]  }
 0xf66   :  { %5584 = vmatprep.subr.bf16.mxu0 %v9710_v61  ;;  %5785 = vmatprep.subr.bf16.mxu1 %v9758_v62  ;;  %v9821_v61 = vld [vmem:[%s13036_s17 + $0x2c4] ss:$8 sps:$4 sm:$0xff]   ;;  %v9825_v6 = vld [vmem:[%s13036_s17 + $0x2b0] ss:$8 sps:$4 sm:$0xff]   ;;  %v9822_v62 = vld [vmem:[%s13036_s17 + $0x3e0] ss:$8 sps:$4 sm:$0xff]  }
 0xf69   :  { %5585 = vmatpush2.bf16.msra.mxu0 %v9708_v17  ;;  %5786 = vmatpush2.bf16.msra.mxu1 %v9756_v12  ;;  %v9818_v17 = vld [vmem:[%s13036_s17 + $0x3f4] ss:$8 sps:$4 sm:$0xff]  }
 0xf6a   :  { %5815 = vmatprep.subr.bf16.mxu0 %v12032_v57  ;;  %6037 = vmatprep.subr.bf16.mxu1 %v9761_v42  ;;  %v9830_v12 = vld [vmem:[%s13036_s17 + $0x3d4] ss:$8 sps:$4 sm:$0xff]   ;;  %v9828_v42 = vld [vmem:[%s13036_s17 + $0x3d0] ss:$8 sps:$4 sm:$0xff]  }
 0xfec   :  { %v5352_v51 = vpop.f32.mrf.mxu1  ;;  %v5272_v19 = vpop.f32.mrf.mxu0 }
 0xfed   :  { %v5279_v55 = vpack.c.bf16 %v5272_v19, %v5272_v19  ;;  %v5359_v13 = vpack.c.bf16 %v5352_v51, %v5352_v51  ;;  %v9831_v51 = vld [vmem:[%s13036_s17 + $0x2a0] ss:$8 sps:$4 sm:$0xff]   ;;  %v9833_v19 = vld [vmem:[%s13036_s17 + $0x2a4] ss:$8 sps:$4 sm:$0xff]  }
 0xfee   :  { %v5354_v41 = vpop.f32.mrf.mxu1  ;;  %v5274_v24 = vpop.f32.mrf.mxu0 }
 0xfef   :  { %v5360_v23 = vpack.c.bf16 %v5354_v41, %v5354_v41  ;;  %v5280_v10 = vpack.c.bf16 %v5274_v24, %v5274_v24  ;;  %v9834_v41 = vld [vmem:[%s13036_s17 + $0x3c0] ss:$8 sps:$4 sm:$0xff]   ;;  %v9837_v24 = vld [vmem:[%s13036_s17 + $0x290] ss:$8 sps:$4 sm:$0xff]  }
 0xff0   :  { %v5356_v39 = vpop.f32.mrf.mxu1  ;;  %v5276_v14 = vpop.f32.mrf.mxu0 }
 0xff1   :  { %5586 = vmatprep.mubr.bf16.mxu0 %v5360_v23  ;;  %5787 = vmatprep.mubr.bf16.mxu1 %v5280_v10  ;;  %v9839_v23 = vld [vmem:[%s13036_s17 + $0x294] ss:$8 sps:$4 sm:$0xff]   ;;  %v9840_v10 = vld [vmem:[%s13036_s17 + $0x3b0] ss:$8 sps:$4 sm:$0xff]   ;;  %v9843_v39 = vld [vmem:[%s13036_s17 + $0x280] ss:$8 sps:$4 sm:$0xff]  }
 0xff2   :  { %5587 = vmatmul.mubr.bf16.vlgmr.msra.gmra.mxu0 %v5359_v13  ;;  %v5357_v11 = vpop.f32.mrf.mxu1  ;;  %5788 = vmatmul.mubr.bf16.vlgmr.msra.gmra.mxu1 %v5279_v55  ;;  %v5277_v18 = vpop.f32.mrf.mxu0  ;;  %v9836_v55 = vld [vmem:[%s13036_s17 + $0x3c4] ss:$8 sps:$4 sm:$0xff]   ;;  %v9842_v13 = vld [vmem:[%s13036_s17 + $0x3b4] ss:$8 sps:$4 sm:$0xff]   ;;  %v9846_v14 = vld [vmem:[%s13036_s17 + $0x3a0] ss:$8 sps:$4 sm:$0xff]  }
 0xff3   :  { %5816 = vmatpush1.bf16.msra.mxu0 %v12040_v29  ;;  %5833 = vmatprep.mubr.bf16.mxu0 %v13082_v58  ;;  %v9851_v11 = vld [vmem:[%s13036_s17 + $0x394] ss:$8 sps:$4 sm:$0xff]   ;;  %v9849_v18 = vld [vmem:[%s13036_s17 + $0x390] ss:$8 sps:$4 sm:$0xff]  }
 0xff4   :  { %6099 = vmatprep.subr.bf16.mxu0 %v12032_v57  ;;  %6038 = vmatpush1.bf16.msra.mxu1 %v9759_v4  ;;  %v9770_v57 = vld [vmem:[%s13036_s17 + $0x374] ss:$8 sps:$4 sm:$0xff]   ;;  %v9845_v4 = vld [vmem:[%s13036_s17 + $0x284] ss:$8 sps:$4 sm:$0xff]  }
 0xff5   :  { %6039 = vmatprep.subr.bf16.mxu1 %v9764_v16  ;;  %v9848_v16 = vld [vmem:[%s13036_s17 + $0x3a4] ss:$8 sps:$4 sm:$0xff]  }
 0xff8   :  { %6040 = vmatpush1.bf16.msra.mxu1 %v9762_v0  ;;  %v9852_v0 = vld [vmem:[%s13036_s17 + $0x380] ss:$8 sps:$4 sm:$0xff]  }
 0xff9   :  { %6041 = vmatprep.subr.bf16.mxu1 %v9767_v28  ;;  %v9854_v28 = vld [vmem:[%s13036_s17 + $0x384] ss:$8 sps:$4 sm:$0xff]  }
 0xffa   :  { %8465 = vmatmul.mubr.msk.bf16.vlgmr.msra.gmra.mxu0 %vm3167_vm2, %v8464_v21  ;;  %v12449_v21 = vld [vmem:[%s13038_s19 + $0xf8] sm:$0xff] }
 0xffb   :  { %6100 = vmatpush1.bf16.msra.mxu0 %v12040_v29  ;;  %6117 = vmatprep.mubr.bf16.mxu0 %v13082_v58  ;;  %v9768_v29 = vld [vmem:[%s13036_s17 + $0x370] ss:$8 sps:$4 sm:$0xff]  }
 0xffc   :  { %6321 = vmatprep.subr.bf16.mxu0 %v9770_v57  ;;  %6042 = vmatpush1.bf16.msra.mxu1 %v9765_v63 }
 0xffd   :  { %6043 = vmatprep.subr.bf16.mxu1 %v9773_v7 }
0x1000   :  { %6044 = vmatpush1.bf16.msra.mxu1 %v9771_v2 }
0x1001   :  { %6045 = vmatprep.subr.bf16.mxu1 %v9779_v8 }
0x1002   :  { %8531 = vmatmul.mubr.msk.bf16.vlgmr.msra.gmra.mxu0 %vm3167_vm2, %v8530_v27  ;;  %vm6850_vm2 = vcmask 1043456  }
0x1003   :  { %6322 = vmatpush1.bf16.msra.mxu0 %v9768_v29 }
0x1004   :  { %6323 = vmatprep.subr.bf16.mxu0 %v9776_v32  ;;  %6046 = vmatpush1.bf16.msra.mxu1 %v9777_v26 }
0x1005   :  { %6047 = vmatprep.subr.bf16.mxu1 %v9785_v52 }
0x1007   :  { %6324 = vmatpush1.bf16.msra.mxu0 %v9774_v9 }
0x1008   :  { %6325 = vmatprep.subr.bf16.mxu0 %v9782_v54  ;;  %6048 = vmatpush1.bf16.msra.mxu1 %v9783_v3 }
0x1009   :  { %6049 = vmatprep.subr.bf16.mxu1 %v9791_v38 }
0x100b   :  { %6326 = vmatpush1.bf16.msra.mxu0 %v9780_v37 }
0x100c   :  { %6327 = vmatprep.subr.bf16.mxu0 %v9788_v43  ;;  %6050 = vmatpush1.bf16.msra.mxu1 %v9789_v56  ;;  %v12459_v43 = vld [vmem:[%s13038_s19 + $0x78] sm:$0xff]  ;;  %v12464_v56 = vld [vmem:[%s13038_s19 + $0xf0] sm:$0xff] }
0x100d   :  { %6051 = vmatprep.subr.bf16.mxu1 %v9797_v53 }
0x100f   :  { %6328 = vmatpush1.bf16.msra.mxu0 %v9786_v20  ;;  %v12469_v20 = vld [vmem:[%s13038_s19 + $0x70] sm:$0xff] }
0x1010   :  { %6329 = vmatprep.subr.bf16.mxu0 %v9794_v40  ;;  %6052 = vmatpush1.bf16.msra.mxu1 %v9795_v46  ;;  %v12475_v40 = vld [vmem:[%s13038_s19 + $0xe8] sm:$0xff] }
0x1011   :  { %6053 = vmatprep.subr.bf16.mxu1 %v9803_v1  ;;  %v12481_v1 = vld [vmem:[%s13038_s19 + $0x68] sm:$0xff] }
0x1013   :  { %6330 = vmatpush1.bf16.msra.mxu0 %v9792_v47 }
0x1014   :  { %6331 = vmatprep.subr.bf16.mxu0 %v9800_v48  ;;  %6054 = vmatpush2.bf16.msra.mxu1 %v9801_v30 }
0x1015   :  { %6055 = vmatprep.subr.bf16.mxu1 %v9809_v49 }
0x1017   :  { %6332 = vmatpush1.bf16.msra.mxu0 %v9798_v31 }
0x1018   :  { %6333 = vmatprep.subr.bf16.mxu0 %v9806_v33  ;;  %6056 = vmatpush2.bf16.msra.mxu1 %v9807_v34  ;;  %v12490_v33 = vld [vmem:[%s13038_s19 + $0xe0] sm:$0xff] }
0x1019   :  { %6057 = vmatprep.subr.bf16.mxu1 %v9815_v22  ;;  %v12495_v34 = vld [vmem:[%s13038_s19 + $0x60] sm:$0xff]  ;;  %v12502_v22 = vld [vmem:[%s13038_s19 + $0xd8] sm:$0xff] }
0x101b   :  { %6334 = vmatpush1.bf16.msra.mxu0 %v9804_v45  ;;  %v12507_v45 = vld [vmem:[%s13038_s19 + $0x58] sm:$0xff] }
0x101c   :  { %6335 = vmatprep.subr.bf16.mxu0 %v9812_v50  ;;  %6058 = vmatpush2.bf16.msra.mxu1 %v9813_v59  ;;  %v12512_v50 = vld [vmem:[%s13038_s19 + $0xd0] sm:$0xff] }
0x101d   :  { %6059 = vmatprep.subr.bf16.mxu1 %v9821_v61  ;;  %v12518_v59 = vld [vmem:[%s13038_s19 + $0x50] sm:$0xff]  ;;  %v12524_v61 = vld [vmem:[%s13038_s19 + $0xc8] sm:$0xff] }
0x101f   :  { %6336 = vmatpush1.bf16.msra.mxu0 %v9810_v60  ;;  %v12530_v60 = vld [vmem:[%s13038_s19 + $0x48] sm:$0xff] }
0x1020   :  { %6337 = vmatprep.subr.bf16.mxu0 %v9818_v17  ;;  %6060 = vmatpush2.bf16.msra.mxu1 %v9819_v36  ;;  %v12538_v17 = vld [vmem:[%s13038_s19 + $0xc0] sm:$0xff] }
0x1021   :  { %6061 = vmatprep.subr.bf16.mxu1 %v9827_v5  ;;  %v12544_v36 = vld [vmem:[%s13038_s19 + $0x40] sm:$0xff]  ;;  %v12550_v5 = vld [vmem:[%s13038_s19 + $0xb8] sm:$0xff] }
0x1023   :  { %6338 = vmatpush2.bf16.msra.mxu0 %v9816_v25  ;;  %v12556_v25 = vld [vmem:[%s13038_s19 + $0x38] sm:$0xff] }
0x1024   :  { %6339 = vmatprep.subr.bf16.mxu0 %v9824_v15  ;;  %6062 = vmatpush2.bf16.msra.mxu1 %v9825_v6  ;;  %v12562_v15 = vld [vmem:[%s13038_s19 + $0xb0] sm:$0xff] }
0x1025   :  { %6063 = vmatprep.subr.bf16.mxu1 %v9833_v19  ;;  %v12568_v6 = vld [vmem:[%s13038_s19 + $0x30] sm:$0xff]  ;;  %v12598_v19 = vld [vmem:[%s13038_s19 + $0x98] sm:$0xff] }
0x1027   :  { %6340 = vmatpush2.bf16.msra.mxu0 %v9822_v62  ;;  %v12574_v62 = vld [vmem:[%s13038_s19 + $0xa8] sm:$0xff] }
0x1028   :  { %6341 = vmatprep.subr.bf16.mxu0 %v9830_v12  ;;  %6064 = vmatpush2.bf16.msra.mxu1 %v9831_v51  ;;  %v12580_v12 = vld [vmem:[%s13038_s19 + $0x28] sm:$0xff]  ;;  %v12592_v51 = vld [vmem:[%s13038_s19 + $0x20] sm:$0xff] }
0x1029   :  { %6065 = vmatprep.subr.bf16.mxu1 %v9839_v23  ;;  %v12620_v23 = vld [vmem:[%s13038_s19 + $0x88] sm:$0xff] }
0x102b   :  { %6342 = vmatpush2.bf16.msra.mxu0 %v9828_v42  ;;  %v12586_v42 = vld [vmem:[%s13038_s19 + $0xa0] sm:$0xff] }
0x102c   :  { %6343 = vmatprep.subr.bf16.mxu0 %v9836_v55  ;;  %6066 = vmatpush2.bf16.msra.mxu1 %v9837_v24  ;;  %v12608_v55 = vld [vmem:[%s13038_s19 + $0x90] sm:$0xff] }
0x102d   :  { %6067 = vmatprep.subr.bf16.mxu1 %v9845_v4  ;;  %v12614_v24 = vld [vmem:[%s13038_s19 + $0x10] sm:$0xff]  ;;  %v12640_v4 = vld [vmem:[#allocation12 + $0x78] sm:$0xff] }
0x102f   :  { %6344 = vmatpush2.bf16.msra.mxu0 %v9834_v41  ;;  %v12603_v41 = vld [vmem:[%s13038_s19 + $0x18] sm:$0xff] }
0x1030   :  { %6345 = vmatprep.subr.bf16.mxu0 %v9842_v13  ;;  %6068 = vmatpush2.bf16.msra.mxu1 %v9843_v39  ;;  %v12632_v13 = vld [vmem:[%s13038_s19 + $0x80] sm:$0xff] }
0x1031   :  { %8910 = vmatprep.subr.mxu1 %v12449_v21  ;;  %v12637_v39 = vld [vmem:[%s13038_s19] sm:$0xff] }
0x1033   :  { %6346 = vmatpush2.bf16.msra.mxu0 %v9840_v10  ;;  %v12626_v10 = vld [vmem:[%s13038_s19 + $0x8] sm:$0xff] }
0x1034   :  { %6347 = vmatprep.subr.bf16.mxu0 %v9848_v16  ;;  %v12644_v16 = vld [vmem:[#allocation12 + $0x68] sm:$0xff] }
0x1037   :  { %6348 = vmatpush2.bf16.msra.mxu0 %v9846_v14  ;;  %v12642_v14 = vld [vmem:[#allocation12 + $0x70] sm:$0xff] }
0x1038   :  { %6349 = vmatprep.subr.bf16.mxu0 %v9851_v11  ;;  %v12648_v11 = vld [vmem:[#allocation12 + $0x60] sm:$0xff] }
0x103b   :  { %6350 = vmatpush2.bf16.msra.mxu0 %v9849_v18  ;;  %v12652_v18 = vld [vmem:[#allocation12 + $0x58] sm:$0xff] }
0x103c   :  { %6351 = vmatprep.subr.bf16.mxu0 %v9854_v28  ;;  %v12659_v28 = vld [vmem:[#allocation12 + $0x48] sm:$0xff] }
0x103f   :  { %6352 = vmatpush2.bf16.msra.mxu0 %v9852_v0  ;;  %v12656_v0 = vld [vmem:[#allocation12 + $0x50] sm:$0xff] }
0x1040   :  { %6514 = vmatprep.subr.mxu0 %v12640_v4 }
0x10b2   :  { %v5588_v63 = vpop.f32.mrf.mxu0  ;;  %v5789_v57 = vpop.f32.mrf.mxu1 }
0x10b3   :  { %v12452_v7 = vadd.f32 %v5789_v57, %v5588_v63  ;;  %v12663_v63 = vld [vmem:[#allocation12 + $0x40] sm:$0xff]  ;;  %v12666_v57 = vld [vmem:[#allocation12 + $0x38] sm:$0xff] }
0x10b4   :  { %v5590_v2 = vpop.f32.mrf.mxu0  ;;  %v5791_v8 = vpop.f32.mrf.mxu1 }
0x10b5   :  { %v12454_v27 = vadd.f32 %v5791_v8, %v5590_v2 }
0x10b6   :  { %v5592_v29 = vpop.f32.mrf.mxu0  ;;  %v5793_v32 = vpop.f32.mrf.mxu1 }
0x10b8   :  { %v5593_v26 = vpop.f32.mrf.mxu0  ;;  %v5794_v52 = vpop.f32.mrf.mxu1 }
0x10ba   :  { %v5835_v9 = vpop.f32.mrf.mxu0 }
0x10bb   :  { %v5842_v38 = vpack.c.bf16 %v5835_v9, %v5835_v9 }
0x10bc   :  { %v5837_v54 = vpop.f32.mrf.mxu0 }
0x10bd   :  { %v5843_v3 = vpack.c.bf16 %v5837_v54, %v5837_v54 }
0x10be   :  { %v5839_v37 = vpop.f32.mrf.mxu0 }
0x10bf   :  { %6069 = vmatprep.mubr.bf16.mxu1 %v5843_v3 }
0x10c0   :  { %v5840_v53 = vpop.f32.mrf.mxu0  ;;  %6070 = vmatmul.mubr.bf16.vlgmr.msra.gmra.mxu1 %v5842_v38 }
0x10c1   :  { %8911 = vmatpush3.msra.mxu1 %v12459_v43 }
0x10c2   :  { %v6119_v46 = vpop.f32.mrf.mxu0  ;;  %8912 = vmatprep.subr.mxu1 %v12464_v56 }
0x10c3   :  { %8913 = vmatpush3.msra.mxu1 %v12469_v20  ;;  %v6126_v30 = vpack.c.bf16 %v6119_v46, %v6119_v46 }
0x10c4   :  { %v6121_v47 = vpop.f32.mrf.mxu0  ;;  %8914 = vmatprep.subr.mxu1 %v12475_v40 }
0x10c5   :  { %v6127_v48 = vpack.c.bf16 %v6121_v47, %v6121_v47  ;;  %8915 = vmatpush3.msra.mxu1 %v12481_v1 }
0x10c6   :  { %v6123_v49 = vpop.f32.mrf.mxu0  ;;  %8916 = vmatprep.subr.mxu1 %v12490_v33 }
0x10c7   :  { %6353 = vmatprep.mubr.bf16.mxu0 %v6127_v48  ;;  %8917 = vmatpush3.msra.mxu1 %v12495_v34 }
0x10c8   :  { %6354 = vmatmul.mubr.bf16.vlgmr.msra.gmra.mxu0 %v6126_v30  ;;  %v6124_v31 = vpop.f32.mrf.mxu0  ;;  %8918 = vmatprep.subr.mxu1 %v12502_v22 }
0x10c9   :  { %6562 = vmatprep.mubr.f32.mxu0 %v10107_v35  ;;  %8919 = vmatpush3.msra.mxu1 %v12507_v45 }
0x10ca   :  { %8920 = vmatprep.subr.mxu1 %v12512_v50  ;;  %6515 = vmatpush1.msra.mxu0 %v12642_v14 }
0x10cb   :  { %8921 = vmatpush3.msra.mxu1 %v12518_v59  ;;  %6516 = vmatprep.subr.mxu0 %v12644_v16 }
0x10cc   :  { %8922 = vmatprep.subr.mxu1 %v12524_v61  ;;  %6517 = vmatpush1.msra.mxu0 %v12648_v11 }
0x10cd   :  { %8923 = vmatpush3.msra.mxu1 %v12530_v60  ;;  %6518 = vmatprep.subr.mxu0 %v12652_v18 }
0x10ce   :  { %8924 = vmatprep.subr.mxu1 %v12538_v17  ;;  %6519 = vmatpush1.msra.mxu0 %v12656_v0 }
0x10cf   :  { %8925 = vmatpush3.msra.mxu1 %v12544_v36  ;;  %6520 = vmatprep.subr.mxu0 %v12659_v28 }
0x10d0   :  { %8926 = vmatprep.subr.mxu1 %v12550_v5  ;;  %6521 = vmatpush1.msra.mxu0 %v12663_v63 }
0x10d1   :  { %8927 = vmatpush3.msra.mxu1 %v12556_v25  ;;  %6522 = vmatprep.subr.mxu0 %v12666_v57 }
0x10d2   :  { %8928 = vmatprep.subr.mxu1 %v12562_v15 }
0x10d3   :  { %8929 = vmatpush3.msra.mxu1 %v12568_v6 }
0x10d4   :  { %8930 = vmatprep.subr.mxu1 %v12574_v62 }
0x10d5   :  { %8931 = vmatpush3.msra.mxu1 %v12580_v12 }
0x10d6   :  { %8932 = vmatprep.subr.mxu1 %v12586_v42 }
0x10d7   :  { %8933 = vmatpush3.msra.mxu1 %v12592_v51 }
0x10d8   :  { %8934 = vmatprep.subr.mxu1 %v12598_v19 }
0x10d9   :  { %8935 = vmatpush3.msra.mxu1 %v12603_v41 }
0x10da   :  { %8936 = vmatprep.subr.mxu1 %v12608_v55 }
0x10db   :  { %8937 = vmatpush3.msra.mxu1 %v12614_v24 }
0x10dc   :  { %8938 = vmatprep.subr.mxu1 %v12620_v23 }
0x10dd   :  { %8939 = vmatpush3.msra.mxu1 %v12626_v10 }
0x10de   :  { %8940 = vmatprep.subr.mxu1 %v12632_v13 }
0x10df   :  { %8941 = vmatpush3.msra.mxu1 %v12637_v39 }
0x10e0   :  { %6687 = vmatprep.subr.mxu1 %v12640_v4 }
0x1180   :  { %v6071_v2 = vpop.f32.mrf.mxu1 }
0x1181   :  { %v6078_v26 = vadd.f32 %v6071_v2, %v12452_v7 }
0x1182   :  { %v6073_v8 = vpop.f32.mrf.mxu1 }
0x1183   :  { %v6079_v9 = vadd.f32 %v6073_v8, %v12454_v27 }
0x1184   :  { %v6075_v29 = vpop.f32.mrf.mxu1 }
0x1186   :  { %v6076_v32 = vpop.f32.mrf.mxu1 }
0x1188   :  { %v6355_v52 = vpop.f32.mrf.mxu0 }
0x1189   :  { %v12673_v54 = vadd.f32 %v6355_v52, %v6078_v26  ;;  %v12690_v26 = vld [vmem:[#allocation12 + $0x30] sm:$0xff]  ;;  %v12692_v52 = vld [vmem:[#allocation12 + $0x28] sm:$0xff] }
0x118a   :  { %v6357_v3 = vpop.f32.mrf.mxu0  ;;  %6523 = vmatpush1.msra.mxu0 %v12690_v26 }
0x118b   :  { %v6412_v38 = vrot.slane %v12673_v54, 4  ;;  %v12676_v37 = vadd.f32 %v6357_v3, %v6079_v9  ;;  %6524 = vmatprep.subr.mxu0 %v12692_v52  ;;  %v12698_v9 = vld [vmem:[#allocation12 + $0x20] sm:$0xff]  ;;  %v12700_v3 = vld [vmem:[#allocation12 + $0x18] sm:$0xff] }
0x118c   :  { %v6359_v53 = vpop.f32.mrf.mxu0  ;;  %6525 = vmatpush1.msra.mxu0 %v12698_v9 }
0x118d   :  { %v6413_v46 = vadd.f32 %v6412_v38, %v12673_v54  ;;  %v6418_v47 = vrot.slane %v12676_v37, 4  ;;  %v12702_v38 = vld [vmem:[#allocation12 + $0x10] sm:$0xff]  ;;  %v12705_v53 = vld [vmem:[#allocation12 + $0x8] sm:$0xff]  ;;  %6526 = vmatprep.subr.mxu0 %v12700_v3 }
0x118e   :  { %v6360_v48 = vpop.f32.mrf.mxu0  ;;  %6527 = vmatpush1.msra.mxu0 %v12702_v38 }
0x118f   :  { %v6414_v30 = vrot.slane %v6413_v46, 2  ;;  %v6419_v49 = vadd.f32 %v6418_v47, %v12676_v37  ;;  %6528 = vmatprep.subr.mxu0 %v12705_v53 }
0x1191   :  { %v6415_v7 = vadd.f32 %v6414_v30, %v6413_v46  ;;  %v6420_v31 = vrot.slane %v6419_v49, 2  ;;  %v12709_v46 = vld [vmem:[#allocation12] sm:$0xff] }
0x1192   :  { %6529 = vmatpush1.msra.mxu0 %v12709_v46 }
0x1193   :  { %v6421_v2 = vadd.f32 %v6420_v31, %v6419_v49  ;;  %v6416_v27 = vrot.slane %v6415_v7, 1  ;;  %8945 = vmatprep.subr.mxu0 %v12449_v21 }
0x1195   :  { %v6422_v8 = vrot.slane %v6421_v2, 1  ;;  %v6417_v32 = vadd.f32 %v6416_v27, %v6415_v7  ;;  %v9855_v27 = vld [vmem:[%s13042_s23 + $0xf8] sm:$0xff]  }
0x1197   :  { %v6423_v29 = vadd.f32 %v6422_v8, %v6421_v2  ;;  %v9871_v8 = vld [vmem:[%s13042_s23 + $0x78] sm:$0xff]  }
0x1199   :  { %6488 = vmatprep.mubr.f32.mxu1 %v6423_v29  ;;  %v8601_v29 = vld [vmem:[%s13041_s22 + $0x1] sm:$0x1] }
0x119a   :  { %6489 = vmatmul.mubr.f32.vlgmr.msra.gmra.mxu1 %v6417_v32  ;;  %v6845_v32 = vld [vmem:[%s13041_s22] sm:$0x1] }
0x119b   :  { %6688 = vmatpush1.msra.mxu1 %v12642_v14  ;;  %6735 = vmatprep.mubr.f32.mxu1 %v10107_v35 }
0x119c   :  { %6689 = vmatprep.subr.mxu1 %v12644_v16 }
0x119d   :  { %6690 = vmatpush1.msra.mxu1 %v12648_v11 }
0x119e   :  { %6691 = vmatprep.subr.mxu1 %v12652_v18 }
0x119f   :  { %6692 = vmatpush1.msra.mxu1 %v12656_v0 }
0x11a0   :  { %6693 = vmatprep.subr.mxu1 %v12659_v28 }
0x11a1   :  { %6694 = vmatpush1.msra.mxu1 %v12663_v63 }
0x11a2   :  { %6695 = vmatprep.subr.mxu1 %v12666_v57 }
0x11a3   :  { %6696 = vmatpush1.msra.mxu1 %v12690_v26 }
0x11a4   :  { %6697 = vmatprep.subr.mxu1 %v12692_v52 }
0x11a5   :  { %6698 = vmatpush1.msra.mxu1 %v12698_v9 }
0x11a6   :  { %6699 = vmatprep.subr.mxu1 %v12700_v3 }
0x11a7   :  { %6700 = vmatpush1.msra.mxu1 %v12702_v38 }
0x11a8   :  { %6701 = vmatprep.subr.mxu1 %v12705_v53 }
0x11a9   :  { %6702 = vmatpush1.msra.mxu1 %v12709_v46 }
0x11aa   :  { %6762 = vmatprep.subr.mxu1 %v12640_v4 }
0x125a   :  { %v8942_v47 = vpop.f32.mrf.mxu1 }
0x125c   :  { %v8943_v48 = vpop.f32.mrf.mxu1 }
0x125d   :  { %v8944_v30 = vadd.f32 %v8943_v48, %v8942_v47  ;;  %v9875_v47 = vld [vmem:[%s13042_s23 + $0x68] sm:$0xff]  }
0x125e   :  { %v9860_v48 = vld [vmem:[%s13042_s23 + $0xa8] sm:$0xff]  }
0x125f   :  { %v6494_v49 = vmul.f32 0.03125, %v8944_v30  ;;  %v9876_v30 = vld [vmem:[%s13042_s23 + $0x28] sm:$0xff]  }
0x1261   :  { %8596 = vmatmul.mubr.msk.f32.vlgmr.msra.gmra.mxu0 %vm665_vm0, %v6494_v49  ;;  %v9861_v49 = vld [vmem:[%s13042_s23 + $0xe0] sm:$0xff]  }
0x1262   :  { %8946 = vmatpush3.msra.mxu0 %v12459_v43 }
0x1263   :  { %8947 = vmatprep.subr.mxu0 %v12464_v56 }
0x1264   :  { %8948 = vmatpush3.msra.mxu0 %v12469_v20 }
0x1265   :  { %8949 = vmatprep.subr.mxu0 %v12475_v40 }
0x1266   :  { %8950 = vmatpush3.msra.mxu0 %v12481_v1 }
0x1267   :  { %8951 = vmatprep.subr.mxu0 %v12490_v33 }
0x1268   :  { %8952 = vmatpush3.msra.mxu0 %v12495_v34 }
0x1269   :  { %8953 = vmatprep.subr.mxu0 %v12502_v22 }
0x126a   :  { %8954 = vmatpush3.msra.mxu0 %v12507_v45 }
0x126b   :  { %8955 = vmatprep.subr.mxu0 %v12512_v50 }
0x126c   :  { %8956 = vmatpush3.msra.mxu0 %v12518_v59 }
0x126d   :  { %8957 = vmatprep.subr.mxu0 %v12524_v61 }
0x126e   :  { %8958 = vmatpush3.msra.mxu0 %v12530_v60 }
0x126f   :  { %8959 = vmatprep.subr.mxu0 %v12538_v17 }
0x1270   :  { %8960 = vmatpush3.msra.mxu0 %v12544_v36 }
0x1271   :  { %8961 = vmatprep.subr.mxu0 %v12550_v5 }
0x1272   :  { %8962 = vmatpush3.msra.mxu0 %v12556_v25 }
0x1273   :  { %8963 = vmatprep.subr.mxu0 %v12562_v15 }
0x1274   :  { %8964 = vmatpush3.msra.mxu0 %v12568_v6 }
0x1275   :  { %8965 = vmatprep.subr.mxu0 %v12574_v62 }
0x1276   :  { %8966 = vmatpush3.msra.mxu0 %v12580_v12 }
0x1277   :  { %8967 = vmatprep.subr.mxu0 %v12586_v42 }
0x1278   :  { %8968 = vmatpush3.msra.mxu0 %v12592_v51 }
0x1279   :  { %8969 = vmatprep.subr.mxu0 %v12598_v19 }
0x127a   :  { %8970 = vmatpush3.msra.mxu0 %v12603_v41  ;;  %v6664_v41 = vld [vmem:[%s13039_s20] sm:$0x1] }
0x127b   :  { %8971 = vmatprep.subr.mxu0 %v12608_v55 }
0x127c   :  { %8972 = vmatpush3.msra.mxu0 %v12614_v24 }
0x127d   :  { %8973 = vmatprep.subr.mxu0 %v12620_v23 }
0x127e   :  { %8974 = vmatpush3.msra.mxu0 %v12626_v10 }
0x127f   :  { %8975 = vmatprep.subr.mxu0 %v12632_v13 }
0x1280   :  { %8976 = vmatpush3.msra.mxu0 %v12637_v39 }
0x1321   :  { %v6564_v21 = vpop.f32.mrf.mxu0 }
0x1322   :  { %v6572_v43 = vrot.slane %v6564_v21, %v11234_v44  ;;  %v9877_v21 = vld [vmem:[%s13042_s23 + $0x60] sm:$0xff]  }
0x1323   :  { %v6566_v56 = vpop.f32.mrf.mxu0 }
0x1324   :  { %v6577_v20 = vsub.f32 %v12673_v54, %v6572_v43  ;;  %v6576_v40 = vrot.slane %v6566_v56, %v11234_v44  ;;  %v9862_v43 = vld [vmem:[%s13042_s23 + $0xa0] sm:$0xff]  }
0x1325   :  { %v9878_v56 = vld [vmem:[%s13042_s23 + $0x20] sm:$0xff]  }
0x1326   :  { %v6579_v1 = vmul.f32 %v6577_v20, %v6577_v20  ;;  %v6578_v33 = vsub.f32 %v12676_v37, %v6576_v40  ;;  %v9864_v40 = vld [vmem:[%s13042_s23 + $0x98] sm:$0xff]  }
0x1328   :  { %v6581_v34 = vrot.slane %v6579_v1, 4  ;;  %v6580_v22 = vmul.f32 %v6578_v33, %v6578_v33 }
0x132a   :  { %v6582_v45 = vadd.f32 %v6581_v34, %v6579_v1  ;;  %v6587_v50 = vrot.slane %v6580_v22, 4  ;;  %v9865_v1 = vld [vmem:[%s13042_s23 + $0xd0] sm:$0xff]   ;;  %v9867_v34 = vld [vmem:[%s13042_s23 + $0xc8] sm:$0xff]  }
0x132c   :  { %v6583_v59 = vrot.slane %v6582_v45, 2  ;;  %v6588_v61 = vadd.f32 %v6587_v50, %v6580_v22  ;;  %v9868_v22 = vld [vmem:[%s13042_s23 + $0x88] sm:$0xff]   ;;  %v9870_v50 = vld [vmem:[%s13042_s23 + $0x80] sm:$0xff]  }
0x132e   :  { %v6584_v60 = vadd.f32 %v6583_v59, %v6582_v45  ;;  %v6589_v17 = vrot.slane %v6588_v61, 2  ;;  %v9869_v45 = vld [vmem:[%s13042_s23 + $0xc0] sm:$0xff]   ;;  %v9879_v59 = vld [vmem:[%s13042_s23 + $0x58] sm:$0xff]  }
0x1330   :  { %v6590_v36 = vadd.f32 %v6589_v17, %v6588_v61  ;;  %v6585_v5 = vrot.slane %v6584_v60, 1  ;;  %v9880_v61 = vld [vmem:[%s13042_s23 + $0x18] sm:$0xff]   ;;  %v9882_v17 = vld [vmem:[%s13042_s23 + $0x10] sm:$0xff]  }
0x1332   :  { %v6591_v25 = vrot.slane %v6590_v36, 1  ;;  %v6586_v6 = vadd.f32 %v6585_v5, %v6584_v60  ;;  %v9881_v60 = vld [vmem:[%s13042_s23 + $0x50] sm:$0xff]   ;;  %v9884_v5 = vld [vmem:[%s13042_s23 + $0x8] sm:$0xff]  }
0x1334   :  { %v6592_v15 = vadd.f32 %v6591_v25, %v6590_v36  ;;  %v9883_v36 = vld [vmem:[%s13042_s23 + $0x48] sm:$0xff]   ;;  %v9885_v25 = vld [vmem:[%s13042_s23 + $0x40] sm:$0xff]  }
0x1336   :  { %6657 = vmatprep.mubr.f32.mxu0 %v6592_v15  ;;  %v9886_v15 = vld [vmem:[%s13042_s23] sm:$0xff]  }
0x1337   :  { %6658 = vmatmul.mubr.f32.vlgmr.msra.gmra.mxu0 %v6586_v6  ;;  %v9887_v6 = vld [vmem:[%s13042_s23 + $0x178] sm:$0xff]  }
0x1338   :  { %6889 = vmatprep.mubr.bf16.mxu0 %v13082_v58 }
0x13f7   :  { %v8977_v62 = vpop.f32.mrf.mxu0 }
0x13f9   :  { %v8978_v12 = vpop.f32.mrf.mxu0 }
0x13fa   :  { %v8979_v42 = vadd.f32 %v8978_v12, %v8977_v62 }
0x13fc   :  { %v6663_v51 = vmul.f32 0.03125, %v8979_v42 }
0x13fe   :  { %v6665_v19 = vadd.f32 1e-05, %v6663_v51 }
0x1400   :  { %9923 = vrsqrt.f32 %v6665_v19 }
0x140d   :  { %v9924_v55 = vpop.eup %9923 }
0x140e   :  { %v6667_v24 = vmul.f32 %v9924_v55, %v6664_v41 }
0x1410   :  { %8597 = vmatmul.mubr.msk.f32.vlgmr.msra.gmra.mxu1 %vm665_vm0, %v6667_v24 }
0x1411   :  { %6763 = vmatpush1.msra.mxu1 %v12642_v14  ;;  %6810 = vmatprep.mubr.f32.mxu1 %v10107_v35  ;;  %v6742_v35 = vld [vmem:[%s13040_s21] sm:$0x1] }
0x1412   :  { %6764 = vmatprep.subr.mxu1 %v12644_v16 }
0x1413   :  { %6765 = vmatpush1.msra.mxu1 %v12648_v11 }
0x1414   :  { %6766 = vmatprep.subr.mxu1 %v12652_v18 }
0x1415   :  { %6767 = vmatpush1.msra.mxu1 %v12656_v0 }
0x1416   :  { %6768 = vmatprep.subr.mxu1 %v12659_v28 }
0x1417   :  { %6769 = vmatpush1.msra.mxu1 %v12663_v63 }
0x1418   :  { %6770 = vmatprep.subr.mxu1 %v12666_v57 }
0x1419   :  { %6771 = vmatpush1.msra.mxu1 %v12690_v26  ;;  %v9856_v26 = vld [vmem:[%s13042_s23 + $0xb8] sm:$0xff]  }
0x141a   :  { %6772 = vmatprep.subr.mxu1 %v12692_v52  ;;  %v9872_v52 = vld [vmem:[%s13042_s23 + $0x38] sm:$0xff]  }
0x141b   :  { %6773 = vmatpush1.msra.mxu1 %v12698_v9  ;;  %v9857_v9 = vld [vmem:[%s13042_s23 + $0xf0] sm:$0xff]  }
0x141c   :  { %6774 = vmatprep.subr.mxu1 %v12700_v3  ;;  %v9873_v3 = vld [vmem:[%s13042_s23 + $0x70] sm:$0xff]  }
0x141d   :  { %6775 = vmatpush1.msra.mxu1 %v12702_v38  ;;  %v9858_v38 = vld [vmem:[%s13042_s23 + $0xb0] sm:$0xff]  }
0x141e   :  { %6776 = vmatprep.subr.mxu1 %v12705_v53  ;;  %v9874_v53 = vld [vmem:[%s13042_s23 + $0x30] sm:$0xff]  }
0x141f   :  { %6777 = vmatpush1.msra.mxu1 %v12709_v46  ;;  %v9859_v46 = vld [vmem:[%s13042_s23 + $0xe8] sm:$0xff]  }
0x1420   :  { %8598 = vmatmul.mubr.msk.f32.vlgmr.msra.gmra.mxu1 %vm665_vm0, %v6742_v35 }
0x1421   :  { %6969 = vmatprep.mubr.bf16.mxu1 %v13082_v58 }
0x14d0   :  { %v6737_v23 = vpop.f32.mrf.mxu1 }
0x14d1   :  { %v6820_v13 = vrot.slane %v6737_v23, %v11234_v44 }
0x14d2   :  { %v6739_v10 = vpop.f32.mrf.mxu1 }
0x14d3   :  { %v6824_v39 = vrot.slane %v6739_v10, %v11234_v44  ;;  %v6825_v14 = vmul.f32 %v6820_v13, %v6577_v20  ;;  %v9863_v20 = vld [vmem:[%s13042_s23 + $0xd8] sm:$0xff]   ;;  %v9889_v13 = vld [vmem:[%s13042_s23 + $0x170] sm:$0xff]  }
0x14d4   :  { %v9888_v10 = vld [vmem:[%s13042_s23 + $0x138] sm:$0xff]  }
0x14d5   :  { %v6826_v18 = vmul.f32 %v6824_v39, %v6578_v33  ;;  %v9866_v33 = vld [vmem:[%s13042_s23 + $0x90] sm:$0xff]  }
0x14e0   :  { %v6812_v4 = vpop.f32.mrf.mxu1 }
0x14e1   :  { %v6830_v16 = vrot.slane %v6812_v4, %v11234_v44 }
0x14e2   :  { %v6814_v11 = vpop.f32.mrf.mxu1 }
0x14e3   :  { %v6835_v0 = vadd.f32 %v6830_v16, %v6825_v14  ;;  %v6834_v28 = vrot.slane %v6814_v11, %v11234_v44  ;;  %v9890_v14 = vld [vmem:[%s13042_s23 + $0x130] sm:$0xff]   ;;  %v9891_v16 = vld [vmem:[%s13042_s23 + $0x168] sm:$0xff]   ;;  %v8668_v11 = vld [vmem:[%s13041_s22 + $0x2] sm:$0x1] }
0x14e5   :  { %vm6837_vm1 = vcmp.gt.f32.partialorder %v6835_v0, 0.0  ;;  %v6839_v63 = vmul.f32 0.2, %v6835_v0  ;;  %v6836_v57 = vadd.f32 %v6834_v28, %v6826_v18  ;;  %v9892_v18 = vld [vmem:[%s13042_s23 + $0x1f8] sm:$0xff]   ;;  %v9895_v28 = vld [vmem:[%s13042_s23 + $0x160] sm:$0xff]  }
0x14e7   :  { %vm6838_vm0 = vcmp.gt.f32.partialorder %v6836_v57, 0.0  ;;  %v6840_v54 = vmul.f32 0.2, %v6836_v57  ;;  %v6841_v37 = vsel %vm6837_vm1, %v6835_v0, %v6839_v63  ;;  %v9893_v0 = vld [vmem:[%s13042_s23 + $0x128] sm:$0xff]   ;;  %v9897_v63 = vld [vmem:[%s13042_s23 + $0x120] sm:$0xff]  }
0x14e8   :  { %v6843_v7 = vpack.c.bf16 %v6841_v37, %v6841_v37  ;;  %v9894_v37 = vld [vmem:[%s13042_s23 + $0x1b8] sm:$0xff]  }
0x14e9   :  { %v6842_v31 = vsel %vm6838_vm0, %v6836_v57, %v6840_v54  ;;  %v9899_v57 = vld [vmem:[%s13042_s23 + $0x158] sm:$0xff]   ;;  %v8719_v54 = vld [vmem:[%s13041_s22 + $0x3] sm:$0x1] }
0x14ea   :  { %v12786_v2 = vpack.c.bf16 %v6842_v31, %v6842_v31  ;;  %v12799_v44 = vsel %vm6850_vm2, %v6843_v7, 0  ;;  %v9901_v7 = vld [vmem:[%s13042_s23 + $0x118] sm:$0xff]   ;;  %v9898_v31 = vld [vmem:[%s13042_s23 + $0x1b0] sm:$0xff]  }
0x14ec   :  { %8599 = vmatprep.subr.msk.bf16.mxu0 %vm6850_vm2, %v12786_v2  ;;  %8602 = vmatprep.subr.msk.bf16.mxu1 %vm6850_vm2, %v12786_v2 }
0x14ed   :  { %6872 = vmatpush1.bf16.msra.mxu0 %v12799_v44  ;;  %6952 = vmatpush1.bf16.msra.mxu1 %v12799_v44 }
0x14ee   :  { %8980 = vmatprep.subr.bf16.mxu0 %v9855_v27  ;;  %9002 = vmatprep.subr.bf16.mxu1 %v9871_v8  ;;  %v9902_v27 = vld [vmem:[%s13042_s23 + $0x1a8] sm:$0xff]   ;;  %v9903_v8 = vld [vmem:[%s13042_s23 + $0x150] sm:$0xff]  }
0x14f0   :  { %8603 = vmatmul.mubr.msk.bf16.vlgmr.msra.gmra.mxu1 %vm6846_vm3, %v8601_v29  ;;  %8600 = vmatmul.mubr.msk.bf16.vlgmr.msra.gmra.mxu0 %vm6846_vm3, %v6845_v32  ;;  %v9905_v29 = vld [vmem:[%s13042_s23 + $0x110] sm:$0xff]   ;;  %v9906_v32 = vld [vmem:[%s13042_s23 + $0x1a0] sm:$0xff]  }
0x14f1   :  { %8981 = vmatpush3.bf16.msra.mxu0 %v9856_v26  ;;  %9003 = vmatpush3.bf16.msra.mxu1 %v9872_v52  ;;  %v9907_v26 = vld [vmem:[%s13042_s23 + $0x148] sm:$0xff]   ;;  %v9908_v52 = vld [vmem:[%s13042_s23 + $0x1d8] sm:$0xff]  }
0x14f2   :  { %8982 = vmatprep.subr.bf16.mxu0 %v9857_v9  ;;  %9004 = vmatprep.subr.bf16.mxu1 %v9873_v3  ;;  %v9909_v9 = vld [vmem:[%s13042_s23 + $0x108] sm:$0xff]   ;;  %v9910_v3 = vld [vmem:[%s13042_s23 + $0x198] sm:$0xff]  }
0x14f5   :  { %8983 = vmatpush3.bf16.msra.mxu0 %v9858_v38  ;;  %9005 = vmatpush3.bf16.msra.mxu1 %v9874_v53  ;;  %v9911_v38 = vld [vmem:[%s13042_s23 + $0x140] sm:$0xff]   ;;  %v9912_v53 = vld [vmem:[%s13042_s23 + $0x1d0] sm:$0xff]  }
0x14f6   :  { %8984 = vmatprep.subr.bf16.mxu0 %v9859_v46  ;;  %9006 = vmatprep.subr.bf16.mxu1 %v9875_v47  ;;  %v9913_v46 = vld [vmem:[%s13042_s23 + $0x100] sm:$0xff]   ;;  %v9914_v47 = vld [vmem:[%s13042_s23 + $0x190] sm:$0xff]  }
0x14f9   :  { %8985 = vmatpush3.bf16.msra.mxu0 %v9860_v48  ;;  %9007 = vmatpush3.bf16.msra.mxu1 %v9876_v30  ;;  %v9915_v48 = vld [vmem:[%s13042_s23 + $0x1c8] sm:$0xff]  }
0x14fa   :  { %8986 = vmatprep.subr.bf16.mxu0 %v9861_v49  ;;  %9008 = vmatprep.subr.bf16.mxu1 %v9877_v21  ;;  %v9916_v30 = vld [vmem:[%s13042_s23 + $0x188] sm:$0xff]   ;;  %v9917_v49 = vld [vmem:[%s13042_s23 + $0x1c0] sm:$0xff]  }
0x14fb   :  { %v9918_v21 = vld [vmem:[%s13042_s23 + $0x180] sm:$0xff]  }
0x14fd   :  { %8987 = vmatpush3.bf16.msra.mxu0 %v9862_v43  ;;  %9009 = vmatpush3.bf16.msra.mxu1 %v9878_v56 }
0x14fe   :  { %8988 = vmatprep.subr.bf16.mxu0 %v9863_v20  ;;  %9010 = vmatprep.subr.bf16.mxu1 %v9879_v59 }
0x1501   :  { %8989 = vmatpush3.bf16.msra.mxu0 %v9864_v40  ;;  %9011 = vmatpush3.bf16.msra.mxu1 %v9880_v61 }
0x1502   :  { %8990 = vmatprep.subr.bf16.mxu0 %v9865_v1  ;;  %9012 = vmatprep.subr.bf16.mxu1 %v9881_v60 }
0x1505   :  { %8991 = vmatpush3.bf16.msra.mxu0 %v9866_v33  ;;  %9013 = vmatpush3.bf16.msra.mxu1 %v9882_v17 }
0x1506   :  { %8992 = vmatprep.subr.bf16.mxu0 %v9867_v34  ;;  %9014 = vmatprep.subr.bf16.mxu1 %v9883_v36 }
0x1509   :  { %8993 = vmatpush3.bf16.msra.mxu0 %v9868_v22  ;;  %9015 = vmatpush3.bf16.msra.mxu1 %v9884_v5 }
0x150a   :  { %8994 = vmatprep.subr.bf16.mxu0 %v9869_v45  ;;  %9016 = vmatprep.subr.bf16.mxu1 %v9885_v25 }
0x150d   :  { %8995 = vmatpush3.bf16.msra.mxu0 %v9870_v50  ;;  %9017 = vmatpush3.bf16.msra.mxu1 %v9886_v15 }
0x150e   :  { %8669 = vmatprep.subr.msk.bf16.mxu0 %vm6850_vm2, %v12786_v2  ;;  %9024 = vmatprep.subr.bf16.mxu1 %v9887_v6 }
0x15b0   :  { %v6971_v62 = vpop.f32.mrf.mxu1  ;;  %v6891_v12 = vpop.f32.mrf.mxu0 }
0x15b1   :  { %v6898_v51 = vpack.c.bf16 %v6891_v12, %v6891_v12  ;;  %v6978_v24 = vpack.c.bf16 %v6971_v62, %v6971_v62 }
0x15b2   :  { %v6973_v42 = vpop.f32.mrf.mxu1  ;;  %v6893_v19 = vpop.f32.mrf.mxu0 }
0x15b3   :  { %v6979_v41 = vpack.c.bf16 %v6973_v42, %v6973_v42  ;;  %v6899_v55 = vpack.c.bf16 %v6893_v19, %v6893_v19 }
0x15b4   :  { %v6975_v35 = vpop.f32.mrf.mxu1  ;;  %v6895_v23 = vpop.f32.mrf.mxu0 }
0x15b5   :  { %7141 = vmatprep.mubr.bf16.mxu0 %v6979_v41  ;;  %7277 = vmatprep.mubr.bf16.mxu1 %v6899_v55 }
0x15b6   :  { %7142 = vmatmul.mubr.bf16.vlgmr.msra.gmra.mxu0 %v6978_v24  ;;  %v6976_v39 = vpop.f32.mrf.mxu1  ;;  %7278 = vmatmul.mubr.bf16.vlgmr.msra.gmra.mxu1 %v6898_v51  ;;  %v6896_v4 = vpop.f32.mrf.mxu0 }
0x15b7   :  { %7305 = vmatpush1.bf16.msra.mxu0 %v12799_v44  ;;  %7322 = vmatprep.mubr.bf16.mxu0 %v13082_v58  ;;  %v7721_v4 = vld [vmem:[%s13083_s14] sm:$0x3] }
0x15b8   :  { %8720 = vmatprep.subr.msk.bf16.mxu0 %vm6850_vm2, %v12786_v2  ;;  %9025 = vmatpush3.bf16.msra.mxu1 %v9888_v10  ;;  %v9900_v2 = vld [vmem:[%s13042_s23 + $0x1e8] sm:$0xff]  }
0x15b9   :  { %9026 = vmatprep.subr.bf16.mxu1 %v9889_v13 }
0x15bc   :  { %9027 = vmatpush3.bf16.msra.mxu1 %v9890_v14 }
0x15bd   :  { %9028 = vmatprep.subr.bf16.mxu1 %v9891_v16 }
0x15be   :  { %8670 = vmatmul.mubr.msk.bf16.vlgmr.msra.gmra.mxu0 %vm6846_vm3, %v8668_v11 }
0x15bf   :  { %7523 = vmatpush1.bf16.msra.mxu0 %v12799_v44  ;;  %7540 = vmatprep.mubr.bf16.mxu0 %v13082_v58  ;;  %v9896_v58 = vld [vmem:[%s13042_s23 + $0x1f0] sm:$0xff]   ;;  %v9904_v44 = vld [vmem:[%s13042_s23 + $0x1e0] sm:$0xff]  }
0x15c0   :  { %9046 = vmatprep.subr.bf16.mxu0 %v9892_v18  ;;  %9029 = vmatpush3.bf16.msra.mxu1 %v9893_v0 }
0x15c1   :  { %9030 = vmatprep.subr.bf16.mxu1 %v9895_v28 }
0x15c4   :  { %9031 = vmatpush3.bf16.msra.mxu1 %v9897_v63 }
0x15c5   :  { %9032 = vmatprep.subr.bf16.mxu1 %v9899_v57 }
0x15c6   :  { %8721 = vmatmul.mubr.msk.bf16.vlgmr.msra.gmra.mxu0 %vm6846_vm3, %v8719_v54 }
0x15c7   :  { %9047 = vmatpush3.bf16.msra.mxu0 %v9894_v37 }
0x15c8   :  { %9048 = vmatprep.subr.bf16.mxu0 %v9896_v58  ;;  %9033 = vmatpush3.bf16.msra.mxu1 %v9901_v7 }
0x15c9   :  { %9034 = vmatprep.subr.bf16.mxu1 %v9903_v8 }
0x15cb   :  { %9049 = vmatpush3.bf16.msra.mxu0 %v9898_v31 }
0x15cc   :  { %9050 = vmatprep.subr.bf16.mxu0 %v9900_v2  ;;  %9035 = vmatpush3.bf16.msra.mxu1 %v9905_v29 }
0x15cd   :  { %9036 = vmatprep.subr.bf16.mxu1 %v9907_v26 }
0x15cf   :  { %9051 = vmatpush3.bf16.msra.mxu0 %v9902_v27 }
0x15d0   :  { %9052 = vmatprep.subr.bf16.mxu0 %v9904_v44  ;;  %9037 = vmatpush3.bf16.msra.mxu1 %v9909_v9 }
0x15d1   :  { %9038 = vmatprep.subr.bf16.mxu1 %v9911_v38 }
0x15d3   :  { %9053 = vmatpush3.bf16.msra.mxu0 %v9906_v32 }
0x15d4   :  { %9054 = vmatprep.subr.bf16.mxu0 %v9908_v52  ;;  %9039 = vmatpush3.bf16.msra.mxu1 %v9913_v46 }
0x15d7   :  { %9055 = vmatpush3.bf16.msra.mxu0 %v9910_v3 }
0x15d8   :  { %9056 = vmatprep.subr.bf16.mxu0 %v9912_v53 }
0x15db   :  { %9057 = vmatpush3.bf16.msra.mxu0 %v9914_v47 }
0x15dc   :  { %9058 = vmatprep.subr.bf16.mxu0 %v9915_v48 }
0x15df   :  { %9059 = vmatpush3.bf16.msra.mxu0 %v9916_v30 }
0x15e0   :  { %9060 = vmatprep.subr.bf16.mxu0 %v9917_v49 }
0x15e3   :  { %9061 = vmatpush3.bf16.msra.mxu0 %v9918_v21 }
0x1676   :  { %v8996_v43 = vpop.f32.mrf.mxu0  ;;  %v9018_v56 = vpop.f32.mrf.mxu1 }
0x1678   :  { %v8997_v20 = vpop.f32.mrf.mxu0  ;;  %v9019_v40 = vpop.f32.mrf.mxu1 }
0x1679   :  { %v8998_v1 = vadd.f32 %v8997_v20, %v8996_v43  ;;  %v9020_v33 = vadd.f32 %v9019_v40, %v9018_v56 }
0x167a   :  { %v8999_v34 = vpop.f32.mrf.mxu0  ;;  %v9021_v22 = vpop.f32.mrf.mxu1 }
0x167b   :  { %v7280_v45 = vadd.f32 %v9020_v33, %v8998_v1 }
0x167c   :  { %v9000_v50 = vpop.f32.mrf.mxu0  ;;  %v9022_v59 = vpop.f32.mrf.mxu1 }
0x167e   :  { %v7324_v61 = vpop.f32.mrf.mxu0 }
0x167f   :  { %v7331_v36 = vpack.c.bf16 %v7324_v61, %v7324_v61 }
0x1680   :  { %v7326_v60 = vpop.f32.mrf.mxu0 }
0x1681   :  { %v7332_v17 = vpack.c.bf16 %v7326_v60, %v7326_v60 }
0x1682   :  { %v7328_v5 = vpop.f32.mrf.mxu0 }
0x1683   :  { %7494 = vmatprep.mubr.bf16.mxu1 %v7332_v17 }
0x1684   :  { %v7329_v25 = vpop.f32.mrf.mxu0  ;;  %7495 = vmatmul.mubr.bf16.vlgmr.msra.gmra.mxu1 %v7331_v36 }
0x1686   :  { %v7542_v15 = vpop.f32.mrf.mxu0 }
0x1687   :  { %v7549_v12 = vpack.c.bf16 %v7542_v15, %v7542_v15 }
0x1688   :  { %v7544_v6 = vpop.f32.mrf.mxu0 }
0x1689   :  { %v7550_v62 = vpack.c.bf16 %v7544_v6, %v7544_v6 }
0x168a   :  { %v7546_v42 = vpop.f32.mrf.mxu0 }
0x168b   :  { %7712 = vmatprep.mubr.bf16.mxu0 %v7550_v62 }
0x168c   :  { %7713 = vmatmul.mubr.bf16.vlgmr.msra.gmra.mxu0 %v7549_v12  ;;  %v7547_v51 = vpop.f32.mrf.mxu0 }
0x1744   :  { %v9040_v19 = vpop.f32.mrf.mxu1 }
0x1746   :  { %v9041_v41 = vpop.f32.mrf.mxu1 }
0x1747   :  { %v9042_v35 = vadd.f32 %v9041_v41, %v9040_v19 }
0x1748   :  { %v9043_v55 = vpop.f32.mrf.mxu1 }
0x1749   :  { %v7502_v13 = vadd.f32 %v9042_v35, %v7280_v45 }
0x174a   :  { %v9044_v24 = vpop.f32.mrf.mxu1 }
0x174c   :  { %v9062_v23 = vpop.f32.mrf.mxu0 }
0x174e   :  { %v9063_v10 = vpop.f32.mrf.mxu0 }
0x174f   :  { %v9064_v39 = vadd.f32 %v9063_v10, %v9062_v23 }
0x1750   :  { %v9065_v14 = vpop.f32.mrf.mxu0 }
0x1751   :  { %v7720_v16 = vadd.f32 %v9064_v39, %v7502_v13 }
0x1752   :  { %v9066_v11 = vpop.f32.mrf.mxu0 }
0x1753   :  { %v7722_v18 = vmul.f32 %v7721_v4, %v7720_v16 }
0x1755   :  { %v7724_v0 = vsel %vm7723_vm4, %v7722_v18, 0.0 }
0x1756   :  { %7725 = vadd.xlane.f32.xlu0 %v7724_v0 }
0x17df   :  { %v7726_v28 = vpop.xlane.xlu0 %7725 }
0x17e0   :  { %v7727_v63 = vsub.f32 0.0, %v7726_v28 }
0x17e2   :  { %v7728_v57 = vmul.f32 1.442695, %v7727_v63 }
0x17e4   :  { %9925 = vpow2.f32 %v7728_v57 }
0x17f1   :  { %v9926_v54 = vpop.eup %9925 }
0x17f2   :  { %v7730_v37 = vadd.f32 1.0, %v9926_v54 }
0x17f4   :  { %9927 = vrcp.f32 %v7730_v37 }
0x1801   :  { %v9928_v58 = vpop.eup %9927 }
0x1802   :  { %7734 = vst.msk [vmem:[%s13084_s30] sm:$0x3] %vm7733_vm5, %v9928_v58 }
0x1803   :  { %7739 = vsyncpa [#allocation3], 1 }
0x1804   :  { %7740 = vsyncpa [#allocation5], 1 }
0x1805   :  { %7741 = vsyncpa [#allocation8], 1 }
0x1806   :  { %7742 = vsyncpa [#allocation11], 1 }

</bundles_post_ra>
